<compile_context>
chip_gen: v5e
topology: v5e:2x2
jax: 0.10.0
libtpu: 0.0.40
codegen_flags: <defaults>
</compile_context>

<pallas_src>
import functools

import numpy as np

import jax
import jax.numpy as jnp
from jax import lax
from jax.experimental import pallas as pl
from jax.experimental.pallas import tpu as pltpu


# ---------------------------------------------------------------------------
# Fused Pallas kernel: entire netJSCC forward for one image per grid step.
# Activation layout inside the kernel: 2-D (rows = image rows,
# cols = width*channels, channel-minor).
# ---------------------------------------------------------------------------
def _fused_jscc_kernel(x_ref,
                       g_e1, b_e1, g_e2, b_e2, g_e3, b_e3,
                       g_d1, b_d1, g_d2, b_d2,
                       g_d3e, g_d3o, b_d3,
                       o_ref, *, hw):
    f32, bf16 = jnp.float32, jnp.bfloat16

    def row_sel(h_out, h_in, stride, di):
        # 0/1 selection matrix: picks input row (stride*y + di - 1); rows that
        # fall outside [0, h_in) match nothing -> implicit zero padding.
        y = lax.broadcasted_iota(jnp.int32, (h_out, h_in), 0)
        r = lax.broadcasted_iota(jnp.int32, (h_out, h_in), 1)
        return jnp.where(r == stride * y + (di - 1), 1.0, 0.0).astype(bf16)

    def row_sel_parity(h_out, h_in_half, di, parity):
        # Row selection on the depth_to_space(r=2)-upsampled image, split by
        # the parity of the upsampled row (even rows -> plane 0, odd -> 1).
        y = lax.broadcasted_iota(jnp.int32, (h_out, h_in_half), 0)
        t = lax.broadcasted_iota(jnp.int32, (h_out, h_in_half), 1)
        return jnp.where(y + (di - 1) == 2 * t + parity, 1.0, 0.0).astype(bf16)

    def conv(x2d, g_ref, b_ref, h_out, stride, act):
        # out = sum_di (RowSel_di @ X) @ G_di + bias     (bf16 MXU, f32 acc)
        h_in = x2d.shape[0]
        n = g_ref.shape[-1]
        xb = x2d.astype(bf16)
        acc = jnp.zeros((h_out, n), f32)
        for di in range(3):
            if stride == 1 and di == 1:           # identity row selection
                a = xb
            else:
                a = jnp.dot(row_sel(h_out, h_in, stride, di), xb,
                            preferred_element_type=f32).astype(bf16)
            acc = acc + jnp.dot(a, g_ref[di], preferred_element_type=f32)
        acc = acc + b_ref[...]
        if act == "relu":
            acc = jnp.maximum(acc, 0.0)
        return acc                                 # f32

    h_half, h_quart = hw // 2, hw // 4

    x0 = x_ref[0]                                          # (hw, hw*Cin)  f32
    h = conv(x0, g_e1, b_e1, h_half, 2, "relu")            # encoder conv 1
    h = conv(h, g_e2, b_e2, h_quart, 2, "relu")            # encoder conv 2
    z = conv(h, g_e3, b_e3, h_quart, 1, "none")            # latent (C chans)
    h = conv(z, g_d1, b_d1, h_quart, 1, "relu")            # decoder conv 1
    hmid = conv(h, g_d2, b_d2, h_quart, 1, "relu")         # decoder conv 2

    # Decoder conv 3, fused with the preceding depth_to_space(r=2): the
    # shuffle is a pure column permutation already folded into g_d3e / g_d3o
    # (even / odd upsampled-row planes).
    hb = hmid.astype(bf16)
    n_out = g_d3e.shape[-1]
    acc = jnp.zeros((h_half, n_out), f32)
    for di in range(3):
        ae = jnp.dot(row_sel_parity(h_half, h_quart, di, 0), hb,
                     preferred_element_type=f32).astype(bf16)
        ao = jnp.dot(row_sel_parity(h_half, h_quart, di, 1), hb,
                     preferred_element_type=f32).astype(bf16)
        acc = acc + jnp.dot(ae, g_d3e[di], preferred_element_type=f32)
        acc = acc + jnp.dot(ao, g_d3o[di], preferred_element_type=f32)
    acc = acc + b_d3[...]
    y = 1.0 / (1.0 + jnp.exp(-acc))                        # sigmoid, f32 (EUP)
    o_ref[0] = y.astype(o_ref.dtype)


# ---------------------------------------------------------------------------
# Host-side (one-time) operand preparation: fold horizontal taps, stride,
# zero padding, channel contraction and the pixel shuffle into dense bf16
# weight matrices.  Entries are single weight values (no summation), so bf16
# rounding is a single rounding of the original weights.
# ---------------------------------------------------------------------------
def _col_select_np(w_in, w_out, stride, dj):
    m = np.zeros((w_in, w_out), np.float32)
    for xo in range(w_out):
        xi = stride * xo + dj - 1
        if 0 <= xi < w_in:
            m[xi, xo] = 1.0
    return m


def _tap_weight_matrices(w_hwio, w_in, w_out, stride):
    """(3, w_in*Cin, w_out*Cout): one structured matrix per vertical tap di."""
    taps = []
    for di in range(3):
        g = None
        for dj in range(3):
            m = jnp.asarray(_col_select_np(w_in, w_out, stride, dj))
            term = jnp.kron(m, w_hwio[di, dj])
            g = term if g is None else g + term
        taps.append(g)
    return jnp.stack(taps, axis=0)


def _shuffle_matrix_np(w_half, c, parity):
    """depth_to_space(r=2) as a column permutation, one matrix per
    output-row parity: (w_half*4c) pre-shuffle cols -> (2*w_half*c) cols."""
    p = np.zeros((w_half * 4 * c, 2 * w_half * c), np.float32)
    for x in range(w_half):
        for rj in range(2):
            for ch in range(c):
                p[x * 4 * c + parity * 2 * c + rj * c + ch,
                  (2 * x + rj) * c + ch] = 1.0
    return p


def prepare_operands(enc_params, dec_params, hw):
    assert hw % 4 == 0
    (we1, be1), (we2, be2), (we3, be3) = enc_params
    (wd1, bd1), (wd2, bd2), (wd3, bd3) = dec_params
    h_half, h_quart = hw // 2, hw // 4
    bf16 = jnp.bfloat16

    def tiled_bias(b, w_out):
        return jnp.tile(b, (w_out,)).reshape(1, -1).astype(jnp.float32)

    g_e1 = _tap_weight_matrices(we1, hw, h_half, 2)
    g_e2 = _tap_weight_matrices(we2, h_half, h_quart, 2)
    g_e3 = _tap_weight_matrices(we3, h_quart, h_quart, 1)
    g_d1 = _tap_weight_matrices(wd1, h_quart, h_quart, 1)
    g_d2 = _tap_weight_matrices(wd2, h_quart, h_quart, 1)

    # Decoder conv 3 runs on the depth_to_space(r=2) upsampled image; fold
    # that permutation into its tap matrices so the shuffle never materializes.
    c_mid = wd2.shape[3] // 4
    g_d3 = _tap_weight_matrices(wd3, h_half, h_half, 1)
    p_even = jnp.asarray(_shuffle_matrix_np(h_quart, c_mid, 0))
    p_odd = jnp.asarray(_shuffle_matrix_np(h_quart, c_mid, 1))
    g_d3e = jnp.einsum("km,dmn->dkn", p_even, g_d3)
    g_d3o = jnp.einsum("km,dmn->dkn", p_odd, g_d3)

    return (
        g_e1.astype(bf16), tiled_bias(be1, h_half),
        g_e2.astype(bf16), tiled_bias(be2, h_quart),
        g_e3.astype(bf16), tiled_bias(be3, h_quart),
        g_d1.astype(bf16), tiled_bias(bd1, h_quart),
        g_d2.astype(bf16), tiled_bias(bd2, h_quart),
        g_d3e.astype(bf16), g_d3o.astype(bf16), tiled_bias(bd3, h_half),
    )


# ---------------------------------------------------------------------------
# Public forward: NCHW in -> NCHW out (PyTorch contract).  The only XLA-side
# data movement is the tiny (few KB) boundary transpose/reshape of the input
# and of the final output (final depth_to_space + NHWC->NCHW).
# ---------------------------------------------------------------------------
@jax.jit
def net_jscc_forward(operands, x_nchw):
    B, C, H, W = x_nchw.shape
    assert H == W and H % 4 == 0
    x2d = jnp.transpose(x_nchw, (0, 2, 3, 1)).reshape(B, H, W * C)

    n_rows = H // 2
    n_cols = (W // 2) * (C * 4)

    # Advisory cost estimate so XLA schedules around the fused call correctly.
    layer_meta = [(operands[0], H // 2, H), (operands[2], H // 4, H // 2),
                  (operands[4], H // 4, H // 4), (operands[6], H // 4, H // 4),
                  (operands[8], H // 4, H // 4),
                  (operands[10], H // 2, H // 4), (operands[11], H // 2, H // 4)]
    flops = 0
    for g, ho, hi in layer_meta:
        k, n = g.shape[1], g.shape[2]
        flops += 3 * 2 * (ho * hi * k + ho * k * n)
    flops *= B
    bytes_accessed = x2d.size * 4 + B * n_rows * n_cols * 4
    bytes_accessed += sum(int(np.prod(a.shape)) * a.dtype.itemsize
                          for a in operands)
    cost = pl.CostEstimate(flops=int(flops),
                           transcendentals=int(B * n_rows * n_cols),
                           bytes_accessed=int(bytes_accessed))

    weight_specs = [pl.BlockSpec(a.shape, lambda b, nd=a.ndim: (0,) * nd)
                    for a in operands]

    out = pl.pallas_call(
        functools.partial(_fused_jscc_kernel, hw=H),
        out_shape=jax.ShapeDtypeStruct((B, n_rows, n_cols), jnp.float32),
        grid_spec=pltpu.PrefetchScalarGridSpec(
            num_scalar_prefetch=0,
            grid=(B,),                                  # >=2 parallel steps
            in_specs=[pl.BlockSpec((1, H, W * C), lambda b: (b, 0, 0))]
                     + weight_specs,
            out_specs=pl.BlockSpec((1, n_rows, n_cols), lambda b: (b, 0, 0)),
        ),
        compiler_params=pltpu.CompilerParams(
            dimension_semantics=("parallel",)),
        cost_estimate=cost,
    )(x2d, *operands)

    # Final depth_to_space(r=2) + NHWC->NCHW on the tiny output (pure
    # permutation, done once on a few KB).
    y = out.reshape(B, H // 2, W // 2, 2, 2, C)
    y = jnp.transpose(y, (0, 5, 1, 3, 2, 4)).reshape(B, C, H, W)
    return y


# ---------------------------------------------------------------------------
# Pure-JAX reference (lax.conv) for a correctness cross-check.
# ---------------------------------------------------------------------------
def _depth_to_space_ref(x, r):
    B, H, W, C = x.shape
    c = C // (r * r)
    x = x.reshape(B, H, W, r, r, c)
    x = x.transpose(0, 1, 3, 2, 4, 5)
    return x.reshape(B, H * r, W * r, c)


def _conv_ref(x, w, b, stride, act):
    y = lax.conv_general_dilated(x, w, (stride, stride), [(1, 1), (1, 1)],
                                 dimension_numbers=("NHWC", "HWIO", "NHWC"))
    y = y + b
    if act == "relu":
        y = jnp.maximum(y, 0.0)
    elif act == "sigmoid":
        y = jax.nn.sigmoid(y)
    return y


def reference_forward(enc_params, dec_params, x_nchw):
    (we1, be1), (we2, be2), (we3, be3) = enc_params
    (wd1, bd1), (wd2, bd2), (wd3, bd3) = dec_params
    x = jnp.transpose(x_nchw, (0, 2, 3, 1))
    h = _conv_ref(x, we1, be1, 2, "relu")
    h = _conv_ref(h, we2, be2, 2, "relu")
    z = _conv_ref(h, we3, be3, 1, "none")
    h = _conv_ref(z, wd1, bd1, 1, "relu")
    h = _conv_ref(h, wd2, bd2, 1, "relu")
    h = _depth_to_space_ref(h, 2)
    h = _conv_ref(h, wd3, bd3, 1, "sigmoid")
    h = _depth_to_space_ref(h, 2)
    return jnp.transpose(h, (0, 3, 1, 2))


# ---------------------------------------------------------------------------
# Deterministic parameters + smoke test.
# ---------------------------------------------------------------------------
if __name__ == "__main__":
    B, CIN, H, W = 2, 3, 16, 16      # small image batch (NCHW, PyTorch style)
    C_LATENT = 8                     # config.C (latent channel count)
    NF = 32                          # hidden feature width

    key = jax.random.PRNGKey(0)
    k_in, k_p = jax.random.split(key)
    keys = jax.random.split(k_p, 12)

    x = jax.random.normal(k_in, (B, CIN, H, W), jnp.float32)

    def init_conv(kw, kb, cin, cout):
        scale = 1.0 / float(9 * cin) ** 0.5
        w = jax.random.normal(kw, (3, 3, cin, cout), jnp.float32) * scale
        b = jax.random.normal(kb, (cout,), jnp.float32) * 0.1
        return (w, b)

    enc_params = (init_conv(keys[0], keys[1], CIN, NF),
                  init_conv(keys[2], keys[3], NF, NF),
                  init_conv(keys[4], keys[5], NF, C_LATENT))
    dec_params = (init_conv(keys[6], keys[7], C_LATENT, NF),
                  init_conv(keys[8], keys[9], NF, NF * 4),     # -> shuffle r=2
                  init_conv(keys[10], keys[11], NF, CIN * 4))  # -> shuffle r=2

    operands = prepare_operands(enc_params, dec_params, H)

    y = net_jscc_forward(operands, x)
    y = jax.block_until_ready(y)

    assert y.shape == (B, CIN, H, W), y.shape
    assert bool(jnp.all(jnp.isfinite(y)))

    # Cross-check against a pure-JAX f32 reference (kernel uses bf16 MXU
    # inputs with f32 accumulation -> loose tolerance).
    y_ref = reference_forward(enc_params, dec_params, x)
    err = float(jnp.max(jnp.abs(y - y_ref)))
    assert err < 5e-2, f"max |pallas - reference| = {err}"

    print("KERNEL_OK")
</pallas_src>

<mosaic_0001>
module attributes {stable_mosaic.version = 11 : i64} {
  func.func @_fused_jscc_kernel(%arg0: i32, %arg1: memref<1x16x48xf32, #tpu.memory_space<vmem>>, %arg2: memref<3x48x256xbf16, #tpu.memory_space<vmem>>, %arg3: memref<1x256xf32, #tpu.memory_space<vmem>>, %arg4: memref<3x256x128xbf16, #tpu.memory_space<vmem>>, %arg5: memref<1x128xf32, #tpu.memory_space<vmem>>, %arg6: memref<3x128x32xbf16, #tpu.memory_space<vmem>>, %arg7: memref<1x32xf32, #tpu.memory_space<vmem>>, %arg8: memref<3x32x128xbf16, #tpu.memory_space<vmem>>, %arg9: memref<1x128xf32, #tpu.memory_space<vmem>>, %arg10: memref<3x128x512xbf16, #tpu.memory_space<vmem>>, %arg11: memref<1x512xf32, #tpu.memory_space<vmem>>, %arg12: memref<3x512x96xbf16, #tpu.memory_space<vmem>>, %arg13: memref<3x512x96xbf16, #tpu.memory_space<vmem>>, %arg14: memref<1x96xf32, #tpu.memory_space<vmem>>, %arg15: memref<1x8x96xf32, #tpu.memory_space<vmem>>) attributes {dimension_semantics = [#tpu.dimension_semantics<parallel>], iteration_bounds = array<i64: 2>, scalar_prefetch = 0 : i64, scratch_operands = 0 : i64, tpu.core_type = #tpu.core_type<tc>, window_params = [{transform_indices = @transform_0, window_bounds = array<i64: 1, 16, 48>}, {pipeline_mode = #tpu.pipeline_mode<synchronous>, transform_indices = @transform_1, window_bounds = array<i64: 3, 48, 256>}, {pipeline_mode = #tpu.pipeline_mode<synchronous>, transform_indices = @transform_2, window_bounds = array<i64: 1, 256>}, {pipeline_mode = #tpu.pipeline_mode<synchronous>, transform_indices = @transform_3, window_bounds = array<i64: 3, 256, 128>}, {pipeline_mode = #tpu.pipeline_mode<synchronous>, transform_indices = @transform_4, window_bounds = array<i64: 1, 128>}, {pipeline_mode = #tpu.pipeline_mode<synchronous>, transform_indices = @transform_5, window_bounds = array<i64: 3, 128, 32>}, {pipeline_mode = #tpu.pipeline_mode<synchronous>, transform_indices = @transform_6, window_bounds = array<i64: 1, 32>}, {pipeline_mode = #tpu.pipeline_mode<synchronous>, transform_indices = @transform_7, window_bounds = array<i64: 3, 32, 128>}, {pipeline_mode = #tpu.pipeline_mode<synchronous>, transform_indices = @transform_8, window_bounds = array<i64: 1, 128>}, {pipeline_mode = #tpu.pipeline_mode<synchronous>, transform_indices = @transform_9, window_bounds = array<i64: 3, 128, 512>}, {pipeline_mode = #tpu.pipeline_mode<synchronous>, transform_indices = @transform_10, window_bounds = array<i64: 1, 512>}, {pipeline_mode = #tpu.pipeline_mode<synchronous>, transform_indices = @transform_11, window_bounds = array<i64: 3, 512, 96>}, {pipeline_mode = #tpu.pipeline_mode<synchronous>, transform_indices = @transform_12, window_bounds = array<i64: 3, 512, 96>}, {pipeline_mode = #tpu.pipeline_mode<synchronous>, transform_indices = @transform_13, window_bounds = array<i64: 1, 96>}, {transform_indices = @transform_14, window_bounds = array<i64: 1, 8, 96>}]} {
    %c0 = arith.constant 0 : index
    %c0_0 = arith.constant 0 : index
    %c0_1 = arith.constant 0 : index
    %0 = vector.load %arg1[%c0, %c0_0, %c0_1] : memref<1x16x48xf32, #tpu.memory_space<vmem>>, vector<1x16x48xf32>
    %1 = vector.shape_cast %0 : vector<1x16x48xf32> to vector<16x48xf32>
    %2 = arith.truncf %1 : vector<16x48xf32> to vector<16x48xbf16>
    %cst = arith.constant 0.000000e+00 : f32
    %3 = vector.broadcast %cst : f32 to vector<8x256xf32>
    %4 = tpu.iota {dimensions = array<i32: 0>} : vector<8x16xi32>
    %5 = tpu.iota {dimensions = array<i32: 1>} : vector<8x16xi32>
    %c2_i32 = arith.constant 2 : i32
    %6 = vector.broadcast %c2_i32 : i32 to vector<8x16xi32>
    %7 = arith.muli %6, %4 : vector<8x16xi32>
    %c-1_i32 = arith.constant -1 : i32
    %8 = vector.broadcast %c-1_i32 : i32 to vector<8x16xi32>
    %9 = arith.addi %7, %8 : vector<8x16xi32>
    %10 = arith.cmpi eq, %5, %9 : vector<8x16xi32>
    %cst_2 = arith.constant 1.000000e+00 : f32
    %cst_3 = arith.constant 0.000000e+00 : f32
    %11 = vector.broadcast %cst_2 : f32 to vector<8x16xf32>
    %12 = vector.broadcast %cst_3 : f32 to vector<8x16xf32>
    %13 = arith.select %10, %11, %12 : vector<8x16xi1>, vector<8x16xf32>
    %14 = arith.truncf %13 : vector<8x16xf32> to vector<8x16xbf16>
    %cst_4 = arith.constant dense<0.000000e+00> : vector<8x48xf32>
    %15 = tpu.matmul %14, %2, %cst_4 {dimension_numbers = #tpu.dot_dimension_numbers<[1], [0], [0], [1], [0, 0, 1, 1], [], []>} : vector<8x16xbf16>, vector<16x48xbf16>, vector<8x48xf32> -> vector<8x48xf32>
    %16 = arith.truncf %15 : vector<8x48xf32> to vector<8x48xbf16>
    %c0_5 = arith.constant 0 : index
    %c0_6 = arith.constant 0 : index
    %c0_7 = arith.constant 0 : index
    %17 = vector.load %arg2[%c0_5, %c0_6, %c0_7] : memref<3x48x256xbf16, #tpu.memory_space<vmem>>, vector<1x48x256xbf16>
    %18 = vector.shape_cast %17 : vector<1x48x256xbf16> to vector<48x256xbf16>
    %cst_8 = arith.constant dense<0.000000e+00> : vector<8x256xf32>
    %19 = tpu.matmul %16, %18, %cst_8 {dimension_numbers = #tpu.dot_dimension_numbers<[1], [0], [0], [1], [0, 0, 1, 1], [], []>} : vector<8x48xbf16>, vector<48x256xbf16>, vector<8x256xf32> -> vector<8x256xf32>
    %20 = arith.addf %3, %19 : vector<8x256xf32>
    %21 = tpu.iota {dimensions = array<i32: 0>} : vector<8x16xi32>
    %22 = tpu.iota {dimensions = array<i32: 1>} : vector<8x16xi32>
    %c2_i32_9 = arith.constant 2 : i32
    %23 = vector.broadcast %c2_i32_9 : i32 to vector<8x16xi32>
    %24 = arith.muli %23, %21 : vector<8x16xi32>
    %c0_i32 = arith.constant 0 : i32
    %25 = vector.broadcast %c0_i32 : i32 to vector<8x16xi32>
    %26 = arith.addi %24, %25 : vector<8x16xi32>
    %27 = arith.cmpi eq, %22, %26 : vector<8x16xi32>
    %cst_10 = arith.constant 1.000000e+00 : f32
    %cst_11 = arith.constant 0.000000e+00 : f32
    %28 = vector.broadcast %cst_10 : f32 to vector<8x16xf32>
    %29 = vector.broadcast %cst_11 : f32 to vector<8x16xf32>
    %30 = arith.select %27, %28, %29 : vector<8x16xi1>, vector<8x16xf32>
    %31 = arith.truncf %30 : vector<8x16xf32> to vector<8x16xbf16>
    %cst_12 = arith.constant dense<0.000000e+00> : vector<8x48xf32>
    %32 = tpu.matmul %31, %2, %cst_12 {dimension_numbers = #tpu.dot_dimension_numbers<[1], [0], [0], [1], [0, 0, 1, 1], [], []>} : vector<8x16xbf16>, vector<16x48xbf16>, vector<8x48xf32> -> vector<8x48xf32>
    %33 = arith.truncf %32 : vector<8x48xf32> to vector<8x48xbf16>
    %c1 = arith.constant 1 : index
    %c0_13 = arith.constant 0 : index
    %c0_14 = arith.constant 0 : index
    %34 = vector.load %arg2[%c1, %c0_13, %c0_14] : memref<3x48x256xbf16, #tpu.memory_space<vmem>>, vector<1x48x256xbf16>
    %35 = vector.shape_cast %34 : vector<1x48x256xbf16> to vector<48x256xbf16>
    %cst_15 = arith.constant dense<0.000000e+00> : vector<8x256xf32>
    %36 = tpu.matmul %33, %35, %cst_15 {dimension_numbers = #tpu.dot_dimension_numbers<[1], [0], [0], [1], [0, 0, 1, 1], [], []>} : vector<8x48xbf16>, vector<48x256xbf16>, vector<8x256xf32> -> vector<8x256xf32>
    %37 = arith.addf %20, %36 : vector<8x256xf32>
    %38 = tpu.iota {dimensions = array<i32: 0>} : vector<8x16xi32>
    %39 = tpu.iota {dimensions = array<i32: 1>} : vector<8x16xi32>
    %c2_i32_16 = arith.constant 2 : i32
    %40 = vector.broadcast %c2_i32_16 : i32 to vector<8x16xi32>
    %41 = arith.muli %40, %38 : vector<8x16xi32>
    %c1_i32 = arith.constant 1 : i32
    %42 = vector.broadcast %c1_i32 : i32 to vector<8x16xi32>
    %43 = arith.addi %41, %42 : vector<8x16xi32>
    %44 = arith.cmpi eq, %39, %43 : vector<8x16xi32>
    %cst_17 = arith.constant 1.000000e+00 : f32
    %cst_18 = arith.constant 0.000000e+00 : f32
    %45 = vector.broadcast %cst_17 : f32 to vector<8x16xf32>
    %46 = vector.broadcast %cst_18 : f32 to vector<8x16xf32>
    %47 = arith.select %44, %45, %46 : vector<8x16xi1>, vector<8x16xf32>
    %48 = arith.truncf %47 : vector<8x16xf32> to vector<8x16xbf16>
    %cst_19 = arith.constant dense<0.000000e+00> : vector<8x48xf32>
    %49 = tpu.matmul %48, %2, %cst_19 {dimension_numbers = #tpu.dot_dimension_numbers<[1], [0], [0], [1], [0, 0, 1, 1], [], []>} : vector<8x16xbf16>, vector<16x48xbf16>, vector<8x48xf32> -> vector<8x48xf32>
    %50 = arith.truncf %49 : vector<8x48xf32> to vector<8x48xbf16>
    %c2 = arith.constant 2 : index
    %c0_20 = arith.constant 0 : index
    %c0_21 = arith.constant 0 : index
    %51 = vector.load %arg2[%c2, %c0_20, %c0_21] : memref<3x48x256xbf16, #tpu.memory_space<vmem>>, vector<1x48x256xbf16>
    %52 = vector.shape_cast %51 : vector<1x48x256xbf16> to vector<48x256xbf16>
    %cst_22 = arith.constant dense<0.000000e+00> : vector<8x256xf32>
    %53 = tpu.matmul %50, %52, %cst_22 {dimension_numbers = #tpu.dot_dimension_numbers<[1], [0], [0], [1], [0, 0, 1, 1], [], []>} : vector<8x48xbf16>, vector<48x256xbf16>, vector<8x256xf32> -> vector<8x256xf32>
    %54 = arith.addf %37, %53 : vector<8x256xf32>
    %c0_23 = arith.constant 0 : index
    %c0_24 = arith.constant 0 : index
    %55 = vector.load %arg3[%c0_23, %c0_24] : memref<1x256xf32, #tpu.memory_space<vmem>>, vector<1x256xf32>
    %56 = vector.broadcast %55 : vector<1x256xf32> to vector<8x256xf32>
    %57 = arith.addf %54, %56 : vector<8x256xf32>
    %cst_25 = arith.constant 0.000000e+00 : f32
    %58 = vector.broadcast %cst_25 : f32 to vector<8x256xf32>
    %59 = arith.maximumf %57, %58 : vector<8x256xf32>
    %60 = arith.truncf %59 : vector<8x256xf32> to vector<8x256xbf16>
    %cst_26 = arith.constant 0.000000e+00 : f32
    %61 = vector.broadcast %cst_26 : f32 to vector<4x128xf32>
    %62 = tpu.iota {dimensions = array<i32: 0>} : vector<4x8xi32>
    %63 = tpu.iota {dimensions = array<i32: 1>} : vector<4x8xi32>
    %c2_i32_27 = arith.constant 2 : i32
    %64 = vector.broadcast %c2_i32_27 : i32 to vector<4x8xi32>
    %65 = arith.muli %64, %62 : vector<4x8xi32>
    %c-1_i32_28 = arith.constant -1 : i32
    %66 = vector.broadcast %c-1_i32_28 : i32 to vector<4x8xi32>
    %67 = arith.addi %65, %66 : vector<4x8xi32>
    %68 = arith.cmpi eq, %63, %67 : vector<4x8xi32>
    %cst_29 = arith.constant 1.000000e+00 : f32
    %cst_30 = arith.constant 0.000000e+00 : f32
    %69 = vector.broadcast %cst_29 : f32 to vector<4x8xf32>
    %70 = vector.broadcast %cst_30 : f32 to vector<4x8xf32>
    %71 = arith.select %68, %69, %70 : vector<4x8xi1>, vector<4x8xf32>
    %72 = arith.truncf %71 : vector<4x8xf32> to vector<4x8xbf16>
    %cst_31 = arith.constant dense<0.000000e+00> : vector<4x256xf32>
    %73 = tpu.matmul %72, %60, %cst_31 {dimension_numbers = #tpu.dot_dimension_numbers<[1], [0], [0], [1], [0, 0, 1, 1], [], []>} : vector<4x8xbf16>, vector<8x256xbf16>, vector<4x256xf32> -> vector<4x256xf32>
    %74 = arith.truncf %73 : vector<4x256xf32> to vector<4x256xbf16>
    %c0_32 = arith.constant 0 : index
    %c0_33 = arith.constant 0 : index
    %c0_34 = arith.constant 0 : index
    %75 = vector.load %arg4[%c0_32, %c0_33, %c0_34] : memref<3x256x128xbf16, #tpu.memory_space<vmem>>, vector<1x256x128xbf16>
    %76 = vector.shape_cast %75 : vector<1x256x128xbf16> to vector<256x128xbf16>
    %cst_35 = arith.constant dense<0.000000e+00> : vector<4x128xf32>
    %77 = tpu.matmul %74, %76, %cst_35 {dimension_numbers = #tpu.dot_dimension_numbers<[1], [0], [0], [1], [0, 0, 1, 1], [], []>} : vector<4x256xbf16>, vector<256x128xbf16>, vector<4x128xf32> -> vector<4x128xf32>
    %78 = arith.addf %61, %77 : vector<4x128xf32>
    %79 = tpu.iota {dimensions = array<i32: 0>} : vector<4x8xi32>
    %80 = tpu.iota {dimensions = array<i32: 1>} : vector<4x8xi32>
    %c2_i32_36 = arith.constant 2 : i32
    %81 = vector.broadcast %c2_i32_36 : i32 to vector<4x8xi32>
    %82 = arith.muli %81, %79 : vector<4x8xi32>
    %c0_i32_37 = arith.constant 0 : i32
    %83 = vector.broadcast %c0_i32_37 : i32 to vector<4x8xi32>
    %84 = arith.addi %82, %83 : vector<4x8xi32>
    %85 = arith.cmpi eq, %80, %84 : vector<4x8xi32>
    %cst_38 = arith.constant 1.000000e+00 : f32
    %cst_39 = arith.constant 0.000000e+00 : f32
    %86 = vector.broadcast %cst_38 : f32 to vector<4x8xf32>
    %87 = vector.broadcast %cst_39 : f32 to vector<4x8xf32>
    %88 = arith.select %85, %86, %87 : vector<4x8xi1>, vector<4x8xf32>
    %89 = arith.truncf %88 : vector<4x8xf32> to vector<4x8xbf16>
    %cst_40 = arith.constant dense<0.000000e+00> : vector<4x256xf32>
    %90 = tpu.matmul %89, %60, %cst_40 {dimension_numbers = #tpu.dot_dimension_numbers<[1], [0], [0], [1], [0, 0, 1, 1], [], []>} : vector<4x8xbf16>, vector<8x256xbf16>, vector<4x256xf32> -> vector<4x256xf32>
    %91 = arith.truncf %90 : vector<4x256xf32> to vector<4x256xbf16>
    %c1_41 = arith.constant 1 : index
    %c0_42 = arith.constant 0 : index
    %c0_43 = arith.constant 0 : index
    %92 = vector.load %arg4[%c1_41, %c0_42, %c0_43] : memref<3x256x128xbf16, #tpu.memory_space<vmem>>, vector<1x256x128xbf16>
    %93 = vector.shape_cast %92 : vector<1x256x128xbf16> to vector<256x128xbf16>
    %cst_44 = arith.constant dense<0.000000e+00> : vector<4x128xf32>
    %94 = tpu.matmul %91, %93, %cst_44 {dimension_numbers = #tpu.dot_dimension_numbers<[1], [0], [0], [1], [0, 0, 1, 1], [], []>} : vector<4x256xbf16>, vector<256x128xbf16>, vector<4x128xf32> -> vector<4x128xf32>
    %95 = arith.addf %78, %94 : vector<4x128xf32>
    %96 = tpu.iota {dimensions = array<i32: 0>} : vector<4x8xi32>
    %97 = tpu.iota {dimensions = array<i32: 1>} : vector<4x8xi32>
    %c2_i32_45 = arith.constant 2 : i32
    %98 = vector.broadcast %c2_i32_45 : i32 to vector<4x8xi32>
    %99 = arith.muli %98, %96 : vector<4x8xi32>
    %c1_i32_46 = arith.constant 1 : i32
    %100 = vector.broadcast %c1_i32_46 : i32 to vector<4x8xi32>
    %101 = arith.addi %99, %100 : vector<4x8xi32>
    %102 = arith.cmpi eq, %97, %101 : vector<4x8xi32>
    %cst_47 = arith.constant 1.000000e+00 : f32
    %cst_48 = arith.constant 0.000000e+00 : f32
    %103 = vector.broadcast %cst_47 : f32 to vector<4x8xf32>
    %104 = vector.broadcast %cst_48 : f32 to vector<4x8xf32>
    %105 = arith.select %102, %103, %104 : vector<4x8xi1>, vector<4x8xf32>
    %106 = arith.truncf %105 : vector<4x8xf32> to vector<4x8xbf16>
    %cst_49 = arith.constant dense<0.000000e+00> : vector<4x256xf32>
    %107 = tpu.matmul %106, %60, %cst_49 {dimension_numbers = #tpu.dot_dimension_numbers<[1], [0], [0], [1], [0, 0, 1, 1], [], []>} : vector<4x8xbf16>, vector<8x256xbf16>, vector<4x256xf32> -> vector<4x256xf32>
    %108 = arith.truncf %107 : vector<4x256xf32> to vector<4x256xbf16>
    %c2_50 = arith.constant 2 : index
    %c0_51 = arith.constant 0 : index
    %c0_52 = arith.constant 0 : index
    %109 = vector.load %arg4[%c2_50, %c0_51, %c0_52] : memref<3x256x128xbf16, #tpu.memory_space<vmem>>, vector<1x256x128xbf16>
    %110 = vector.shape_cast %109 : vector<1x256x128xbf16> to vector<256x128xbf16>
    %cst_53 = arith.constant dense<0.000000e+00> : vector<4x128xf32>
    %111 = tpu.matmul %108, %110, %cst_53 {dimension_numbers = #tpu.dot_dimension_numbers<[1], [0], [0], [1], [0, 0, 1, 1], [], []>} : vector<4x256xbf16>, vector<256x128xbf16>, vector<4x128xf32> -> vector<4x128xf32>
    %112 = arith.addf %95, %111 : vector<4x128xf32>
    %c0_54 = arith.constant 0 : index
    %c0_55 = arith.constant 0 : index
    %113 = vector.load %arg5[%c0_54, %c0_55] : memref<1x128xf32, #tpu.memory_space<vmem>>, vector<1x128xf32>
    %114 = vector.broadcast %113 : vector<1x128xf32> to vector<4x128xf32>
    %115 = arith.addf %112, %114 : vector<4x128xf32>
    %cst_56 = arith.constant 0.000000e+00 : f32
    %116 = vector.broadcast %cst_56 : f32 to vector<4x128xf32>
    %117 = arith.maximumf %115, %116 : vector<4x128xf32>
    %118 = arith.truncf %117 : vector<4x128xf32> to vector<4x128xbf16>
    %cst_57 = arith.constant 0.000000e+00 : f32
    %119 = vector.broadcast %cst_57 : f32 to vector<4x32xf32>
    %120 = tpu.iota {dimensions = array<i32: 0>} : vector<4x4xi32>
    %121 = tpu.iota {dimensions = array<i32: 1>} : vector<4x4xi32>
    %c1_i32_58 = arith.constant 1 : i32
    %122 = vector.broadcast %c1_i32_58 : i32 to vector<4x4xi32>
    %123 = arith.muli %122, %120 : vector<4x4xi32>
    %c-1_i32_59 = arith.constant -1 : i32
    %124 = vector.broadcast %c-1_i32_59 : i32 to vector<4x4xi32>
    %125 = arith.addi %123, %124 : vector<4x4xi32>
    %126 = arith.cmpi eq, %121, %125 : vector<4x4xi32>
    %cst_60 = arith.constant 1.000000e+00 : f32
    %cst_61 = arith.constant 0.000000e+00 : f32
    %127 = vector.broadcast %cst_60 : f32 to vector<4x4xf32>
    %128 = vector.broadcast %cst_61 : f32 to vector<4x4xf32>
    %129 = arith.select %126, %127, %128 : vector<4x4xi1>, vector<4x4xf32>
    %130 = arith.truncf %129 : vector<4x4xf32> to vector<4x4xbf16>
    %cst_62 = arith.constant dense<0.000000e+00> : vector<4x128xf32>
    %131 = tpu.matmul %130, %118, %cst_62 {dimension_numbers = #tpu.dot_dimension_numbers<[1], [0], [0], [1], [0, 0, 1, 1], [], []>} : vector<4x4xbf16>, vector<4x128xbf16>, vector<4x128xf32> -> vector<4x128xf32>
    %132 = arith.truncf %131 : vector<4x128xf32> to vector<4x128xbf16>
    %c0_63 = arith.constant 0 : index
    %c0_64 = arith.constant 0 : index
    %c0_65 = arith.constant 0 : index
    %133 = vector.load %arg6[%c0_63, %c0_64, %c0_65] : memref<3x128x32xbf16, #tpu.memory_space<vmem>>, vector<1x128x32xbf16>
    %134 = vector.shape_cast %133 : vector<1x128x32xbf16> to vector<128x32xbf16>
    %cst_66 = arith.constant dense<0.000000e+00> : vector<4x32xf32>
    %135 = tpu.matmul %132, %134, %cst_66 {dimension_numbers = #tpu.dot_dimension_numbers<[1], [0], [0], [1], [0, 0, 1, 1], [], []>} : vector<4x128xbf16>, vector<128x32xbf16>, vector<4x32xf32> -> vector<4x32xf32>
    %136 = arith.addf %119, %135 : vector<4x32xf32>
    %c1_67 = arith.constant 1 : index
    %c0_68 = arith.constant 0 : index
    %c0_69 = arith.constant 0 : index
    %137 = vector.load %arg6[%c1_67, %c0_68, %c0_69] : memref<3x128x32xbf16, #tpu.memory_space<vmem>>, vector<1x128x32xbf16>
    %138 = vector.shape_cast %137 : vector<1x128x32xbf16> to vector<128x32xbf16>
    %cst_70 = arith.constant dense<0.000000e+00> : vector<4x32xf32>
    %139 = tpu.matmul %118, %138, %cst_70 {dimension_numbers = #tpu.dot_dimension_numbers<[1], [0], [0], [1], [0, 0, 1, 1], [], []>} : vector<4x128xbf16>, vector<128x32xbf16>, vector<4x32xf32> -> vector<4x32xf32>
    %140 = arith.addf %136, %139 : vector<4x32xf32>
    %141 = tpu.iota {dimensions = array<i32: 0>} : vector<4x4xi32>
    %142 = tpu.iota {dimensions = array<i32: 1>} : vector<4x4xi32>
    %c1_i32_71 = arith.constant 1 : i32
    %143 = vector.broadcast %c1_i32_71 : i32 to vector<4x4xi32>
    %144 = arith.muli %143, %141 : vector<4x4xi32>
    %c1_i32_72 = arith.constant 1 : i32
    %145 = vector.broadcast %c1_i32_72 : i32 to vector<4x4xi32>
    %146 = arith.addi %144, %145 : vector<4x4xi32>
    %147 = arith.cmpi eq, %142, %146 : vector<4x4xi32>
    %cst_73 = arith.constant 1.000000e+00 : f32
    %cst_74 = arith.constant 0.000000e+00 : f32
    %148 = vector.broadcast %cst_73 : f32 to vector<4x4xf32>
    %149 = vector.broadcast %cst_74 : f32 to vector<4x4xf32>
    %150 = arith.select %147, %148, %149 : vector<4x4xi1>, vector<4x4xf32>
    %151 = arith.truncf %150 : vector<4x4xf32> to vector<4x4xbf16>
    %cst_75 = arith.constant dense<0.000000e+00> : vector<4x128xf32>
    %152 = tpu.matmul %151, %118, %cst_75 {dimension_numbers = #tpu.dot_dimension_numbers<[1], [0], [0], [1], [0, 0, 1, 1], [], []>} : vector<4x4xbf16>, vector<4x128xbf16>, vector<4x128xf32> -> vector<4x128xf32>
    %153 = arith.truncf %152 : vector<4x128xf32> to vector<4x128xbf16>
    %c2_76 = arith.constant 2 : index
    %c0_77 = arith.constant 0 : index
    %c0_78 = arith.constant 0 : index
    %154 = vector.load %arg6[%c2_76, %c0_77, %c0_78] : memref<3x128x32xbf16, #tpu.memory_space<vmem>>, vector<1x128x32xbf16>
    %155 = vector.shape_cast %154 : vector<1x128x32xbf16> to vector<128x32xbf16>
    %cst_79 = arith.constant dense<0.000000e+00> : vector<4x32xf32>
    %156 = tpu.matmul %153, %155, %cst_79 {dimension_numbers = #tpu.dot_dimension_numbers<[1], [0], [0], [1], [0, 0, 1, 1], [], []>} : vector<4x128xbf16>, vector<128x32xbf16>, vector<4x32xf32> -> vector<4x32xf32>
    %157 = arith.addf %140, %156 : vector<4x32xf32>
    %c0_80 = arith.constant 0 : index
    %c0_81 = arith.constant 0 : index
    %158 = vector.load %arg7[%c0_80, %c0_81] : memref<1x32xf32, #tpu.memory_space<vmem>>, vector<1x32xf32>
    %159 = vector.broadcast %158 : vector<1x32xf32> to vector<4x32xf32>
    %160 = arith.addf %157, %159 : vector<4x32xf32>
    %161 = arith.truncf %160 : vector<4x32xf32> to vector<4x32xbf16>
    %cst_82 = arith.constant 0.000000e+00 : f32
    %162 = vector.broadcast %cst_82 : f32 to vector<4x128xf32>
    %163 = tpu.iota {dimensions = array<i32: 0>} : vector<4x4xi32>
    %164 = tpu.iota {dimensions = array<i32: 1>} : vector<4x4xi32>
    %c1_i32_83 = arith.constant 1 : i32
    %165 = vector.broadcast %c1_i32_83 : i32 to vector<4x4xi32>
    %166 = arith.muli %165, %163 : vector<4x4xi32>
    %c-1_i32_84 = arith.constant -1 : i32
    %167 = vector.broadcast %c-1_i32_84 : i32 to vector<4x4xi32>
    %168 = arith.addi %166, %167 : vector<4x4xi32>
    %169 = arith.cmpi eq, %164, %168 : vector<4x4xi32>
    %cst_85 = arith.constant 1.000000e+00 : f32
    %cst_86 = arith.constant 0.000000e+00 : f32
    %170 = vector.broadcast %cst_85 : f32 to vector<4x4xf32>
    %171 = vector.broadcast %cst_86 : f32 to vector<4x4xf32>
    %172 = arith.select %169, %170, %171 : vector<4x4xi1>, vector<4x4xf32>
    %173 = arith.truncf %172 : vector<4x4xf32> to vector<4x4xbf16>
    %cst_87 = arith.constant dense<0.000000e+00> : vector<4x32xf32>
    %174 = tpu.matmul %173, %161, %cst_87 {dimension_numbers = #tpu.dot_dimension_numbers<[1], [0], [0], [1], [0, 0, 1, 1], [], []>} : vector<4x4xbf16>, vector<4x32xbf16>, vector<4x32xf32> -> vector<4x32xf32>
    %175 = arith.truncf %174 : vector<4x32xf32> to vector<4x32xbf16>
    %c0_88 = arith.constant 0 : index
    %c0_89 = arith.constant 0 : index
    %c0_90 = arith.constant 0 : index
    %176 = vector.load %arg8[%c0_88, %c0_89, %c0_90] : memref<3x32x128xbf16, #tpu.memory_space<vmem>>, vector<1x32x128xbf16>
    %177 = vector.shape_cast %176 : vector<1x32x128xbf16> to vector<32x128xbf16>
    %cst_91 = arith.constant dense<0.000000e+00> : vector<4x128xf32>
    %178 = tpu.matmul %175, %177, %cst_91 {dimension_numbers = #tpu.dot_dimension_numbers<[1], [0], [0], [1], [0, 0, 1, 1], [], []>} : vector<4x32xbf16>, vector<32x128xbf16>, vector<4x128xf32> -> vector<4x128xf32>
    %179 = arith.addf %162, %178 : vector<4x128xf32>
    %c1_92 = arith.constant 1 : index
    %c0_93 = arith.constant 0 : index
    %c0_94 = arith.constant 0 : index
    %180 = vector.load %arg8[%c1_92, %c0_93, %c0_94] : memref<3x32x128xbf16, #tpu.memory_space<vmem>>, vector<1x32x128xbf16>
    %181 = vector.shape_cast %180 : vector<1x32x128xbf16> to vector<32x128xbf16>
    %cst_95 = arith.constant dense<0.000000e+00> : vector<4x128xf32>
    %182 = tpu.matmul %161, %181, %cst_95 {dimension_numbers = #tpu.dot_dimension_numbers<[1], [0], [0], [1], [0, 0, 1, 1], [], []>} : vector<4x32xbf16>, vector<32x128xbf16>, vector<4x128xf32> -> vector<4x128xf32>
    %183 = arith.addf %179, %182 : vector<4x128xf32>
    %184 = tpu.iota {dimensions = array<i32: 0>} : vector<4x4xi32>
    %185 = tpu.iota {dimensions = array<i32: 1>} : vector<4x4xi32>
    %c1_i32_96 = arith.constant 1 : i32
    %186 = vector.broadcast %c1_i32_96 : i32 to vector<4x4xi32>
    %187 = arith.muli %186, %184 : vector<4x4xi32>
    %c1_i32_97 = arith.constant 1 : i32
    %188 = vector.broadcast %c1_i32_97 : i32 to vector<4x4xi32>
    %189 = arith.addi %187, %188 : vector<4x4xi32>
    %190 = arith.cmpi eq, %185, %189 : vector<4x4xi32>
    %cst_98 = arith.constant 1.000000e+00 : f32
    %cst_99 = arith.constant 0.000000e+00 : f32
    %191 = vector.broadcast %cst_98 : f32 to vector<4x4xf32>
    %192 = vector.broadcast %cst_99 : f32 to vector<4x4xf32>
    %193 = arith.select %190, %191, %192 : vector<4x4xi1>, vector<4x4xf32>
    %194 = arith.truncf %193 : vector<4x4xf32> to vector<4x4xbf16>
    %cst_100 = arith.constant dense<0.000000e+00> : vector<4x32xf32>
    %195 = tpu.matmul %194, %161, %cst_100 {dimension_numbers = #tpu.dot_dimension_numbers<[1], [0], [0], [1], [0, 0, 1, 1], [], []>} : vector<4x4xbf16>, vector<4x32xbf16>, vector<4x32xf32> -> vector<4x32xf32>
    %196 = arith.truncf %195 : vector<4x32xf32> to vector<4x32xbf16>
    %c2_101 = arith.constant 2 : index
    %c0_102 = arith.constant 0 : index
    %c0_103 = arith.constant 0 : index
    %197 = vector.load %arg8[%c2_101, %c0_102, %c0_103] : memref<3x32x128xbf16, #tpu.memory_space<vmem>>, vector<1x32x128xbf16>
    %198 = vector.shape_cast %197 : vector<1x32x128xbf16> to vector<32x128xbf16>
    %cst_104 = arith.constant dense<0.000000e+00> : vector<4x128xf32>
    %199 = tpu.matmul %196, %198, %cst_104 {dimension_numbers = #tpu.dot_dimension_numbers<[1], [0], [0], [1], [0, 0, 1, 1], [], []>} : vector<4x32xbf16>, vector<32x128xbf16>, vector<4x128xf32> -> vector<4x128xf32>
    %200 = arith.addf %183, %199 : vector<4x128xf32>
    %c0_105 = arith.constant 0 : index
    %c0_106 = arith.constant 0 : index
    %201 = vector.load %arg9[%c0_105, %c0_106] : memref<1x128xf32, #tpu.memory_space<vmem>>, vector<1x128xf32>
    %202 = vector.broadcast %201 : vector<1x128xf32> to vector<4x128xf32>
    %203 = arith.addf %200, %202 : vector<4x128xf32>
    %cst_107 = arith.constant 0.000000e+00 : f32
    %204 = vector.broadcast %cst_107 : f32 to vector<4x128xf32>
    %205 = arith.maximumf %203, %204 : vector<4x128xf32>
    %206 = arith.truncf %205 : vector<4x128xf32> to vector<4x128xbf16>
    %cst_108 = arith.constant 0.000000e+00 : f32
    %207 = vector.broadcast %cst_108 : f32 to vector<4x512xf32>
    %208 = tpu.iota {dimensions = array<i32: 0>} : vector<4x4xi32>
    %209 = tpu.iota {dimensions = array<i32: 1>} : vector<4x4xi32>
    %c1_i32_109 = arith.constant 1 : i32
    %210 = vector.broadcast %c1_i32_109 : i32 to vector<4x4xi32>
    %211 = arith.muli %210, %208 : vector<4x4xi32>
    %c-1_i32_110 = arith.constant -1 : i32
    %212 = vector.broadcast %c-1_i32_110 : i32 to vector<4x4xi32>
    %213 = arith.addi %211, %212 : vector<4x4xi32>
    %214 = arith.cmpi eq, %209, %213 : vector<4x4xi32>
    %cst_111 = arith.constant 1.000000e+00 : f32
    %cst_112 = arith.constant 0.000000e+00 : f32
    %215 = vector.broadcast %cst_111 : f32 to vector<4x4xf32>
    %216 = vector.broadcast %cst_112 : f32 to vector<4x4xf32>
    %217 = arith.select %214, %215, %216 : vector<4x4xi1>, vector<4x4xf32>
    %218 = arith.truncf %217 : vector<4x4xf32> to vector<4x4xbf16>
    %cst_113 = arith.constant dense<0.000000e+00> : vector<4x128xf32>
    %219 = tpu.matmul %218, %206, %cst_113 {dimension_numbers = #tpu.dot_dimension_numbers<[1], [0], [0], [1], [0, 0, 1, 1], [], []>} : vector<4x4xbf16>, vector<4x128xbf16>, vector<4x128xf32> -> vector<4x128xf32>
    %220 = arith.truncf %219 : vector<4x128xf32> to vector<4x128xbf16>
    %c0_114 = arith.constant 0 : index
    %c0_115 = arith.constant 0 : index
    %c0_116 = arith.constant 0 : index
    %221 = vector.load %arg10[%c0_114, %c0_115, %c0_116] : memref<3x128x512xbf16, #tpu.memory_space<vmem>>, vector<1x128x512xbf16>
    %222 = vector.shape_cast %221 : vector<1x128x512xbf16> to vector<128x512xbf16>
    %cst_117 = arith.constant dense<0.000000e+00> : vector<4x512xf32>
    %223 = tpu.matmul %220, %222, %cst_117 {dimension_numbers = #tpu.dot_dimension_numbers<[1], [0], [0], [1], [0, 0, 1, 1], [], []>} : vector<4x128xbf16>, vector<128x512xbf16>, vector<4x512xf32> -> vector<4x512xf32>
    %224 = arith.addf %207, %223 : vector<4x512xf32>
    %c1_118 = arith.constant 1 : index
    %c0_119 = arith.constant 0 : index
    %c0_120 = arith.constant 0 : index
    %225 = vector.load %arg10[%c1_118, %c0_119, %c0_120] : memref<3x128x512xbf16, #tpu.memory_space<vmem>>, vector<1x128x512xbf16>
    %226 = vector.shape_cast %225 : vector<1x128x512xbf16> to vector<128x512xbf16>
    %cst_121 = arith.constant dense<0.000000e+00> : vector<4x512xf32>
    %227 = tpu.matmul %206, %226, %cst_121 {dimension_numbers = #tpu.dot_dimension_numbers<[1], [0], [0], [1], [0, 0, 1, 1], [], []>} : vector<4x128xbf16>, vector<128x512xbf16>, vector<4x512xf32> -> vector<4x512xf32>
    %228 = arith.addf %224, %227 : vector<4x512xf32>
    %229 = tpu.iota {dimensions = array<i32: 0>} : vector<4x4xi32>
    %230 = tpu.iota {dimensions = array<i32: 1>} : vector<4x4xi32>
    %c1_i32_122 = arith.constant 1 : i32
    %231 = vector.broadcast %c1_i32_122 : i32 to vector<4x4xi32>
    %232 = arith.muli %231, %229 : vector<4x4xi32>
    %c1_i32_123 = arith.constant 1 : i32
    %233 = vector.broadcast %c1_i32_123 : i32 to vector<4x4xi32>
    %234 = arith.addi %232, %233 : vector<4x4xi32>
    %235 = arith.cmpi eq, %230, %234 : vector<4x4xi32>
    %cst_124 = arith.constant 1.000000e+00 : f32
    %cst_125 = arith.constant 0.000000e+00 : f32
    %236 = vector.broadcast %cst_124 : f32 to vector<4x4xf32>
    %237 = vector.broadcast %cst_125 : f32 to vector<4x4xf32>
    %238 = arith.select %235, %236, %237 : vector<4x4xi1>, vector<4x4xf32>
    %239 = arith.truncf %238 : vector<4x4xf32> to vector<4x4xbf16>
    %cst_126 = arith.constant dense<0.000000e+00> : vector<4x128xf32>
    %240 = tpu.matmul %239, %206, %cst_126 {dimension_numbers = #tpu.dot_dimension_numbers<[1], [0], [0], [1], [0, 0, 1, 1], [], []>} : vector<4x4xbf16>, vector<4x128xbf16>, vector<4x128xf32> -> vector<4x128xf32>
    %241 = arith.truncf %240 : vector<4x128xf32> to vector<4x128xbf16>
    %c2_127 = arith.constant 2 : index
    %c0_128 = arith.constant 0 : index
    %c0_129 = arith.constant 0 : index
    %242 = vector.load %arg10[%c2_127, %c0_128, %c0_129] : memref<3x128x512xbf16, #tpu.memory_space<vmem>>, vector<1x128x512xbf16>
    %243 = vector.shape_cast %242 : vector<1x128x512xbf16> to vector<128x512xbf16>
    %cst_130 = arith.constant dense<0.000000e+00> : vector<4x512xf32>
    %244 = tpu.matmul %241, %243, %cst_130 {dimension_numbers = #tpu.dot_dimension_numbers<[1], [0], [0], [1], [0, 0, 1, 1], [], []>} : vector<4x128xbf16>, vector<128x512xbf16>, vector<4x512xf32> -> vector<4x512xf32>
    %245 = arith.addf %228, %244 : vector<4x512xf32>
    %c0_131 = arith.constant 0 : index
    %c0_132 = arith.constant 0 : index
    %246 = vector.load %arg11[%c0_131, %c0_132] : memref<1x512xf32, #tpu.memory_space<vmem>>, vector<1x512xf32>
    %247 = vector.broadcast %246 : vector<1x512xf32> to vector<4x512xf32>
    %248 = arith.addf %245, %247 : vector<4x512xf32>
    %cst_133 = arith.constant 0.000000e+00 : f32
    %249 = vector.broadcast %cst_133 : f32 to vector<4x512xf32>
    %250 = arith.maximumf %248, %249 : vector<4x512xf32>
    %251 = arith.truncf %250 : vector<4x512xf32> to vector<4x512xbf16>
    %cst_134 = arith.constant 0.000000e+00 : f32
    %252 = vector.broadcast %cst_134 : f32 to vector<8x96xf32>
    %253 = tpu.iota {dimensions = array<i32: 0>} : vector<8x4xi32>
    %254 = tpu.iota {dimensions = array<i32: 1>} : vector<8x4xi32>
    %c-1_i32_135 = arith.constant -1 : i32
    %255 = vector.broadcast %c-1_i32_135 : i32 to vector<8x4xi32>
    %256 = arith.addi %253, %255 : vector<8x4xi32>
    %c2_i32_136 = arith.constant 2 : i32
    %257 = vector.broadcast %c2_i32_136 : i32 to vector<8x4xi32>
    %258 = arith.muli %257, %254 : vector<8x4xi32>
    %c0_i32_137 = arith.constant 0 : i32
    %259 = vector.broadcast %c0_i32_137 : i32 to vector<8x4xi32>
    %260 = arith.addi %258, %259 : vector<8x4xi32>
    %261 = arith.cmpi eq, %256, %260 : vector<8x4xi32>
    %cst_138 = arith.constant 1.000000e+00 : f32
    %cst_139 = arith.constant 0.000000e+00 : f32
    %262 = vector.broadcast %cst_138 : f32 to vector<8x4xf32>
    %263 = vector.broadcast %cst_139 : f32 to vector<8x4xf32>
    %264 = arith.select %261, %262, %263 : vector<8x4xi1>, vector<8x4xf32>
    %265 = arith.truncf %264 : vector<8x4xf32> to vector<8x4xbf16>
    %cst_140 = arith.constant dense<0.000000e+00> : vector<8x512xf32>
    %266 = tpu.matmul %265, %251, %cst_140 {dimension_numbers = #tpu.dot_dimension_numbers<[1], [0], [0], [1], [0, 0, 1, 1], [], []>} : vector<8x4xbf16>, vector<4x512xbf16>, vector<8x512xf32> -> vector<8x512xf32>
    %267 = arith.truncf %266 : vector<8x512xf32> to vector<8x512xbf16>
    %268 = tpu.iota {dimensions = array<i32: 0>} : vector<8x4xi32>
    %269 = tpu.iota {dimensions = array<i32: 1>} : vector<8x4xi32>
    %c-1_i32_141 = arith.constant -1 : i32
    %270 = vector.broadcast %c-1_i32_141 : i32 to vector<8x4xi32>
    %271 = arith.addi %268, %270 : vector<8x4xi32>
    %c2_i32_142 = arith.constant 2 : i32
    %272 = vector.broadcast %c2_i32_142 : i32 to vector<8x4xi32>
    %273 = arith.muli %272, %269 : vector<8x4xi32>
    %c1_i32_143 = arith.constant 1 : i32
    %274 = vector.broadcast %c1_i32_143 : i32 to vector<8x4xi32>
    %275 = arith.addi %273, %274 : vector<8x4xi32>
    %276 = arith.cmpi eq, %271, %275 : vector<8x4xi32>
    %cst_144 = arith.constant 1.000000e+00 : f32
    %cst_145 = arith.constant 0.000000e+00 : f32
    %277 = vector.broadcast %cst_144 : f32 to vector<8x4xf32>
    %278 = vector.broadcast %cst_145 : f32 to vector<8x4xf32>
    %279 = arith.select %276, %277, %278 : vector<8x4xi1>, vector<8x4xf32>
    %280 = arith.truncf %279 : vector<8x4xf32> to vector<8x4xbf16>
    %cst_146 = arith.constant dense<0.000000e+00> : vector<8x512xf32>
    %281 = tpu.matmul %280, %251, %cst_146 {dimension_numbers = #tpu.dot_dimension_numbers<[1], [0], [0], [1], [0, 0, 1, 1], [], []>} : vector<8x4xbf16>, vector<4x512xbf16>, vector<8x512xf32> -> vector<8x512xf32>
    %282 = arith.truncf %281 : vector<8x512xf32> to vector<8x512xbf16>
    %c0_147 = arith.constant 0 : index
    %c0_148 = arith.constant 0 : index
    %c0_149 = arith.constant 0 : index
    %283 = vector.load %arg12[%c0_147, %c0_148, %c0_149] : memref<3x512x96xbf16, #tpu.memory_space<vmem>>, vector<1x512x96xbf16>
    %284 = vector.shape_cast %283 : vector<1x512x96xbf16> to vector<512x96xbf16>
    %cst_150 = arith.constant dense<0.000000e+00> : vector<8x96xf32>
    %285 = tpu.matmul %267, %284, %cst_150 {dimension_numbers = #tpu.dot_dimension_numbers<[1], [0], [0], [1], [0, 0, 1, 1], [], []>} : vector<8x512xbf16>, vector<512x96xbf16>, vector<8x96xf32> -> vector<8x96xf32>
    %286 = arith.addf %252, %285 : vector<8x96xf32>
    %c0_151 = arith.constant 0 : index
    %c0_152 = arith.constant 0 : index
    %c0_153 = arith.constant 0 : index
    %287 = vector.load %arg13[%c0_151, %c0_152, %c0_153] : memref<3x512x96xbf16, #tpu.memory_space<vmem>>, vector<1x512x96xbf16>
    %288 = vector.shape_cast %287 : vector<1x512x96xbf16> to vector<512x96xbf16>
    %cst_154 = arith.constant dense<0.000000e+00> : vector<8x96xf32>
    %289 = tpu.matmul %282, %288, %cst_154 {dimension_numbers = #tpu.dot_dimension_numbers<[1], [0], [0], [1], [0, 0, 1, 1], [], []>} : vector<8x512xbf16>, vector<512x96xbf16>, vector<8x96xf32> -> vector<8x96xf32>
    %290 = arith.addf %286, %289 : vector<8x96xf32>
    %291 = tpu.iota {dimensions = array<i32: 0>} : vector<8x4xi32>
    %292 = tpu.iota {dimensions = array<i32: 1>} : vector<8x4xi32>
    %c0_i32_155 = arith.constant 0 : i32
    %293 = vector.broadcast %c0_i32_155 : i32 to vector<8x4xi32>
    %294 = arith.addi %291, %293 : vector<8x4xi32>
    %c2_i32_156 = arith.constant 2 : i32
    %295 = vector.broadcast %c2_i32_156 : i32 to vector<8x4xi32>
    %296 = arith.muli %295, %292 : vector<8x4xi32>
    %c0_i32_157 = arith.constant 0 : i32
    %297 = vector.broadcast %c0_i32_157 : i32 to vector<8x4xi32>
    %298 = arith.addi %296, %297 : vector<8x4xi32>
    %299 = arith.cmpi eq, %294, %298 : vector<8x4xi32>
    %cst_158 = arith.constant 1.000000e+00 : f32
    %cst_159 = arith.constant 0.000000e+00 : f32
    %300 = vector.broadcast %cst_158 : f32 to vector<8x4xf32>
    %301 = vector.broadcast %cst_159 : f32 to vector<8x4xf32>
    %302 = arith.select %299, %300, %301 : vector<8x4xi1>, vector<8x4xf32>
    %303 = arith.truncf %302 : vector<8x4xf32> to vector<8x4xbf16>
    %cst_160 = arith.constant dense<0.000000e+00> : vector<8x512xf32>
    %304 = tpu.matmul %303, %251, %cst_160 {dimension_numbers = #tpu.dot_dimension_numbers<[1], [0], [0], [1], [0, 0, 1, 1], [], []>} : vector<8x4xbf16>, vector<4x512xbf16>, vector<8x512xf32> -> vector<8x512xf32>
    %305 = arith.truncf %304 : vector<8x512xf32> to vector<8x512xbf16>
    %306 = tpu.iota {dimensions = array<i32: 0>} : vector<8x4xi32>
    %307 = tpu.iota {dimensions = array<i32: 1>} : vector<8x4xi32>
    %c0_i32_161 = arith.constant 0 : i32
    %308 = vector.broadcast %c0_i32_161 : i32 to vector<8x4xi32>
    %309 = arith.addi %306, %308 : vector<8x4xi32>
    %c2_i32_162 = arith.constant 2 : i32
    %310 = vector.broadcast %c2_i32_162 : i32 to vector<8x4xi32>
    %311 = arith.muli %310, %307 : vector<8x4xi32>
    %c1_i32_163 = arith.constant 1 : i32
    %312 = vector.broadcast %c1_i32_163 : i32 to vector<8x4xi32>
    %313 = arith.addi %311, %312 : vector<8x4xi32>
    %314 = arith.cmpi eq, %309, %313 : vector<8x4xi32>
    %cst_164 = arith.constant 1.000000e+00 : f32
    %cst_165 = arith.constant 0.000000e+00 : f32
    %315 = vector.broadcast %cst_164 : f32 to vector<8x4xf32>
    %316 = vector.broadcast %cst_165 : f32 to vector<8x4xf32>
    %317 = arith.select %314, %315, %316 : vector<8x4xi1>, vector<8x4xf32>
    %318 = arith.truncf %317 : vector<8x4xf32> to vector<8x4xbf16>
    %cst_166 = arith.constant dense<0.000000e+00> : vector<8x512xf32>
    %319 = tpu.matmul %318, %251, %cst_166 {dimension_numbers = #tpu.dot_dimension_numbers<[1], [0], [0], [1], [0, 0, 1, 1], [], []>} : vector<8x4xbf16>, vector<4x512xbf16>, vector<8x512xf32> -> vector<8x512xf32>
    %320 = arith.truncf %319 : vector<8x512xf32> to vector<8x512xbf16>
    %c1_167 = arith.constant 1 : index
    %c0_168 = arith.constant 0 : index
    %c0_169 = arith.constant 0 : index
    %321 = vector.load %arg12[%c1_167, %c0_168, %c0_169] : memref<3x512x96xbf16, #tpu.memory_space<vmem>>, vector<1x512x96xbf16>
    %322 = vector.shape_cast %321 : vector<1x512x96xbf16> to vector<512x96xbf16>
    %cst_170 = arith.constant dense<0.000000e+00> : vector<8x96xf32>
    %323 = tpu.matmul %305, %322, %cst_170 {dimension_numbers = #tpu.dot_dimension_numbers<[1], [0], [0], [1], [0, 0, 1, 1], [], []>} : vector<8x512xbf16>, vector<512x96xbf16>, vector<8x96xf32> -> vector<8x96xf32>
    %324 = arith.addf %290, %323 : vector<8x96xf32>
    %c1_171 = arith.constant 1 : index
    %c0_172 = arith.constant 0 : index
    %c0_173 = arith.constant 0 : index
    %325 = vector.load %arg13[%c1_171, %c0_172, %c0_173] : memref<3x512x96xbf16, #tpu.memory_space<vmem>>, vector<1x512x96xbf16>
    %326 = vector.shape_cast %325 : vector<1x512x96xbf16> to vector<512x96xbf16>
    %cst_174 = arith.constant dense<0.000000e+00> : vector<8x96xf32>
    %327 = tpu.matmul %320, %326, %cst_174 {dimension_numbers = #tpu.dot_dimension_numbers<[1], [0], [0], [1], [0, 0, 1, 1], [], []>} : vector<8x512xbf16>, vector<512x96xbf16>, vector<8x96xf32> -> vector<8x96xf32>
    %328 = arith.addf %324, %327 : vector<8x96xf32>
    %329 = tpu.iota {dimensions = array<i32: 0>} : vector<8x4xi32>
    %330 = tpu.iota {dimensions = array<i32: 1>} : vector<8x4xi32>
    %c1_i32_175 = arith.constant 1 : i32
    %331 = vector.broadcast %c1_i32_175 : i32 to vector<8x4xi32>
    %332 = arith.addi %329, %331 : vector<8x4xi32>
    %c2_i32_176 = arith.constant 2 : i32
    %333 = vector.broadcast %c2_i32_176 : i32 to vector<8x4xi32>
    %334 = arith.muli %333, %330 : vector<8x4xi32>
    %c0_i32_177 = arith.constant 0 : i32
    %335 = vector.broadcast %c0_i32_177 : i32 to vector<8x4xi32>
    %336 = arith.addi %334, %335 : vector<8x4xi32>
    %337 = arith.cmpi eq, %332, %336 : vector<8x4xi32>
    %cst_178 = arith.constant 1.000000e+00 : f32
    %cst_179 = arith.constant 0.000000e+00 : f32
    %338 = vector.broadcast %cst_178 : f32 to vector<8x4xf32>
    %339 = vector.broadcast %cst_179 : f32 to vector<8x4xf32>
    %340 = arith.select %337, %338, %339 : vector<8x4xi1>, vector<8x4xf32>
    %341 = arith.truncf %340 : vector<8x4xf32> to vector<8x4xbf16>
    %cst_180 = arith.constant dense<0.000000e+00> : vector<8x512xf32>
    %342 = tpu.matmul %341, %251, %cst_180 {dimension_numbers = #tpu.dot_dimension_numbers<[1], [0], [0], [1], [0, 0, 1, 1], [], []>} : vector<8x4xbf16>, vector<4x512xbf16>, vector<8x512xf32> -> vector<8x512xf32>
    %343 = arith.truncf %342 : vector<8x512xf32> to vector<8x512xbf16>
    %344 = tpu.iota {dimensions = array<i32: 0>} : vector<8x4xi32>
    %345 = tpu.iota {dimensions = array<i32: 1>} : vector<8x4xi32>
    %c1_i32_181 = arith.constant 1 : i32
    %346 = vector.broadcast %c1_i32_181 : i32 to vector<8x4xi32>
    %347 = arith.addi %344, %346 : vector<8x4xi32>
    %c2_i32_182 = arith.constant 2 : i32
    %348 = vector.broadcast %c2_i32_182 : i32 to vector<8x4xi32>
    %349 = arith.muli %348, %345 : vector<8x4xi32>
    %c1_i32_183 = arith.constant 1 : i32
    %350 = vector.broadcast %c1_i32_183 : i32 to vector<8x4xi32>
    %351 = arith.addi %349, %350 : vector<8x4xi32>
    %352 = arith.cmpi eq, %347, %351 : vector<8x4xi32>
    %cst_184 = arith.constant 1.000000e+00 : f32
    %cst_185 = arith.constant 0.000000e+00 : f32
    %353 = vector.broadcast %cst_184 : f32 to vector<8x4xf32>
    %354 = vector.broadcast %cst_185 : f32 to vector<8x4xf32>
    %355 = arith.select %352, %353, %354 : vector<8x4xi1>, vector<8x4xf32>
    %356 = arith.truncf %355 : vector<8x4xf32> to vector<8x4xbf16>
    %cst_186 = arith.constant dense<0.000000e+00> : vector<8x512xf32>
    %357 = tpu.matmul %356, %251, %cst_186 {dimension_numbers = #tpu.dot_dimension_numbers<[1], [0], [0], [1], [0, 0, 1, 1], [], []>} : vector<8x4xbf16>, vector<4x512xbf16>, vector<8x512xf32> -> vector<8x512xf32>
    %358 = arith.truncf %357 : vector<8x512xf32> to vector<8x512xbf16>
    %c2_187 = arith.constant 2 : index
    %c0_188 = arith.constant 0 : index
    %c0_189 = arith.constant 0 : index
    %359 = vector.load %arg12[%c2_187, %c0_188, %c0_189] : memref<3x512x96xbf16, #tpu.memory_space<vmem>>, vector<1x512x96xbf16>
    %360 = vector.shape_cast %359 : vector<1x512x96xbf16> to vector<512x96xbf16>
    %cst_190 = arith.constant dense<0.000000e+00> : vector<8x96xf32>
    %361 = tpu.matmul %343, %360, %cst_190 {dimension_numbers = #tpu.dot_dimension_numbers<[1], [0], [0], [1], [0, 0, 1, 1], [], []>} : vector<8x512xbf16>, vector<512x96xbf16>, vector<8x96xf32> -> vector<8x96xf32>
    %362 = arith.addf %328, %361 : vector<8x96xf32>
    %c2_191 = arith.constant 2 : index
    %c0_192 = arith.constant 0 : index
    %c0_193 = arith.constant 0 : index
    %363 = vector.load %arg13[%c2_191, %c0_192, %c0_193] : memref<3x512x96xbf16, #tpu.memory_space<vmem>>, vector<1x512x96xbf16>
    %364 = vector.shape_cast %363 : vector<1x512x96xbf16> to vector<512x96xbf16>
    %cst_194 = arith.constant dense<0.000000e+00> : vector<8x96xf32>
    %365 = tpu.matmul %358, %364, %cst_194 {dimension_numbers = #tpu.dot_dimension_numbers<[1], [0], [0], [1], [0, 0, 1, 1], [], []>} : vector<8x512xbf16>, vector<512x96xbf16>, vector<8x96xf32> -> vector<8x96xf32>
    %366 = arith.addf %362, %365 : vector<8x96xf32>
    %c0_195 = arith.constant 0 : index
    %c0_196 = arith.constant 0 : index
    %367 = vector.load %arg14[%c0_195, %c0_196] : memref<1x96xf32, #tpu.memory_space<vmem>>, vector<1x96xf32>
    %368 = vector.broadcast %367 : vector<1x96xf32> to vector<8x96xf32>
    %369 = arith.addf %366, %368 : vector<8x96xf32>
    %cst_197 = arith.constant 0.000000e+00 : f32
    %370 = vector.broadcast %cst_197 : f32 to vector<8x96xf32>
    %371 = arith.subf %370, %369 : vector<8x96xf32>
    %372 = math.exp %371 : vector<8x96xf32>
    %cst_198 = arith.constant 1.000000e+00 : f32
    %373 = vector.broadcast %cst_198 : f32 to vector<8x96xf32>
    %374 = arith.addf %373, %372 : vector<8x96xf32>
    %cst_199 = arith.constant 1.000000e+00 : f32
    %375 = vector.broadcast %cst_199 : f32 to vector<8x96xf32>
    %376 = arith.divf %375, %374 : vector<8x96xf32>
    %c0_200 = arith.constant 0 : index
    %c0_201 = arith.constant 0 : index
    %c0_202 = arith.constant 0 : index
    %377 = vector.load %arg15[%c0_200, %c0_201, %c0_202] : memref<1x8x96xf32, #tpu.memory_space<vmem>>, vector<1x8x96xf32>
    %378 = vector.shape_cast %377 : vector<1x8x96xf32> to vector<8x96xf32>
    %379 = vector.shape_cast %376 : vector<8x96xf32> to vector<1x8x96xf32>
    tpu.vector_store %arg15[%c0_200, %c0_201, %c0_202], %379 {strides = array<i32>} : memref<1x8x96xf32, #tpu.memory_space<vmem>>, vector<1x8x96xf32>,
    return
  }
  func.func @transform_0(%arg0: i32) -> (i32, i32, i32) {
    %c0_i32 = arith.constant 0 : i32
    %c0_i32_0 = arith.constant 0 : i32
    %c0_i32_1 = arith.constant 0 : i32
    return %arg0, %c0_i32, %c0_i32_0 : i32, i32, i32
  }
  func.func @transform_1(%arg0: i32) -> (i32, i32, i32) {
    %c0_i32 = arith.constant 0 : i32
    %c0_i32_0 = arith.constant 0 : i32
    %c0_i32_1 = arith.constant 0 : i32
    %c0_i32_2 = arith.constant 0 : i32
    return %c0_i32, %c0_i32_0, %c0_i32_1 : i32, i32, i32
  }
  func.func @transform_2(%arg0: i32) -> (i32, i32) {
    %c0_i32 = arith.constant 0 : i32
    %c0_i32_0 = arith.constant 0 : i32
    %c0_i32_1 = arith.constant 0 : i32
    return %c0_i32, %c0_i32_0 : i32, i32
  }
  func.func @transform_3(%arg0: i32) -> (i32, i32, i32) {
    %c0_i32 = arith.constant 0 : i32
    %c0_i32_0 = arith.constant 0 : i32
    %c0_i32_1 = arith.constant 0 : i32
    %c0_i32_2 = arith.constant 0 : i32
    return %c0_i32, %c0_i32_0, %c0_i32_1 : i32, i32, i32
  }
  func.func @transform_4(%arg0: i32) -> (i32, i32) {
    %c0_i32 = arith.constant 0 : i32
    %c0_i32_0 = arith.constant 0 : i32
    %c0_i32_1 = arith.constant 0 : i32
    return %c0_i32, %c0_i32_0 : i32, i32
  }
  func.func @transform_5(%arg0: i32) -> (i32, i32, i32) {
    %c0_i32 = arith.constant 0 : i32
    %c0_i32_0 = arith.constant 0 : i32
    %c0_i32_1 = arith.constant 0 : i32
    %c0_i32_2 = arith.constant 0 : i32
    return %c0_i32, %c0_i32_0, %c0_i32_1 : i32, i32, i32
  }
  func.func @transform_6(%arg0: i32) -> (i32, i32) {
    %c0_i32 = arith.constant 0 : i32
    %c0_i32_0 = arith.constant 0 : i32
    %c0_i32_1 = arith.constant 0 : i32
    return %c0_i32, %c0_i32_0 : i32, i32
  }
  func.func @transform_7(%arg0: i32) -> (i32, i32, i32) {
    %c0_i32 = arith.constant 0 : i32
    %c0_i32_0 = arith.constant 0 : i32
    %c0_i32_1 = arith.constant 0 : i32
    %c0_i32_2 = arith.constant 0 : i32
    return %c0_i32, %c0_i32_0, %c0_i32_1 : i32, i32, i32
  }
  func.func @transform_8(%arg0: i32) -> (i32, i32) {
    %c0_i32 = arith.constant 0 : i32
    %c0_i32_0 = arith.constant 0 : i32
    %c0_i32_1 = arith.constant 0 : i32
    return %c0_i32, %c0_i32_0 : i32, i32
  }
  func.func @transform_9(%arg0: i32) -> (i32, i32, i32) {
    %c0_i32 = arith.constant 0 : i32
    %c0_i32_0 = arith.constant 0 : i32
    %c0_i32_1 = arith.constant 0 : i32
    %c0_i32_2 = arith.constant 0 : i32
    return %c0_i32, %c0_i32_0, %c0_i32_1 : i32, i32, i32
  }
  func.func @transform_10(%arg0: i32) -> (i32, i32) {
    %c0_i32 = arith.constant 0 : i32
    %c0_i32_0 = arith.constant 0 : i32
    %c0_i32_1 = arith.constant 0 : i32
    return %c0_i32, %c0_i32_0 : i32, i32
  }
  func.func @transform_11(%arg0: i32) -> (i32, i32, i32) {
    %c0_i32 = arith.constant 0 : i32
    %c0_i32_0 = arith.constant 0 : i32
    %c0_i32_1 = arith.constant 0 : i32
    %c0_i32_2 = arith.constant 0 : i32
    return %c0_i32, %c0_i32_0, %c0_i32_1 : i32, i32, i32
  }
  func.func @transform_12(%arg0: i32) -> (i32, i32, i32) {
    %c0_i32 = arith.constant 0 : i32
    %c0_i32_0 = arith.constant 0 : i32
    %c0_i32_1 = arith.constant 0 : i32
    %c0_i32_2 = arith.constant 0 : i32
    return %c0_i32, %c0_i32_0, %c0_i32_1 : i32, i32, i32
  }
  func.func @transform_13(%arg0: i32) -> (i32, i32) {
    %c0_i32 = arith.constant 0 : i32
    %c0_i32_0 = arith.constant 0 : i32
    %c0_i32_1 = arith.constant 0 : i32
    return %c0_i32, %c0_i32_0 : i32, i32
  }
  func.func @transform_14(%arg0: i32) -> (i32, i32, i32) {
    %c0_i32 = arith.constant 0 : i32
    %c0_i32_0 = arith.constant 0 : i32
    %c0_i32_1 = arith.constant 0 : i32
    return %arg0, %c0_i32, %c0_i32_0 : i32, i32, i32
  }
}

</mosaic_0001>

<bundles_post_ra>
// kernel: net_jscc_forward.1
= control target key start
LH: loop header
LB: loop body
LE: loop exit
PB: predicated region body
PF: predicated region fallthrough
CT: control target
= control target key end

     0   :  { %s7372_s29 = smov 0   ;;  %s9108_s0 = inlined_call_operand.vmem [shape: f32[2,16,48], index: 0, kind: input, shape index: {}]   ;;  %s9109_s1 = inlined_call_operand.vmem [shape: bf16[3,48,256], index: 1, kind: input, shape index: {}]   ;;  %s9110_s2 = inlined_call_operand.vmem [shape: f32[1,256], index: 2, kind: input, shape index: {}]   ;;  %s9111_s3 = inlined_call_operand.vmem [shape: bf16[3,256,128], index: 3, kind: input, shape index: {}]   ;;  %s9112_s4 = inlined_call_operand.vmem [shape: f32[1,128], index: 4, kind: input, shape index: {}]   ;;  %s9113_s5 = inlined_call_operand.vmem [shape: bf16[3,128,32], index: 5, kind: input, shape index: {}]   ;;  %s9114_s6 = inlined_call_operand.vmem [shape: f32[1,32], index: 6, kind: input, shape index: {}]   ;;  %s9115_s7 = inlined_call_operand.vmem [shape: bf16[3,32,128], index: 7, kind: input, shape index: {}]   ;;  %s9116_s8 = inlined_call_operand.vmem [shape: f32[1,128], index: 8, kind: input, shape index: {}]   ;;  %s9117_s9 = inlined_call_operand.vmem [shape: bf16[3,128,512], index: 9, kind: input, shape index: {}]   ;;  %s9118_s10 = inlined_call_operand.vmem [shape: f32[1,512], index: 10, kind: input, shape index: {}]   ;;  %s9119_s11 = inlined_call_operand.vmem [shape: bf16[3,512,96], index: 11, kind: input, shape index: {}]   ;;  %s9120_s12 = inlined_call_operand.vmem [shape: bf16[3,512,96], index: 12, kind: input, shape index: {}]   ;;  %s9121_s13 = inlined_call_operand.vmem [shape: f32[1,96], index: 13, kind: input, shape index: {}]   ;;  %s9122_s14 = inlined_call_operand.vmem [shape: f32[2,8,96], index: 14, kind: output, shape index: {}]  }
   0x1 LB: > { %s4856_s30 = sadd.s32 4294967295, %s7294_s29   ;;  %p4860_p0 = scmp.ge.s32.totalorder %s7294_s29, 1  ;;  %s7294_s29 = sphi %s7372_s29, %s24_s29  }
   0x2   : > { %p412_p1 = scmp.lt.s32.totalorder %s7294_s29, 3 }
   0x4   : > { %p413_p2 = pnand %p4860_p0, %p412_p1 }
   0x5   : > { %p457_p3 = scmp.lt.s32.totalorder (!%p413_p2), %s4856_s30, 1 }
   0x6   : > { %416 = sbr.rel (%p413_p2) target bundleno = 2522 (0x9da), region = 76 }
   0xb   : > { %v470_v0 = vlaneseq  ;;  %v4890_v1 = vld [vmem:[%s9109_s1 + $0x50] sm:$0xf]  ;;  %v6898_v2 = vld [vmem:[%s9109_s1 + $0x54] sm:$0xf0]  ;;  %v6897_v3 = vld [vmem:[%s9109_s1 + $0x54] sm:$0xf] }
   0xc   : > { %v4892_v4 = vld [vmem:[%s9109_s1 + $0x58] sm:$0xf0]  ;;  %s9124_s30 = smov (!%p457_p3, %s4856_s30), 1  ;;  %v4891_v7 = vor.u32 %v6898_v2, %v4890_v1  ;;  %v4882_v9 = vld [vmem:[%s9109_s1 + $0x40] sm:$0xf]  ;;  %v7296_v26 = vmov 0.0  }
   0xd   : > { %v7394_v5 = vshrl.u32 %v470_v0, 7  ;;  %v7396_v6 = vand.u32 127, %v470_v0  ;;  %v4895_v8 = vor.u32 %v6897_v3, %v4892_v4  ;;  %v6896_v10 = vld [vmem:[%s9109_s1 + $0x44] sm:$0xf0]  ;;  %v6895_v11 = vld [vmem:[%s9109_s1 + $0x44] sm:$0xf] }
   0xe   : > { %v4884_v12 = vld [vmem:[%s9109_s1 + $0x48] sm:$0xf0]  ;;  %s6886_s17 = sshll.u32 %s9124_s30, 4  ;;  %569 = vmatpush.bf16.msra.mxu2 %v4891_v7  ;;  %v4883_v14 = vor.u32 %v6896_v10, %v4882_v9  ;;  %v4916_v16 = vld [vmem:[%s9109_s1 + $0x20] sm:$0xf]  ;;  %vm479_vm2 = vcmask 130048  }
   0xf   : > { %v7412_v13 = vmul.u32 2, %v7394_v5  ;;  %582 = vmatpush.bf16.msra.mxu3 %v4895_v8  ;;  %v4887_v15 = vor.u32 %v6895_v11, %v4884_v12  ;;  %s461_s22 = scalar_lea.vmem %s9108_s0, %s6886_s17  ;;  %v6892_v17 = vld [vmem:[%s9109_s1 + $0x24] sm:$0xf0]  ;;  %v6891_v18 = vld [vmem:[%s9109_s1 + $0x24] sm:$0xf]  ;;  %vm560_vm3 = vcmask 392192  }
  0x10   : > { %v4918_v19 = vld [vmem:[%s9109_s1 + $0x28] sm:$0xf0]  ;;  %v467_v20 = vld [vmem:[%s461_s22] sm:$0xff]  ;;  %v4917_v23 = vor.u32 %v6892_v17, %v4916_v16  ;;  %v4874_v31 = vld [vmem:[%s9109_s1 + $0x30] sm:$0xf]  ;;  %vm753_vm5 = vcmask 1043456  }
  0x11   : > { %v468_v21 = vld [vmem:[%s461_s22 + $0x8] sm:$0xff]  ;;  %vm503_vm0 = vcmp.eq.s32.totalorder %v7396_v6, %v7412_v13  ;;  %v475_v22 = vadd.s32 4294967295, %v7412_v13  ;;  %v4921_v24 = vor.u32 %v6891_v18, %v4918_v19  ;;  %v6894_v32 = vld [vmem:[%s9109_s1 + $0x34] sm:$0xf0]  ;;  %v6893_v33 = vld [vmem:[%s9109_s1 + $0x34] sm:$0xf] }
  0x12   : > { %v469_v25 = vpack.c.bf16 %v468_v21, %v467_v20  ;;  %v504_v27 = vsel %vm503_vm0, 1.0, %v7296_v26  ;;  %570 = vmatpush.bf16.msra.mxu2 %v4883_v14  ;;  %v4875_v34 = vor.u32 %v6894_v32, %v4874_v31  ;;  %v4876_v35 = vld [vmem:[%s9109_s1 + $0x38] sm:$0xf0]  ;;  %v4908_v37 = vld [vmem:[%s9109_s1 + $0x10] sm:$0xf]  ;;  %v649_v53 = vadd.s32 1, %v7412_v13 }
  0x13   : > { %v7433_v28 = vpack.c.bf16 %v504_v27, %v504_v27  ;;  %vm476_vm1 = vcmp.eq.s32.totalorder %v7396_v6, %v475_v22  ;;  %583 = vmatpush.bf16.msra.mxu3 %v4887_v15  ;;  %v4879_v36 = vor.u32 %v6893_v33, %v4876_v35  ;;  %v6890_v38 = vld [vmem:[%s9109_s1 + $0x14] sm:$0xf0]  ;;  %v6889_v39 = vld [vmem:[%s9109_s1 + $0x14] sm:$0xf]  ;;  %v4910_v41 = vld [vmem:[%s9109_s1 + $0x18] sm:$0xf0] }
  0x14   : > { %516 = vmatpush.bf16.msra.mxu1 %v469_v25  ;;  %490 = vmatpush.bf16.msra.mxu0 %v469_v25  ;;  %v477_v29 = vsel %vm476_vm1, 1.0, %v7296_v26  ;;  %v4909_v40 = vor.u32 %v6890_v38, %v4908_v37  ;;  %v4913_v42 = vor.u32 %v6889_v39, %v4910_v41  ;;  %v4900_v43 = vld [vmem:[%s9109_s1] sm:$0xf]  ;;  %v6888_v44 = vld [vmem:[%s9109_s1 + $0x4] sm:$0xf0]  ;;  %vm650_vm4 = vcmp.eq.s32.totalorder %v7396_v6, %v649_v53  ;;  %v6927_v53 = vld [vmem:[%s9111_s3 + $0xb0] sm:$0xff] }
  0x15   : > { %v7437_v30 = vpack.c.bf16 %v477_v29, %v477_v29  ;;  %v6887_v45 = vld [vmem:[%s9109_s1 + $0x4] sm:$0xf]  ;;  %v4901_v46 = vor.u32 %v6888_v44, %v4900_v43  ;;  %v4902_v47 = vld [vmem:[%s9109_s1 + $0x8] sm:$0xf0]  ;;  %v651_v56 = vsel %vm650_vm4, 1.0, %v7296_v26  ;;  %vm750_vm6 = vcmask 64512  }
  0x16   : > { %571 = vmatpush.bf16.msra.mxu2 %v4875_v34  ;;  %v4905_v48 = vor.u32 %v6887_v45, %v4902_v47  ;;  %v7486_v57 = vpack.c.bf16 %v651_v56, %v651_v56  ;;  %v4949_v58 = vld [vmem:[%s9109_s1 + $0x80] sm:$0xf]  ;;  %v6904_v59 = vld [vmem:[%s9109_s1 + $0x84] sm:$0xf0]  ;;  %v6903_v60 = vld [vmem:[%s9109_s1 + $0x84] sm:$0xf] }
  0x17   : > { %4865 = vmatmul.msk.bf16.vlgmr.msra.gmra.mxu1 %vm479_vm2, %v7433_v28  ;;  %4864 = vmatmul.msk.bf16.vlgmr.msra.gmra.mxu0 %vm479_vm2, %v7437_v30  ;;  %v4950_v61 = vor.u32 %v6904_v59, %v4949_v58  ;;  %v4951_v62 = vld [vmem:[%s9109_s1 + $0x88] sm:$0xf0]  ;;  %v4941_v0 = vld [vmem:[%s9109_s1 + $0x70] sm:$0xf]  ;;  %v6902_v1 = vld [vmem:[%s9109_s1 + $0x74] sm:$0xf0] }
  0x18   : > { %628 = vmatpush.bf16.msrb.mxu0 %v4917_v23  ;;  %641 = vmatpush.bf16.msrb.mxu1 %v4921_v24  ;;  %v4954_v63 = vor.u32 %v6903_v60, %v4951_v62  ;;  %v6901_v2 = vld [vmem:[%s9109_s1 + $0x74] sm:$0xf]  ;;  %v4942_v3 = vor.u32 %v6902_v1, %v4941_v0  ;;  %v4943_v4 = vld [vmem:[%s9109_s1 + $0x78] sm:$0xf0]  ;;  %v4933_v8 = vld [vmem:[%s9109_s1 + $0x60] sm:$0xf] }
  0x19   : > { %584 = vmatpush.bf16.msra.mxu3 %v4879_v36  ;;  %v4946_v7 = vor.u32 %v6901_v2, %v4943_v4  ;;  %v6900_v9 = vld [vmem:[%s9109_s1 + $0x64] sm:$0xf0]  ;;  %v6899_v10 = vld [vmem:[%s9109_s1 + $0x64] sm:$0xf]  ;;  %v4935_v12 = vld [vmem:[%s9109_s1 + $0x68] sm:$0xf0] }
  0x1a   : > { %663 = vmatpush.bf16.msrb.mxu2 %v469_v25  ;;  %v4934_v11 = vor.u32 %v6900_v9, %v4933_v8  ;;  %v4938_v13 = vor.u32 %v6899_v10, %v4935_v12  ;;  %v738_v29 = vld [vmem:[%s9110_s2] sm:$0x3]  ;;  %v6935_v45 = vld [vmem:[%s9111_s3 + $0xf0] sm:$0xff]  ;;  %v6928_v47 = vld [vmem:[%s9111_s3 + $0xb8] sm:$0xff]  ;;  %vm1328_vm9 = vcmask 1041408   ;;  %vm1324_vm10 = vcmask 31744  }
  0x1b   : > { %v741_v31 = vperm.slane %v738_v29, 1  ;;  %v740_v36 = vperm.slane %v738_v29, 0  ;;  %v6933_v56 = vld [vmem:[%s9111_s3 + $0xe0] sm:$0xff]  ;;  %v6926_v58 = vld [vmem:[%s9111_s3 + $0xa8] sm:$0xff]  ;;  %v6924_v0 = vld [vmem:[%s9111_s3 + $0x98] sm:$0xff]  ;;  %vm1645_vm11 = vcmask 261120  }
  0x1c   : > { %629 = vmatpush.bf16.msrb.mxu0 %v4909_v40  ;;  %642 = vmatpush.bf16.msrb.mxu1 %v4913_v42  ;;  %v6936_v40 = vld [vmem:[%s9111_s3 + $0xf8] sm:$0xff]  ;;  %v6910_v59 = vld [vmem:[%s9111_s3 + $0x28] sm:$0xff]  ;;  %v6925_v60 = vld [vmem:[%s9111_s3 + $0xa0] sm:$0xff]  ;;  %s4863_s19 = sshll.u32 %s9124_s30, 3 }
  0x1d   : > { %715 = vmatpush.bf16.msrb.mxu3 %v4950_v61  ;;  %v6909_v61 = vld [vmem:[%s9111_s3 + $0x20] sm:$0xff]  ;;  %v6908_v1 = vld [vmem:[%s9111_s3 + $0x18] sm:$0xff]  ;;  %v6930_v2 = vld [vmem:[%s9111_s3 + $0xc8] sm:$0xff]  ;;  %s465_s22 = scalar_lea.vmem %s9122_s14, %s4863_s19 }
  0x1e   : > { %v6917_v62 = vld [vmem:[%s9111_s3 + $0x60] sm:$0xff]  ;;  %v6907_v4 = vld [vmem:[%s9111_s3 + $0x10] sm:$0xff]  ;;  %v6922_v8 = vld [vmem:[%s9111_s3 + $0x88] sm:$0xff] }
  0x1f   : > { %v6921_v9 = vld [vmem:[%s9111_s3 + $0x80] sm:$0xff]  ;;  %v6906_v10 = vld [vmem:[%s9111_s3 + $0x8] sm:$0xff] }
  0x20   : > { %630 = vmatpush.bf16.msrb.mxu0 %v4901_v46  ;;  %643 = vmatpush.bf16.msrb.mxu1 %v4905_v48  ;;  %v6905_v12 = vld [vmem:[%s9111_s3] sm:$0xff] }
  0x21   : > { %716 = vmatpush.bf16.msrb.mxu3 %v4942_v3  ;;  %v6923_v3 = vld [vmem:[%s9111_s3 + $0x90] sm:$0xff] }
  0x24   : > { %728 = vmatpush.bf16.msra.mxu0 %v4954_v63  ;;  %v6931_v63 = vld [vmem:[%s9111_s3 + $0xd0] sm:$0xff] }
  0x25   : > { %717 = vmatpush.bf16.msrb.mxu3 %v4934_v11  ;;  %v6916_v11 = vld [vmem:[%s9111_s3 + $0x58] sm:$0xff] }
  0x28   : > { %729 = vmatpush.bf16.msra.mxu0 %v4946_v7  ;;  %v6929_v7 = vld [vmem:[%s9111_s3 + $0xc0] sm:$0xff] }
  0x2c   : > { %730 = vmatpush.bf16.msra.mxu0 %v4938_v13  ;;  %v6915_v13 = vld [vmem:[%s9111_s3 + $0x50] sm:$0xff] }
  0x94   : > { %v518_v49 = vpop.f32.mrf.mxu1  ;;  %v492_v50 = vpop.f32.mrf.mxu0 }
  0x95   : > { %v522_v51 = vpack.c.bf16 %v518_v49, %v518_v49  ;;  %v496_v52 = vpack.c.bf16 %v492_v50, %v492_v50  ;;  %v6912_v49 = vld [vmem:[%s9111_s3 + $0x38] sm:$0xff] }
  0x97   : > { %4896 = vmatmul.msk.bf16.vlgmr.msra.gmra.mxu2 %vm560_vm3, %v522_v51  ;;  %4897 = vmatmul.msk.bf16.vlgmr.msra.gmra.mxu3 %vm560_vm3, %v522_v51  ;;  %v6934_v51 = vld [vmem:[%s9111_s3 + $0xe8] sm:$0xff] }
  0x98   : > { %4922 = vmatmul.msk.bf16.vlgmr.msrb.gmra.mxu0 %vm560_vm3, %v496_v52  ;;  %4923 = vmatmul.msk.bf16.vlgmr.msrb.gmra.mxu1 %vm560_vm3, %v496_v52  ;;  %v6920_v52 = vld [vmem:[%s9111_s3 + $0x78] sm:$0xff] }
  0x9c   : > { %v520_v54 = vpop.f32.mrf.mxu1  ;;  %v494_v55 = vpop.f32.mrf.mxu0 }
  0x9d   : > { %v6911_v54 = vld [vmem:[%s9111_s3 + $0x30] sm:$0xff] }
  0x9e   : > { %v6919_v55 = vld [vmem:[%s9111_s3 + $0x70] sm:$0xff] }
  0xa7   : > { %4924 = vmatmul.msk.bf16.vlgmr.msrb.gmra.mxu2 %vm479_vm2, %v7486_v57 }
 0x115   : > { %v632_v14 = vpop.f32.mrf.mxu0  ;;  %v645_v15 = vpop.f32.mrf.mxu1 }
 0x11a   : > { %v573_v16 = vpop.f32.mrf.mxu2  ;;  %v586_v17 = vpop.f32.mrf.mxu3 }
 0x11b   : > { %v633_v18 = vadd.f32 %v632_v14, %v573_v16  ;;  %v646_v19 = vadd.f32 %v645_v15, %v586_v17  ;;  %v6914_v14 = vld [vmem:[%s9111_s3 + $0x48] sm:$0xff]  ;;  %v6913_v15 = vld [vmem:[%s9111_s3 + $0x40] sm:$0xff]  ;;  %v6952_v16 = vld [vmem:[%s9111_s3 + $0x178] sm:$0xff] }
 0x11c   : > { %v6944_v17 = vld [vmem:[%s9111_s3 + $0x138] sm:$0xff] }
 0x11d   : > { %v634_v20 = vpop.f32.mrf.mxu0  ;;  %v647_v21 = vpop.f32.mrf.mxu1 }
 0x11e   : > { %v6951_v20 = vld [vmem:[%s9111_s3 + $0x170] sm:$0xff] }
 0x11f   : > { %v6943_v21 = vld [vmem:[%s9111_s3 + $0x130] sm:$0xff] }
 0x122   : > { %v575_v22 = vpop.f32.mrf.mxu2  ;;  %v588_v23 = vpop.f32.mrf.mxu3 }
 0x123   : > { %v6942_v22 = vld [vmem:[%s9111_s3 + $0x128] sm:$0xff] }
 0x12a   : > { %v665_v24 = vpop.f32.mrf.mxu2 }
 0x12b   : > { %v669_v25 = vpack.c.bf16 %v665_v24, %v665_v24  ;;  %v6950_v24 = vld [vmem:[%s9111_s3 + $0x168] sm:$0xff] }
 0x12d   : > { %4955 = vmatmul.msk.bf16.vlgmr.msrb.gmra.mxu3 %vm560_vm3, %v669_v25  ;;  %4956 = vmatmul.msk.bf16.vlgmr.msra.gmra.mxu0 %vm560_vm3, %v669_v25 }
 0x132   : > { %v667_v27 = vpop.f32.mrf.mxu2 }
 0x1aa   : > { %v732_v32 = vpop.f32.mrf.mxu0 }
 0x1ab   : > { %v737_v33 = vadd.f32 %v732_v32, %v646_v19 }
 0x1ad   : > { %v745_v34 = vadd.f32 %v741_v31, %v737_v33 }
 0x1af   : > { %v747_v35 = vmax.f32 %v745_v34, 0.0 }
 0x1b0   : > { %v719_v37 = vpop.f32.mrf.mxu3 }
 0x1b1   : > { %v749_v38 = vpack.c.bf16 %v747_v35, %v747_v35  ;;  %v736_v39 = vadd.f32 %v719_v37, %v633_v18  ;;  %v6949_v37 = vld [vmem:[%s9111_s3 + $0x160] sm:$0xff] }
 0x1b2   : > { %v734_v41 = vpop.f32.mrf.mxu0 }
 0x1b3   : > { %v744_v42 = vadd.f32 %v740_v36, %v736_v39  ;;  %v758_v43 = vsel %vm753_vm5, %v749_v38, 0  ;;  %v6941_v38 = vld [vmem:[%s9111_s3 + $0x120] sm:$0xff]  ;;  %v6948_v39 = vld [vmem:[%s9111_s3 + $0x158] sm:$0xff]  ;;  %v6939_v41 = vld [vmem:[%s9111_s3 + $0x110] sm:$0xff] }
 0x1b4   : > { %780 = vmatpush.bf16.msra.mxu2 %v758_v43  ;;  %842 = vmatpush.bf16.msrb.mxu0 %v758_v43 }
 0x1b5   : > { %v746_v44 = vmax.f32 %v744_v42, 0.0  ;;  %v6946_v42 = vld [vmem:[%s9111_s3 + $0x148] sm:$0xff] }
 0x1b7   : > { %v748_v46 = vpack.c.bf16 %v746_v44, %v746_v44  ;;  %4960 = vmatmul.msk.bf16.vlgmr.msrb.gmra.mxu0 %vm750_vm6, %v7433_v28  ;;  %4958 = vmatmul.msk.bf16.vlgmr.msra.gmra.mxu2 %vm750_vm6, %v7437_v30  ;;  %v6945_v44 = vld [vmem:[%s9111_s3 + $0x140] sm:$0xff] }
 0x1b8   : > { %992 = vmatpush.bf16.msrb.mxu2 %v6936_v40  ;;  %v721_v48 = vpop.f32.mrf.mxu3  ;;  %1114 = vmatpush.bf16.msra.mxu0 %v6920_v52  ;;  %v6940_v40 = vld [vmem:[%s9111_s3 + $0x118] sm:$0xff] }
 0x1b9   : > { %v755_v50 = vsel %vm753_vm5, %v748_v46, 0  ;;  %v6968_v46 = vld [vmem:[%s9113_s5 + $0x78] sm:$0xff]  ;;  %vm4801_vm5 = vcmask 785408  }
 0x1ba   : > { %767 = vmatpush.bf16.msra.mxu1 %v755_v50  ;;  %829 = vmatpush.bf16.msra.mxu3 %v755_v50 }
 0x1bc   : > { %993 = vmatpush.bf16.msrb.mxu2 %v6935_v45  ;;  %1115 = vmatpush.bf16.msra.mxu0 %v6919_v55  ;;  %v6937_v45 = vld [vmem:[%s9111_s3 + $0x100] sm:$0xff] }
 0x1bd   : > { %4959 = vmatmul.msk.bf16.vlgmr.msra.gmra.mxu3 %vm750_vm6, %v7433_v28  ;;  %4957 = vmatmul.msk.bf16.vlgmr.msra.gmra.mxu1 %vm750_vm6, %v7437_v30  ;;  %v6918_v28 = vld [vmem:[%s9111_s3 + $0x68] sm:$0xff]  ;;  %v6932_v30 = vld [vmem:[%s9111_s3 + $0xd8] sm:$0xff] }
 0x1be   : > { %979 = vmatpush.bf16.msrb.mxu1 %v6928_v47  ;;  %1101 = vmatpush.bf16.msrb.mxu3 %v6912_v49  ;;  %v6967_v49 = vld [vmem:[%s9113_s5 + $0x70] sm:$0xff] }
 0x1c0   : > { %994 = vmatpush.bf16.msrb.mxu2 %v6934_v51  ;;  %1116 = vmatpush.bf16.msra.mxu0 %v6918_v28 }
 0x1c2   : > { %980 = vmatpush.bf16.msrb.mxu1 %v6927_v53  ;;  %1102 = vmatpush.bf16.msrb.mxu3 %v6911_v54 }
 0x1c4   : > { %995 = vmatpush.bf16.msrb.mxu2 %v6933_v56  ;;  %1117 = vmatpush.bf16.msra.mxu0 %v6917_v62 }
 0x1c6   : > { %981 = vmatpush.bf16.msrb.mxu1 %v6926_v58  ;;  %1103 = vmatpush.bf16.msrb.mxu3 %v6910_v59 }
 0x1c8   : > { %996 = vmatpush.bf16.msrb.mxu2 %v6932_v30  ;;  %1118 = vmatpush.bf16.msra.mxu0 %v6916_v11  ;;  %v6974_v11 = vld [vmem:[%s9113_s5 + $0xa8] sm:$0xff] }
 0x1ca   : > { %982 = vmatpush.bf16.msrb.mxu1 %v6925_v60  ;;  %1104 = vmatpush.bf16.msrb.mxu3 %v6909_v61 }
 0x1cc   : > { %997 = vmatpush.bf16.msrb.mxu2 %v6931_v63  ;;  %1119 = vmatpush.bf16.msra.mxu0 %v6915_v13  ;;  %v6973_v13 = vld [vmem:[%s9113_s5 + $0xa0] sm:$0xff] }
 0x1ce   : > { %983 = vmatpush.bf16.msrb.mxu1 %v6924_v0  ;;  %1105 = vmatpush.bf16.msrb.mxu3 %v6908_v1  ;;  %v6965_v1 = vld [vmem:[%s9113_s5 + $0x60] sm:$0xff] }
 0x1d0   : > { %998 = vmatpush.bf16.msrb.mxu2 %v6930_v2  ;;  %1120 = vmatpush.bf16.msra.mxu0 %v6914_v14  ;;  %v6964_v2 = vld [vmem:[%s9113_s5 + $0x58] sm:$0xff] }
 0x1d2   : > { %984 = vmatpush.bf16.msrb.mxu1 %v6923_v3  ;;  %1106 = vmatpush.bf16.msrb.mxu3 %v6907_v4  ;;  %v6963_v3 = vld [vmem:[%s9113_s5 + $0x50] sm:$0xff]  ;;  %v6962_v4 = vld [vmem:[%s9113_s5 + $0x48] sm:$0xff] }
 0x1d4   : > { %999 = vmatpush.bf16.msrb.mxu2 %v6929_v7  ;;  %1121 = vmatpush.bf16.msra.mxu0 %v6913_v15  ;;  %v6961_v7 = vld [vmem:[%s9113_s5 + $0x40] sm:$0xff] }
 0x1d6   : > { %985 = vmatpush.bf16.msrb.mxu1 %v6922_v8  ;;  %1107 = vmatpush.bf16.msrb.mxu3 %v6906_v10  ;;  %v6976_v8 = vld [vmem:[%s9113_s5 + $0xb8] sm:$0xff]  ;;  %v6975_v10 = vld [vmem:[%s9113_s5 + $0xb0] sm:$0xff] }
 0x1d8   : > { %1149 = vmatpush.bf16.msra.mxu2 %v758_v43  ;;  %1299 = vmatpush.bf16.msrb.mxu0 %v6952_v16  ;;  %v6938_v43 = vld [vmem:[%s9111_s3 + $0x108] sm:$0xff]  ;;  %v7280_v16 = vld [vmem:[%s9112_s4] ss:$0 sm:$0xff] }
 0x1da   : > { %986 = vmatpush.bf16.msrb.mxu1 %v6921_v9  ;;  %1108 = vmatpush.bf16.msrb.mxu3 %v6905_v12 }
 0x1dc   : > { %1300 = vmatpush.bf16.msrb.mxu0 %v6951_v20 }
 0x1de   : > { %1136 = vmatpush.bf16.msra.mxu1 %v755_v50  ;;  %1286 = vmatpush.bf16.msra.mxu3 %v6944_v17  ;;  %v6966_v50 = vld [vmem:[%s9113_s5 + $0x68] sm:$0xff]  ;;  %v7729_v17 = vadd.s32 4294967295, %v7394_v5 }
 0x1e0   : > { %1301 = vmatpush.bf16.msrb.mxu0 %v6950_v24  ;;  %vm1321_vm7 = vcmp.eq.s32.totalorder %v7396_v6, %v7729_v17 }
 0x1e2   : > { %1287 = vmatpush.bf16.msra.mxu3 %v6943_v21 }
 0x1e4   : > { %1302 = vmatpush.bf16.msrb.mxu0 %v6949_v37  ;;  %v6957_v37 = vld [vmem:[%s9113_s5 + $0x20] sm:$0xff] }
 0x1e6   : > { %1288 = vmatpush.bf16.msra.mxu3 %v6942_v22  ;;  %v6971_v22 = vld [vmem:[%s9113_s5 + $0x90] sm:$0xff] }
 0x1e8   : > { %1303 = vmatpush.bf16.msrb.mxu0 %v6948_v39  ;;  %v6955_v39 = vld [vmem:[%s9113_s5 + $0x10] sm:$0xff] }
 0x1ea   : > { %1289 = vmatpush.bf16.msra.mxu3 %v6941_v38  ;;  %v6956_v38 = vld [vmem:[%s9113_s5 + $0x18] sm:$0xff] }
 0x1ee   : > { %1290 = vmatpush.bf16.msra.mxu3 %v6940_v40  ;;  %v6954_v40 = vld [vmem:[%s9113_s5 + $0x8] sm:$0xff] }
 0x1f2   : > { %1291 = vmatpush.bf16.msra.mxu3 %v6939_v41  ;;  %v6970_v41 = vld [vmem:[%s9113_s5 + $0x88] sm:$0xff] }
 0x1f6   : > { %1292 = vmatpush.bf16.msra.mxu3 %v6938_v43 }
 0x1fa   : > { %1293 = vmatpush.bf16.msra.mxu3 %v6937_v45 }
 0x234   : > { %v844_v18 = vpop.f32.mrf.mxu0 }
 0x235   : > { %v849_v19 = vpack.c.bf16 %v844_v18, %v844_v18  ;;  %v7732_v18 = vadd.s32 1, %v7394_v5 }
 0x237   : > { %1000 = vmatmul.bf16.vlgmr.msrb.gmra.mxu2 %v849_v19  ;;  %v6972_v19 = vld [vmem:[%s9113_s5 + $0x98] sm:$0xff]  ;;  %vm1502_vm8 = vcmp.eq.s32.totalorder %v7396_v6, %v7732_v18 }
 0x238   : > { %1427 = vmatpush.bf16.msrb.mxu2 %v6968_v46 }
 0x23a   : > { %v782_v23 = vpop.f32.mrf.mxu2  ;;  %v769_v25 = vpop.f32.mrf.mxu1 }
 0x23b   : > { %v787_v27 = vpack.c.bf16 %v782_v23, %v782_v23  ;;  %v786_v29 = vpack.c.bf16 %v769_v25, %v769_v25  ;;  %v1322_v25 = vsel %vm1321_vm7, 1.0, %v7296_v26 }
 0x23c   : > { %v846_v31 = vpop.f32.mrf.mxu0  ;;  %1428 = vmatpush.bf16.msrb.mxu2 %v6967_v49 }
 0x23d   : > { %1122 = vmatmul.bf16.vlgmr.msra.gmra.mxu0 %v787_v27  ;;  %1109 = vmatmul.bf16.vlgmr.msrb.gmra.mxu3 %v786_v29  ;;  %v1503_v27 = vsel %vm1502_vm8, 1.0, %v7296_v26  ;;  %v6960_v31 = vld [vmem:[%s9113_s5 + $0x38] sm:$0xff] }
 0x240   : > { %v831_v32 = vpop.f32.mrf.mxu3  ;;  %1429 = vmatpush.bf16.msrb.mxu2 %v6966_v50 }
 0x241   : > { %v848_v33 = vpack.c.bf16 %v831_v32, %v831_v32 }
 0x242   : > { %v784_v34 = vpop.f32.mrf.mxu2  ;;  %v771_v35 = vpop.f32.mrf.mxu1 }
 0x243   : > { %987 = vmatmul.bf16.vlgmr.msrb.gmra.mxu1 %v848_v33  ;;  %v7750_v33 = vpack.c.bf16 %v1322_v25, %v1322_v25  ;;  %v7752_v34 = vpack.c.bf16 %v1503_v27, %v1503_v27  ;;  %v6959_v35 = vld [vmem:[%s9113_s5 + $0x30] sm:$0xff]  ;;  %v5453_v27 = vld [vmem:[%s9117_s9 + $0x140] sm:$0xf] }
 0x244   : > { %1430 = vmatpush.bf16.msrb.mxu2 %v6965_v1  ;;  %v6981_v1 = vld [vmem:[%s9115_s7 + $0x20] sm:$0xff] }
 0x247   : > { %5122 = vmatmul.msk.bf16.vlgmr.msra.gmra.mxu2 %vm750_vm6, %v7486_v57 }
 0x248   : > { %v833_v36 = vpop.f32.mrf.mxu3  ;;  %1431 = vmatpush.bf16.msrb.mxu2 %v6964_v2  ;;  %v5533_v2 = vld [vmem:[%s9117_s9 + $0x1e0] sm:$0xf] }
 0x249   : > { %v6958_v36 = vld [vmem:[%s9113_s5 + $0x28] sm:$0xff] }
 0x24c   : > { %1432 = vmatpush.bf16.msrb.mxu2 %v6963_v3  ;;  %v7045_v3 = vld [vmem:[%s9117_s9 + $0x1ec] sm:$0xf0] }
 0x250   : > { %1433 = vmatpush.bf16.msrb.mxu2 %v6962_v4  ;;  %v5517_v4 = vld [vmem:[%s9117_s9 + $0x1c0] sm:$0xf] }
 0x253   : > { %5121 = vmatmul.msk.bf16.vlgmr.msra.gmra.mxu1 %vm750_vm6, %v7486_v57  ;;  %v6947_v57 = vld [vmem:[%s9111_s3 + $0x150] sm:$0xff] }
 0x254   : > { %1304 = vmatpush.bf16.msrb.mxu0 %v6947_v57  ;;  %1434 = vmatpush.bf16.msrb.mxu2 %v6961_v7  ;;  %v6953_v57 = vld [vmem:[%s9113_s5] sm:$0xff]  ;;  %v5534_v7 = vor.u32 %v7045_v3, %v5533_v2  ;;  %v7005_v2 = vld [vmem:[%s9117_s9 + $0xac] sm:$0xf0] }
 0x255   : > { %v7031_v3 = vld [vmem:[%s9117_s9 + $0x184] sm:$0xf] }
 0x258   : > { %1305 = vmatpush.bf16.msrb.mxu0 %v6946_v42  ;;  %v6969_v42 = vld [vmem:[%s9113_s5 + $0x80] sm:$0xff] }
 0x25c   : > { %1306 = vmatpush.bf16.msrb.mxu0 %v6945_v44 }
 0x260   : > { %1587 = vmatpush.bf16.msra.mxu0 %v6976_v8  ;;  %v7041_v8 = vld [vmem:[%s9117_s9 + $0x1cc] sm:$0xf0] }
 0x264   : > { %1588 = vmatpush.bf16.msra.mxu0 %v6975_v10 }
 0x268   : > { %1589 = vmatpush.bf16.msra.mxu0 %v6974_v11  ;;  %v5501_v11 = vld [vmem:[%s9117_s9 + $0x1a0] sm:$0xf] }
 0x26c   : > { %1590 = vmatpush.bf16.msra.mxu0 %v6973_v13 }
 0x270   : > { %1591 = vmatpush.bf16.msra.mxu0 %v6972_v19  ;;  %v7033_v19 = vld [vmem:[%s9117_s9 + $0x18c] sm:$0xf0] }
 0x274   : > { %1592 = vmatpush.bf16.msra.mxu0 %v6971_v22  ;;  %v5469_v22 = vld [vmem:[%s9117_s9 + $0x160] sm:$0xf] }
 0x278   : > { %1593 = vmatpush.bf16.msra.mxu0 %v6970_v41  ;;  %v5541_v41 = vld [vmem:[%s9117_s9 + $0x1e8] sm:$0xf] }
 0x27c   : > { %1594 = vmatpush.bf16.msra.mxu0 %v6969_v42 }
 0x2ba   : > { %v1001_v47 = vpop.f32.mrf.mxu2  ;;  %v1123_v48 = vpop.f32.mrf.mxu0 }
 0x2c0   : > { %v988_v51 = vpop.f32.mrf.mxu1  ;;  %v1110_v53 = vpop.f32.mrf.mxu3 }
 0x2c1   : > { %v1002_v52 = vadd.f32 %v1001_v47, %v988_v51  ;;  %v6980_v51 = vld [vmem:[%s9115_s7 + $0x18] sm:$0xff] }
 0x2c2   : > { %v1003_v54 = vpop.f32.mrf.mxu2  ;;  %v1125_v55 = vpop.f32.mrf.mxu0 }
 0x2c3   : > { %v1111_v56 = vadd.f32 %v1110_v53, %v1002_v52  ;;  %v6979_v52 = vld [vmem:[%s9115_s7 + $0x10] sm:$0xff]  ;;  %v7281_v55 = vld [vmem:[%s9114_s6] ss:$0 sm:$0xff] }
 0x2c5   : > { %v1124_v58 = vadd.f32 %v1123_v48, %v1111_v56 }
 0x2c8   : > { %v990_v59 = vpop.f32.mrf.mxu1  ;;  %v1112_v28 = vpop.f32.mrf.mxu3 }
 0x2ca   : > { %v1151_v30 = vpop.f32.mrf.mxu2 }
 0x2cb   : > { %v1156_v60 = vpack.c.bf16 %v1151_v30, %v1151_v30 }
 0x2cd   : > { %1307 = vmatmul.bf16.vlgmr.msrb.gmra.mxu0 %v1156_v60 }
 0x2d0   : > { %v1138_v61 = vpop.f32.mrf.mxu1 }
 0x2d1   : > { %v1155_v62 = vpack.c.bf16 %v1138_v61, %v1138_v61 }
 0x2d2   : > { %v1153_v63 = vpop.f32.mrf.mxu2 }
 0x2d3   : > { %1294 = vmatmul.bf16.vlgmr.msra.gmra.mxu3 %v1155_v62  ;;  %v6978_v62 = vld [vmem:[%s9115_s7 + $0x8] sm:$0xff]  ;;  %v6977_v63 = vld [vmem:[%s9115_s7] sm:$0xff] }
 0x2d8   : > { %v1140_v0 = vpop.f32.mrf.mxu1 }
 0x2d9   : > { %v6982_v0 = vld [vmem:[%s9115_s7 + $0x28] sm:$0xff] }
 0x34a   : > { %v1308_v9 = vpop.f32.mrf.mxu0 }
 0x352   : > { %v1310_v12 = vpop.f32.mrf.mxu0 }
 0x353   : > { %v7037_v12 = vld [vmem:[%s9117_s9 + $0x1ac] sm:$0xf0] }
 0x356   : > { %v1295_v14 = vpop.f32.mrf.mxu3 }
 0x357   : > { %v1309_v15 = vadd.f32 %v1308_v9, %v1295_v14  ;;  %v5518_v9 = vor.u32 %v7041_v8, %v5517_v4  ;;  %v5502_v14 = vor.u32 %v7037_v12, %v5501_v11  ;;  %v5493_v8 = vld [vmem:[%s9117_s9 + $0x188] sm:$0xf] }
 0x359   : > { %v1312_v20 = vadd.f32 %v1309_v15, %v1124_v58 }
 0x35b   : > { %v1317_v21 = vadd.f32 %v7280_v16, %v1312_v20  ;;  %v5485_v16 = vld [vmem:[%s9117_s9 + $0x180] sm:$0xf] }
 0x35d   : > { %v1318_v23 = vmax.f32 %v1317_v21, 0.0  ;;  %v5486_v21 = vor.u32 %v7033_v19, %v5485_v16  ;;  %v5471_v19 = vld [vmem:[%s9117_s9 + $0x170] sm:$0xf0] }
 0x35e   : > { %v1297_v24 = vpop.f32.mrf.mxu3 }
 0x35f   : > { %v1319_v29 = vpack.c.bf16 %v1318_v23, %v1318_v23  ;;  %v7029_v23 = vld [vmem:[%s9117_s9 + $0x16c] sm:$0xf0] }
 0x360   : > { %v5470_v25 = vor.u32 %v7029_v23, %v5469_v22  ;;  %v5597_v23 = vld [vmem:[%s9117_s9 + $0x60] sm:$0xf] }
 0x361   : > { %1435 = vmatmul.bf16.vlgmr.msrb.gmra.mxu2 %v1319_v29  ;;  %v1330_v32 = vsel %vm1328_vm9, %v1319_v29, 0  ;;  %v7025_v29 = vld [vmem:[%s9117_s9 + $0x14c] sm:$0xf0] }
 0x362   : > { %1339 = vmatpush.bf16.msrb.mxu1 %v1330_v32  ;;  %1515 = vmatpush.bf16.msrb.mxu3 %v1330_v32  ;;  %v5437_v32 = vld [vmem:[%s9117_s9 + $0x120] sm:$0xf] }
 0x365   : > { %5219 = vmatmul.msk.bf16.vlgmr.msrb.gmra.mxu1 %vm1324_vm10, %v7750_v33  ;;  %5300 = vmatmul.msk.bf16.vlgmr.msrb.gmra.mxu3 %vm1324_vm10, %v7752_v34 }
 0x366   : > { %1488 = vmatpush.bf16.msra.mxu1 %v6960_v31  ;;  %1654 = vmatpush.bf16.msra.mxu3 %v6980_v51  ;;  %v5454_v31 = vor.u32 %v7025_v29, %v5453_v27  ;;  %v7039_v51 = vld [vmem:[%s9117_s9 + $0x1c4] sm:$0xf]  ;;  %v5455_v29 = vld [vmem:[%s9117_s9 + $0x150] sm:$0xf0] }
 0x367   : > { %v7023_v27 = vld [vmem:[%s9117_s9 + $0x144] sm:$0xf] }
 0x36a   : > { %1489 = vmatpush.bf16.msra.mxu1 %v6959_v35  ;;  %1655 = vmatpush.bf16.msra.mxu3 %v6979_v52  ;;  %v7021_v35 = vld [vmem:[%s9117_s9 + $0x12c] sm:$0xf0]  ;;  %v5519_v52 = vld [vmem:[%s9117_s9 + $0x1d0] sm:$0xf0] }
 0x36e   : > { %1490 = vmatpush.bf16.msra.mxu1 %v6958_v36  ;;  %1729 = vmatpush.bf16.msrb.mxu3 %v6982_v0 }
 0x372   : > { %1491 = vmatpush.bf16.msra.mxu1 %v6957_v37  ;;  %1730 = vmatpush.bf16.msrb.mxu3 %v6981_v1  ;;  %v5438_v37 = vor.u32 %v7021_v35, %v5437_v32  ;;  %v5629_v1 = vld [vmem:[%s9117_s9 + $0xa0] sm:$0xf]  ;;  %v7026_v32 = vld [vmem:[%s9117_s9 + $0x154] sm:$0xf0] }
 0x373   : > { %v5630_v4 = vor.u32 %v7005_v2, %v5629_v1  ;;  %v5543_v1 = vld [vmem:[%s9117_s9 + $0x1f8] sm:$0xf0] }
 0x376   : > { %1492 = vmatpush.bf16.msra.mxu1 %v6956_v38 }
 0x37a   : > { %1493 = vmatpush.bf16.msra.mxu1 %v6955_v39 }
 0x37e   : > { %1494 = vmatpush.bf16.msra.mxu1 %v6954_v40  ;;  %v7043_v40 = vld [vmem:[%s9117_s9 + $0x1e4] sm:$0xf] }
 0x382   : > { %1495 = vmatpush.bf16.msra.mxu1 %v6953_v57  ;;  %v5535_v57 = vld [vmem:[%s9117_s9 + $0x1f0] sm:$0xf0] }
 0x383   : > { %v5538_v42 = vor.u32 %v7043_v40, %v5535_v57  ;;  %v7019_v57 = vld [vmem:[%s9117_s9 + $0x124] sm:$0xf] }
 0x386   : > { %1682 = vmatpush.bf16.msrb.mxu1 %v6978_v62 }
 0x38a   : > { %1683 = vmatpush.bf16.msrb.mxu1 %v6977_v63  ;;  %v7038_v63 = vld [vmem:[%s9117_s9 + $0x1b4] sm:$0xf0] }
 0x3e2   : > { %v1341_v43 = vpop.f32.mrf.mxu1 }
 0x3e3   : > { %v1345_v44 = vpack.c.bf16 %v1341_v43, %v1341_v43  ;;  %v7046_v43 = vld [vmem:[%s9117_s9 + $0x1f4] sm:$0xf0] }
 0x3e4   : > { %v1436_v45 = vpop.f32.mrf.mxu2 }
 0x3e5   : > { %1496 = vmatmul.bf16.vlgmr.msra.gmra.mxu1 %v1345_v44  ;;  %v5542_v44 = vor.u32 %v7046_v43, %v5541_v41  ;;  %v5439_v41 = vld [vmem:[%s9117_s9 + $0x130] sm:$0xf0] }
 0x3e6   : > { %1986 = vmatpush.bf16.msra.mxu1 %v5534_v7  ;;  %v5487_v7 = vld [vmem:[%s9117_s9 + $0x190] sm:$0xf0]  ;;  %v5442_v43 = vor.u32 %v7019_v57, %v5439_v41  ;;  %v6999_v57 = vld [vmem:[%s9117_s9 + $0x84] sm:$0xf] }
 0x3e7   : > { %v5490_v11 = vor.u32 %v7031_v3, %v5487_v7  ;;  %v7040_v7 = vld [vmem:[%s9117_s9 + $0x1cc] sm:$0xf]  ;;  %v5615_v41 = vld [vmem:[%s9117_s9 + $0x90] sm:$0xf0] }
 0x3e8   : > { %v1517_v46 = vpop.f32.mrf.mxu3 }
 0x3e9   : > { %v1521_v47 = vpack.c.bf16 %v1517_v46, %v1517_v46  ;;  %v7017_v46 = vld [vmem:[%s9117_s9 + $0x10c] sm:$0xf0] }
 0x3ea   : > { %v1343_v48 = vpop.f32.mrf.mxu1  ;;  %1987 = vmatpush.bf16.msra.mxu1 %v5518_v9  ;;  %v7034_v9 = vld [vmem:[%s9117_s9 + $0x194] sm:$0xf0] }
 0x3eb   : > { %1595 = vmatmul.bf16.vlgmr.msra.gmra.mxu0 %v1521_v47  ;;  %v5661_v48 = vld [vmem:[%s9117_s9 + $0xe0] sm:$0xf]  ;;  %v5494_v12 = vor.u32 %v7034_v9, %v5493_v8  ;;  %v5527_v8 = vld [vmem:[%s9117_s9 + $0x1d8] sm:$0xf0] }
 0x3ec   : > { %v1438_v49 = vpop.f32.mrf.mxu2 }
 0x3ed   : > { %v7013_v49 = vld [vmem:[%s9117_s9 + $0xec] sm:$0xf0] }
 0x3ee   : > { %1988 = vmatpush.bf16.msra.mxu1 %v5502_v14  ;;  %v7001_v14 = vld [vmem:[%s9117_s9 + $0x8c] sm:$0xf0] }
 0x3f0   : > { %v1519_v50 = vpop.f32.mrf.mxu3 }
 0x3f1   : > { %v5662_v50 = vor.u32 %v7013_v49, %v5661_v48  ;;  %v7015_v49 = vld [vmem:[%s9117_s9 + $0x104] sm:$0xf] }
 0x3f2   : > { %1989 = vmatpush.bf16.msra.mxu1 %v5486_v21  ;;  %v7030_v21 = vld [vmem:[%s9117_s9 + $0x174] sm:$0xf0] }
 0x3f6   : > { %1990 = vmatpush.bf16.msra.mxu1 %v5470_v25 }
 0x3fa   : > { %1991 = vmatpush.bf16.msra.mxu1 %v5454_v31  ;;  %v5461_v31 = vld [vmem:[%s9117_s9 + $0x148] sm:$0xf] }
 0x3fe   : > { %1992 = vmatpush.bf16.msra.mxu1 %v5438_v37  ;;  %v5462_v37 = vor.u32 %v7026_v32, %v5461_v31  ;;  %v7003_v31 = vld [vmem:[%s9117_s9 + $0xa4] sm:$0xf]  ;;  %v5631_v32 = vld [vmem:[%s9117_s9 + $0xb0] sm:$0xf0] }
 0x462   : > { %v1497_v53 = vpop.f32.mrf.mxu1 }
 0x463   : > { %v1498_v54 = vadd.f32 %v1497_v53, %v1436_v45  ;;  %v5421_v45 = vld [vmem:[%s9117_s9 + $0x100] sm:$0xf]  ;;  %v5525_v53 = vld [vmem:[%s9117_s9 + $0x1c8] sm:$0xf] }
 0x464   : > { %v5422_v47 = vor.u32 %v7017_v46, %v5421_v45  ;;  %v5565_v46 = vld [vmem:[%s9117_s9 + $0x20] sm:$0xf] }
 0x466   : > { %1993 = vmatpush.bf16.msra.mxu1 %v5422_v47  ;;  %v6989_v47 = vld [vmem:[%s9117_s9 + $0x2c] sm:$0xf0] }
 0x467   : > { %v5566_v48 = vor.u32 %v6989_v47, %v5565_v46  ;;  %v5479_v46 = vld [vmem:[%s9117_s9 + $0x178] sm:$0xf0]  ;;  %v5618_v47 = vor.u32 %v6999_v57, %v5615_v41  ;;  %v6983_v57 = vld [vmem:[%s9117_s9 + $0x4] sm:$0xf]  ;;  %v5551_v41 = vld [vmem:[%s9117_s9 + $0x10] sm:$0xf0] }
 0x468   : > { %v1596_v56 = vpop.f32.mrf.mxu0 }
 0x469   : > { %v1600_v58 = vadd.f32 %v1596_v56, %v1498_v54  ;;  %v5522_v54 = vor.u32 %v7039_v51, %v5519_v52  ;;  %v5645_v56 = vld [vmem:[%s9117_s9 + $0xc0] sm:$0xf]  ;;  %v5429_v51 = vld [vmem:[%s9117_s9 + $0x108] sm:$0xf] }
 0x46a   : > { %v1499_v59 = vpop.f32.mrf.mxu1 }
 0x46b   : > { %v1605_v28 = vadd.f32 %v7281_v55, %v1600_v58  ;;  %v7042_v55 = vld [vmem:[%s9117_s9 + $0x1d4] sm:$0xf0]  ;;  %v7009_v58 = vld [vmem:[%s9117_s9 + $0xcc] sm:$0xf0] }
 0x46c   : > { %v5526_v59 = vor.u32 %v7042_v55, %v5525_v53  ;;  %v7018_v53 = vld [vmem:[%s9117_s9 + $0x114] sm:$0xf0]  ;;  %v5549_v55 = vld [vmem:[%s9117_s9] sm:$0xf] }
 0x46d   : > { %v1606_v30 = vpack.c.bf16 %v1605_v28, %v1605_v28  ;;  %v5646_v28 = vor.u32 %v7009_v58, %v5645_v56  ;;  %v6985_v56 = vld [vmem:[%s9117_s9 + $0xc] sm:$0xf0] }
 0x46e   : > { %v5550_v58 = vor.u32 %v6985_v56, %v5549_v55  ;;  %v5463_v55 = vld [vmem:[%s9117_s9 + $0x158] sm:$0xf0] }
 0x46f   : > { %5362 = vmatmul.msk.bf16.vlgmr.msra.gmra.mxu3 %vm1645_vm11, %v1606_v30  ;;  %v1608_v60 = vsel %vm1328_vm9, %v1606_v30, 0  ;;  %v7035_v30 = vld [vmem:[%s9117_s9 + $0x1a4] sm:$0xf] }
 0x470   : > { %v1598_v61 = vpop.f32.mrf.mxu0  ;;  %1617 = vmatpush.bf16.msra.mxu2 %v1608_v60  ;;  %2012 = vmatpush.bf16.msra.mxu3 %v5542_v44  ;;  %v7022_v44 = vld [vmem:[%s9117_s9 + $0x134] sm:$0xf0] }
 0x471   : > { %v5509_v61 = vld [vmem:[%s9117_s9 + $0x1a8] sm:$0xf] }
 0x472   : > { %v5510_v0 = vor.u32 %v7038_v63, %v5509_v61 }
 0x473   : > { %5349 = vmatmul.msk.bf16.vlgmr.msra.gmra.mxu2 %vm1324_vm10, %v7750_v33 }
 0x474   : > { %1696 = vmatpush.bf16.msrb.mxu2 %v1608_v60  ;;  %2013 = vmatpush.bf16.msra.mxu3 %v5526_v59  ;;  %v5503_v60 = vld [vmem:[%s9117_s9 + $0x1b0] sm:$0xf0] }
 0x475   : > { %v5506_v62 = vor.u32 %v7035_v30, %v5503_v60  ;;  %v7282_v60 = vld [vmem:[%s9116_s8] ss:$0 sm:$0xff] }
 0x478   : > { %1999 = vmatpush.bf16.msra.mxu2 %v5538_v42  ;;  %2014 = vmatpush.bf16.msra.mxu3 %v5510_v0  ;;  %v5445_v42 = vld [vmem:[%s9117_s9 + $0x128] sm:$0xf]  ;;  %v7044_v0 = vld [vmem:[%s9117_s9 + $0x1ec] sm:$0xf] }
 0x479   : > { %v5446_v45 = vor.u32 %v7022_v44, %v5445_v42  ;;  %v7002_v44 = vld [vmem:[%s9117_s9 + $0x94] sm:$0xf0] }
 0x47c   : > { %2000 = vmatpush.bf16.msra.mxu2 %v5522_v54  ;;  %2015 = vmatpush.bf16.msra.mxu3 %v5494_v12  ;;  %v5430_v54 = vor.u32 %v7018_v53, %v5429_v51  ;;  %v5663_v12 = vld [vmem:[%s9117_s9 + $0xf0] sm:$0xf0]  ;;  %v6998_v53 = vld [vmem:[%s9117_s9 + $0x74] sm:$0xf0] }
 0x480   : > { %2001 = vmatpush.bf16.msra.mxu2 %v5506_v62 }
 0x483   : > { %5372 = vmatmul.msk.bf16.vlgmr.msrb.gmra.mxu2 %vm1324_vm10, %v7752_v34 }
 0x484   : > { %2002 = vmatpush.bf16.msra.mxu2 %v5490_v11  ;;  %v7011_v11 = vld [vmem:[%s9117_s9 + $0xe4] sm:$0xf] }
 0x4f2   : > { %v7824_v10 = vpop.f32.mrf.mxu3 }
 0x4f6   : > { %v1619_v13 = vpop.f32.mrf.mxu2 }
 0x4f7   : > { %v1623_v15 = vpack.c.bf16 %v1619_v13, %v1619_v13  ;;  %v5613_v13 = vld [vmem:[%s9117_s9 + $0x80] sm:$0xf] }
 0x4f8   : > { %v5614_v16 = vor.u32 %v7001_v14, %v5613_v13  ;;  %v5669_v13 = vld [vmem:[%s9117_s9 + $0xe8] sm:$0xf]  ;;  %v5530_v14 = vor.u32 %v7040_v7, %v5527_v8  ;;  %v7012_v7 = vld [vmem:[%s9117_s9 + $0xec] sm:$0xf]  ;;  %v5671_v8 = vld [vmem:[%s9117_s9 + $0xf8] sm:$0xf0] }
 0x4f9   : > { %5371 = vmatmul.msk.bf16.vlgmr.msrb.gmra.mxu1 %vm1645_vm11, %v1623_v15  ;;  %v7027_v15 = vld [vmem:[%s9117_s9 + $0x164] sm:$0xf] }
 0x4fa   : > { %v1659_v20 = vpop.f32.mrf.mxu3  ;;  %2198 = vmatpush.bf16.msrb.mxu1 %v5662_v50  ;;  %v5474_v22 = vor.u32 %v7027_v15, %v5471_v19  ;;  %v5423_v50 = vld [vmem:[%s9117_s9 + $0x110] sm:$0xf0]  ;;  %v7036_v15 = vld [vmem:[%s9117_s9 + $0x1ac] sm:$0xf]  ;;  %v5666_v19 = vor.u32 %v7011_v11, %v5663_v12  ;;  %v5674_v11 = vor.u32 %v7012_v7, %v5671_v8  ;;  %v7071_v7 = vld [vmem:[%s9117_s9 + $0x2c4] sm:$0xf] }
 0x4fb   : > { %v5477_v20 = vld [vmem:[%s9117_s9 + $0x168] sm:$0xf]  ;;  %v5426_v52 = vor.u32 %v7015_v49, %v5423_v50  ;;  %v6995_v49 = vld [vmem:[%s9117_s9 + $0x64] sm:$0xf]  ;;  %v5599_v50 = vld [vmem:[%s9117_s9 + $0x70] sm:$0xf0] }
 0x4fc   : > { %v5478_v25 = vor.u32 %v7030_v21, %v5477_v20  ;;  %2003 = vmatpush.bf16.msra.mxu2 %v5474_v22  ;;  %v7014_v20 = vld [vmem:[%s9117_s9 + $0xf4] sm:$0xf0]  ;;  %v7007_v22 = vld [vmem:[%s9117_s9 + $0xc4] sm:$0xf]  ;;  %v5602_v56 = vor.u32 %v6995_v49, %v5599_v50  ;;  %v7008_v12 = vld [vmem:[%s9117_s9 + $0xcc] sm:$0xf] }
 0x4fd   : > { %v5670_v21 = vor.u32 %v7014_v20, %v5669_v13  ;;  %v5655_v13 = vld [vmem:[%s9117_s9 + $0xd8] sm:$0xf0]  ;;  %v7000_v20 = vld [vmem:[%s9117_s9 + $0x8c] sm:$0xf]  ;;  %v5808_v8 = vld [vmem:[%s9117_s9 + $0x2d0] sm:$0xf0] }
 0x4fe   : > { %v1621_v24 = vpop.f32.mrf.mxu2  ;;  %2199 = vmatpush.bf16.msrb.mxu1 %v5646_v28  ;;  %2016 = vmatpush.bf16.msra.mxu3 %v5478_v25 }
 0x4ff   : > { %v6997_v24 = vld [vmem:[%s9117_s9 + $0x6c] sm:$0xf0] }
 0x500   : > { %v5598_v35 = vor.u32 %v6997_v24, %v5597_v23  ;;  %v5647_v23 = vld [vmem:[%s9117_s9 + $0xd0] sm:$0xf0]  ;;  %v5653_v24 = vld [vmem:[%s9117_s9 + $0xc8] sm:$0xf] }
 0x501   : > { %v5650_v25 = vor.u32 %v7007_v22, %v5647_v23  ;;  %v6996_v23 = vld [vmem:[%s9117_s9 + $0x6c] sm:$0xf] }
 0x502   : > { %2200 = vmatpush.bf16.msrb.mxu1 %v5630_v4  ;;  %2017 = vmatpush.bf16.msra.mxu3 %v5462_v37  ;;  %v5546_v4 = vor.u32 %v7044_v0, %v5543_v1  ;;  %v7032_v37 = vld [vmem:[%s9117_s9 + $0x18c] sm:$0xf] }
 0x506   : > { %v1698_v36 = vpop.f32.mrf.mxu2  ;;  %2201 = vmatpush.bf16.msrb.mxu1 %v5614_v16  ;;  %2018 = vmatpush.bf16.msra.mxu3 %v5446_v45  ;;  %v5511_v16 = vld [vmem:[%s9117_s9 + $0x1b8] sm:$0xf0]  ;;  %v7028_v45 = vld [vmem:[%s9117_s9 + $0x16c] sm:$0xf] }
 0x507   : > { %v1702_v38 = vpack.c.bf16 %v1698_v36, %v1698_v36  ;;  %v5458_v36 = vor.u32 %v7023_v27, %v5455_v29  ;;  %v7010_v27 = vld [vmem:[%s9117_s9 + $0xd4] sm:$0xf0]  ;;  %v5482_v51 = vor.u32 %v7028_v45, %v5479_v46  ;;  %v6984_v45 = vld [vmem:[%s9117_s9 + $0xc] sm:$0xf]  ;;  %v5559_v46 = vld [vmem:[%s9117_s9 + $0x18] sm:$0xf0] }
 0x508   : > { %v5654_v29 = vor.u32 %v7010_v27, %v5653_v24  ;;  %v5591_v27 = vld [vmem:[%s9117_s9 + $0x58] sm:$0xf0] }
 0x509   : > { %5385 = vmatmul.msk.bf16.vlgmr.msrb.gmra.mxu3 %vm1645_vm11, %v1702_v38  ;;  %2004 = vmatpush.bf16.msra.mxu2 %v5458_v36  ;;  %v5581_v38 = vld [vmem:[%s9117_s9 + $0x40] sm:$0xf]  ;;  %v7006_v36 = vld [vmem:[%s9117_s9 + $0xb4] sm:$0xf0] }
 0x50a   : > { %2202 = vmatpush.bf16.msrb.mxu1 %v5598_v35  ;;  %2019 = vmatpush.bf16.msra.mxu3 %v5430_v54  ;;  %v5514_v35 = vor.u32 %v7036_v15, %v5511_v16  ;;  %v7024_v54 = vld [vmem:[%s9117_s9 + $0x14c] sm:$0xf]  ;;  %v5639_v16 = vld [vmem:[%s9117_s9 + $0xb8] sm:$0xf0] }
 0x50b   : > { %v7004_v15 = vld [vmem:[%s9117_s9 + $0xac] sm:$0xf] }
 0x50d   : > { %2005 = vmatpush.bf16.msra.mxu2 %v5442_v43  ;;  %v5621_v43 = vld [vmem:[%s9117_s9 + $0x88] sm:$0xf] }
 0x50e   : > { %v1700_v39 = vpop.f32.mrf.mxu2  ;;  %2224 = vmatpush.bf16.msrb.mxu3 %v5670_v21  ;;  %v5623_v21 = vld [vmem:[%s9117_s9 + $0x98] sm:$0xf0] }
 0x50f   : > { %v6993_v39 = vld [vmem:[%s9117_s9 + $0x4c] sm:$0xf0]  ;;  %v5626_v22 = vor.u32 %v7000_v20, %v5623_v21  ;;  %v5790_v20 = vld [vmem:[%s9117_s9 + $0x2a0] sm:$0xf] }
 0x510   : > { %v5582_v40 = vor.u32 %v6993_v39, %v5581_v38  ;;  %v5495_v38 = vld [vmem:[%s9117_s9 + $0x198] sm:$0xf0]  ;;  %v5634_v39 = vor.u32 %v7003_v31, %v5631_v32  ;;  %v6987_v31 = vld [vmem:[%s9117_s9 + $0x24] sm:$0xf]  ;;  %v5567_v32 = vld [vmem:[%s9117_s9 + $0x30] sm:$0xf0] }
 0x511   : > { %2006 = vmatpush.bf16.msra.mxu2 %v5426_v52  ;;  %v5498_v42 = vor.u32 %v7032_v37, %v5495_v38  ;;  %v5605_v52 = vld [vmem:[%s9117_s9 + $0x68] sm:$0xf]  ;;  %v6988_v37 = vld [vmem:[%s9117_s9 + $0x2c] sm:$0xf]  ;;  %v5575_v38 = vld [vmem:[%s9117_s9 + $0x38] sm:$0xf0] }
 0x512   : > { %2203 = vmatpush.bf16.msrb.mxu1 %v5582_v40  ;;  %2225 = vmatpush.bf16.msrb.mxu3 %v5654_v29  ;;  %v7069_v21 = vld [vmem:[%s9117_s9 + $0x2ac] sm:$0xf0] }
 0x515   : > { %2211 = vmatpush.bf16.msrb.mxu2 %v5666_v19  ;;  %v5642_v19 = vor.u32 %v7004_v15, %v5639_v16 }
 0x516   : > { %2204 = vmatpush.bf16.msrb.mxu1 %v5566_v48  ;;  %v5622_v48 = vor.u32 %v7002_v44, %v5621_v43  ;;  %v5554_v43 = vor.u32 %v6983_v57, %v5551_v41  ;;  %v6986_v44 = vld [vmem:[%s9117_s9 + $0x14] sm:$0xf0]  ;;  %v7063_v57 = vld [vmem:[%s9117_s9 + $0x284] sm:$0xf] }
 0x519   : > { %2212 = vmatpush.bf16.msrb.mxu2 %v5650_v25  ;;  %v6992_v25 = vld [vmem:[%s9117_s9 + $0x4c] sm:$0xf] }
 0x51a   : > { %2205 = vmatpush.bf16.msrb.mxu1 %v5550_v58  ;;  %v5606_v58 = vor.u32 %v6998_v53, %v5605_v52  ;;  %v5594_v29 = vor.u32 %v6992_v25, %v5591_v27  ;;  %v5798_v25 = vld [vmem:[%s9117_s9 + $0x2a8] sm:$0xf]  ;;  %v5791_v27 = vor.u32 %v7069_v21, %v5790_v20  ;;  %v5728_v20 = vld [vmem:[%s9117_s9 + $0x230] sm:$0xf0] }
 0x51b   : > { %v5734_v21 = vld [vmem:[%s9117_s9 + $0x228] sm:$0xf] }
 0x51d   : > { %2213 = vmatpush.bf16.msrb.mxu2 %v5634_v39 }
 0x521   : > { %2214 = vmatpush.bf16.msrb.mxu2 %v5618_v47 }
 0x525   : > { %2215 = vmatpush.bf16.msrb.mxu2 %v5602_v56  ;;  %v7077_v56 = vld [vmem:[%s9117_s9 + $0x2ec] sm:$0xf0] }
 0x576   : > { %v1685_v59 = vpop.f32.mrf.mxu1 }
 0x577   : > { %v1686_v30 = vadd.f32 %v1685_v59, %v7824_v10  ;;  %v6991_v59 = vld [vmem:[%s9117_s9 + $0x44] sm:$0xf] }
 0x57e   : > { %v1687_v28 = vpop.f32.mrf.mxu1 }
 0x57f   : > { %v5583_v28 = vld [vmem:[%s9117_s9 + $0x50] sm:$0xf0] }
 0x580   : > { %v5586_v0 = vor.u32 %v6991_v59, %v5583_v28  ;;  %v5824_v28 = vld [vmem:[%s9117_s9 + $0x2f0] sm:$0xf0] }
 0x582   : > { %2216 = vmatpush.bf16.msrb.mxu2 %v5586_v0  ;;  %v5832_v0 = vld [vmem:[%s9117_s9 + $0x2f8] sm:$0xf0] }
 0x58c   : > { %v1732_v61 = vpop.f32.mrf.mxu3 }
 0x58d   : > { %v1736_v62 = vadd.f32 %v1732_v61, %v1686_v30  ;;  %v5466_v30 = vor.u32 %v7024_v54, %v5463_v55  ;;  %v6994_v61 = vld [vmem:[%s9117_s9 + $0x54] sm:$0xf0]  ;;  %v5822_v55 = vld [vmem:[%s9117_s9 + $0x2e0] sm:$0xf] }
 0x58e   : > { %v5823_v59 = vor.u32 %v7077_v56, %v5822_v55  ;;  %v5760_v56 = vld [vmem:[%s9117_s9 + $0x270] sm:$0xf0] }
 0x58f   : > { %v1741_v63 = vadd.f32 %v7282_v60, %v1736_v62  ;;  %v5589_v60 = vld [vmem:[%s9117_s9 + $0x48] sm:$0xf]  ;;  %v7020_v62 = vld [vmem:[%s9117_s9 + $0x12c] sm:$0xf] }
 0x590   : > { %v5590_v1 = vor.u32 %v6994_v61, %v5589_v60  ;;  %v7078_v60 = vld [vmem:[%s9117_s9 + $0x2f4] sm:$0xf0] }
 0x591   : > { %v1742_v2 = vmax.f32 %v1741_v63, 0.0  ;;  %v5447_v63 = vld [vmem:[%s9117_s9 + $0x138] sm:$0xf0] }
 0x593   : > { %v8018_v3 = vpack.c.bf16 %v1742_v2, %v1742_v2  ;;  %v5450_v2 = vor.u32 %v7020_v62, %v5447_v63  ;;  %v7076_v63 = vld [vmem:[%s9117_s9 + $0x2ec] sm:$0xf] }
 0x594   : > { %v1734_v10 = vpop.f32.mrf.mxu3 }
 0x595   : > { %1994 = vmatmul.bf16.vlgmr.msra.gmra.mxu1 %v8018_v3  ;;  %2007 = vmatmul.bf16.vlgmr.msra.gmra.mxu2 %v8018_v3  ;;  %v1745_v9 = vsel %vm1328_vm9, %v8018_v3, 0  ;;  %v5431_v10 = vld [vmem:[%s9117_s9 + $0x118] sm:$0xf0] }
 0x596   : > { %2020 = vmatmul.bf16.vlgmr.msra.gmra.mxu3 %v8018_v3  ;;  %1754 = vmatpush.bf16.msrb.mxu0 %v1745_v9 }
 0x597   : > { %2257 = vmatpush.bf16.msra.mxu1 %v1745_v9 }
 0x599   : > { %5386 = vmatmul.msk.bf16.vlgmr.msrb.gmra.mxu0 %vm1324_vm10, %v7750_v33  ;;  %v5637_v33 = vld [vmem:[%s9117_s9 + $0xa8] sm:$0xf] }
 0x59a   : > { %2025 = vmatpush.bf16.msra.mxu0 %v5546_v4  ;;  %v5638_v40 = vor.u32 %v7006_v36, %v5637_v33  ;;  %v7016_v4 = vld [vmem:[%s9117_s9 + $0x10c] sm:$0xf]  ;;  %v5570_v33 = vor.u32 %v6987_v31, %v5567_v32  ;;  %v6990_v36 = vld [vmem:[%s9117_s9 + $0x34] sm:$0xf0]  ;;  %v5800_v32 = vld [vmem:[%s9117_s9 + $0x2b8] sm:$0xf0] }
 0x59b   : > { %v5434_v9 = vor.u32 %v7016_v4, %v5431_v10  ;;  %v5835_v4 = vor.u32 %v7076_v63, %v5832_v0  ;;  %v7073_v10 = vld [vmem:[%s9117_s9 + $0x2cc] sm:$0xf0]  ;;  %v7068_v31 = vld [vmem:[%s9117_s9 + $0x2ac] sm:$0xf]  ;;  %v5742_v63 = vld [vmem:[%s9117_s9 + $0x240] sm:$0xf] }
 0x59c   : > { %2226 = vmatpush.bf16.msrb.mxu3 %v5638_v40  ;;  %v5578_v40 = vor.u32 %v6988_v37, %v5575_v38  ;;  %2217 = vmatpush.bf16.msrb.mxu2 %v5570_v33  ;;  %v7057_v0 = vld [vmem:[%s9117_s9 + $0x24c] sm:$0xf0] }
 0x59e   : > { %2026 = vmatpush.bf16.msra.mxu0 %v5530_v14  ;;  %v5658_v14 = vor.u32 %v7008_v12, %v5655_v13  ;;  %v5814_v12 = vld [vmem:[%s9117_s9 + $0x2c8] sm:$0xf]  ;;  %v7074_v13 = vld [vmem:[%s9117_s9 + $0x2d4] sm:$0xf0] }
 0x59f   : > { %v5815_v16 = vor.u32 %v7074_v13, %v5814_v12  ;;  %v5752_v12 = vld [vmem:[%s9117_s9 + $0x258] sm:$0xf0] }
 0x5a0   : > { %2227 = vmatpush.bf16.msrb.mxu3 %v5622_v48  ;;  %v5562_v48 = vor.u32 %v6984_v45, %v5559_v46  ;;  %2218 = vmatpush.bf16.msrb.mxu2 %v5554_v43  ;;  %v7066_v43 = vld [vmem:[%s9117_s9 + $0x294] sm:$0xf0]  ;;  %v7064_v46 = vld [vmem:[%s9117_s9 + $0x28c] sm:$0xf] }
 0x5a2   : > { %2027 = vmatpush.bf16.msra.mxu0 %v5514_v35  ;;  %v5573_v35 = vld [vmem:[%s9117_s9 + $0x28] sm:$0xf] }
 0x5a3   : > { %v5574_v39 = vor.u32 %v6990_v36, %v5573_v35  ;;  %v5803_v36 = vor.u32 %v7068_v31, %v5800_v32  ;;  %v7049_v31 = vld [vmem:[%s9117_s9 + $0x20c] sm:$0xf0]  ;;  %v7047_v32 = vld [vmem:[%s9117_s9 + $0x204] sm:$0xf] }
 0x5a4   : > { %2228 = vmatpush.bf16.msrb.mxu3 %v5606_v58  ;;  %v7075_v58 = vld [vmem:[%s9117_s9 + $0x2e4] sm:$0xf]  ;;  %2457 = vmatpush.bf16.msra.mxu2 %v5823_v59  ;;  %v7062_v59 = vld [vmem:[%s9117_s9 + $0x274] sm:$0xf0] }
 0x5a5   : > { %v5827_v61 = vor.u32 %v7075_v58, %v5824_v28  ;;  %v5766_v58 = vld [vmem:[%s9117_s9 + $0x268] sm:$0xf] }
 0x5a6   : > { %2028 = vmatpush.bf16.msra.mxu0 %v5498_v42  ;;  %v5557_v42 = vld [vmem:[%s9117_s9 + $0x8] sm:$0xf] }
 0x5a7   : > { %v5558_v47 = vor.u32 %v6986_v44, %v5557_v42  ;;  %v5782_v42 = vld [vmem:[%s9117_s9 + $0x288] sm:$0xf] }
 0x5a8   : > { %2229 = vmatpush.bf16.msrb.mxu3 %v5590_v1  ;;  %v5806_v1 = vld [vmem:[%s9117_s9 + $0x2c0] sm:$0xf]  ;;  %v5783_v45 = vor.u32 %v7066_v43, %v5782_v42 }
 0x5aa   : > { %2029 = vmatpush.bf16.msra.mxu0 %v5482_v51 }
 0x5ac   : > { %2230 = vmatpush.bf16.msrb.mxu3 %v5574_v39  ;;  %v5774_v39 = vld [vmem:[%s9117_s9 + $0x280] sm:$0xf] }
 0x5ae   : > { %2030 = vmatpush.bf16.msra.mxu0 %v5466_v30  ;;  %v5830_v30 = vld [vmem:[%s9117_s9 + $0x2e8] sm:$0xf] }
 0x5af   : > { %v5831_v62 = vor.u32 %v7078_v60, %v5830_v30  ;;  %v5767_v30 = vor.u32 %v7062_v59, %v5766_v58  ;;  %v7060_v60 = vld [vmem:[%s9117_s9 + $0x26c] sm:$0xf] }
 0x5b0   : > { %2231 = vmatpush.bf16.msrb.mxu3 %v5558_v47  ;;  %v5784_v47 = vld [vmem:[%s9117_s9 + $0x298] sm:$0xf0] }
 0x5b2   : > { %2031 = vmatpush.bf16.msra.mxu0 %v5450_v2 }
 0x5b4   : > { %2470 = vmatpush.bf16.msra.mxu3 %v5827_v61  ;;  %v5768_v61 = vld [vmem:[%s9117_s9 + $0x278] sm:$0xf0] }
 0x5b6   : > { %2032 = vmatpush.bf16.msra.mxu0 %v5434_v9  ;;  %v5807_v9 = vor.u32 %v7073_v10, %v5806_v1  ;;  %v7055_v1 = vld [vmem:[%s9117_s9 + $0x244] sm:$0xf]  ;;  %v5750_v10 = vld [vmem:[%s9117_s9 + $0x248] sm:$0xf] }
 0x5b8   : > { %2458 = vmatpush.bf16.msra.mxu2 %v5807_v9 }
 0x5b9   : > { %2033 = vmatmul.bf16.vlgmr.msra.gmra.mxu0 %v8018_v3  ;;  %v5607_v3 = vld [vmem:[%s9117_s9 + $0x78] sm:$0xf0] }
 0x5ba   : > { %2237 = vmatpush.bf16.msrb.mxu0 %v5674_v11  ;;  %v5610_v24 = vor.u32 %v6996_v23, %v5607_v3  ;;  %v5811_v11 = vor.u32 %v7071_v7, %v5808_v8  ;;  %v7067_v3 = vld [vmem:[%s9117_s9 + $0x2a4] sm:$0xf]  ;;  %v7058_v7 = vld [vmem:[%s9117_s9 + $0x254] sm:$0xf0] }
 0x5bb   : > { %v5751_v9 = vor.u32 %v7058_v7, %v5750_v10 }
 0x5bc   : > { %2471 = vmatpush.bf16.msra.mxu3 %v5811_v11  ;;  %2459 = vmatpush.bf16.msra.mxu2 %v5791_v27  ;;  %v7056_v11 = vld [vmem:[%s9117_s9 + $0x24c] sm:$0xf] }
 0x5bd   : > { %v5755_v13 = vor.u32 %v7056_v11, %v5752_v12 }
 0x5be   : > { %2238 = vmatpush.bf16.msrb.mxu0 %v5658_v14  ;;  %v7072_v14 = vld [vmem:[%s9117_s9 + $0x2cc] sm:$0xf] }
 0x5c2   : > { %2239 = vmatpush.bf16.msrb.mxu0 %v5642_v19  ;;  %v5816_v19 = vld [vmem:[%s9117_s9 + $0x2d8] sm:$0xf0] }
 0x5c3   : > { %v5819_v23 = vor.u32 %v7072_v14, %v5816_v19  ;;  %v5726_v14 = vld [vmem:[%s9117_s9 + $0x220] sm:$0xf] }
 0x5c6   : > { %2240 = vmatpush.bf16.msrb.mxu0 %v5626_v22 }
 0x5ca   : > { %2241 = vmatpush.bf16.msrb.mxu0 %v5610_v24  ;;  %v5792_v24 = vld [vmem:[%s9117_s9 + $0x2b0] sm:$0xf0] }
 0x5cb   : > { %v5795_v35 = vor.u32 %v7067_v3, %v5792_v24  ;;  %v7052_v24 = vld [vmem:[%s9117_s9 + $0x22c] sm:$0xf] }
 0x5cd   : > { %2472 = vmatpush.bf16.msra.mxu3 %v5795_v35 }
 0x5ce   : > { %2242 = vmatpush.bf16.msrb.mxu0 %v5594_v29  ;;  %v7070_v29 = vld [vmem:[%s9117_s9 + $0x2b4] sm:$0xf0] }
 0x5cf   : > { %v5799_v33 = vor.u32 %v7070_v29, %v5798_v25  ;;  %v5736_v25 = vld [vmem:[%s9117_s9 + $0x238] sm:$0xf0]  ;;  %v5710_v29 = vld [vmem:[%s9117_s9 + $0x200] sm:$0xf] }
 0x5d0   : > { %v5739_v27 = vor.u32 %v7052_v24, %v5736_v25  ;;  %v5711_v35 = vor.u32 %v7049_v31, %v5710_v29  ;;  %v7134_v24 = vld [vmem:[%s9120_s12 + $0xb8] sm:$0xff] }
 0x5d1   : > { %v7142_v25 = vld [vmem:[%s9120_s12 + $0xf8] sm:$0xff] }
 0x5d2   : > { %2243 = vmatpush.bf16.msrb.mxu0 %v5578_v40  ;;  %v7065_v40 = vld [vmem:[%s9117_s9 + $0x28c] sm:$0xf0] }
 0x5d3   : > { %v5775_v41 = vor.u32 %v7065_v40, %v5774_v39 }
 0x5d5   : > { %2460 = vmatpush.bf16.msra.mxu2 %v5775_v41  ;;  %v5720_v41 = vld [vmem:[%s9117_s9 + $0x218] sm:$0xf0] }
 0x5d6   : > { %2244 = vmatpush.bf16.msrb.mxu0 %v5562_v48  ;;  %v5787_v48 = vor.u32 %v7064_v46, %v5784_v47 }
 0x5da   : > { %2483 = vmatpush.bf16.msra.mxu0 %v5831_v62  ;;  %v5771_v62 = vor.u32 %v7060_v60, %v5768_v61  ;;  %v8422_v60 = vmul.u32 2, %v7396_v6 }
 0x5dc   : > { %vm2536_vm12 = vcmp.eq.s32.totalorder %v7729_v17, %v8422_v60  ;;  %vm3289_vm14 = vcmp.eq.s32.totalorder %v7394_v5, %v8422_v60  ;;  %vm4033_vm0 = vcmp.eq.s32.totalorder %v7732_v18, %v8422_v60 }
 0x5de   : > { %2484 = vmatpush.bf16.msra.mxu0 %v5815_v16  ;;  %v7051_v16 = vld [vmem:[%s9117_s9 + $0x224] sm:$0xf] }
 0x5e2   : > { %2485 = vmatpush.bf16.msra.mxu0 %v5799_v33  ;;  %v5712_v33 = vld [vmem:[%s9117_s9 + $0x210] sm:$0xf0] }
 0x5e3   : > { %v5715_v39 = vor.u32 %v7047_v32, %v5712_v33 }
 0x5e6   : > { %2486 = vmatpush.bf16.msra.mxu0 %v5783_v45 }
 0x5ea   : > { %2487 = vmatpush.bf16.msra.mxu0 %v5767_v30 }
 0x5ee   : > { %2488 = vmatpush.bf16.msra.mxu0 %v5751_v9 }
 0x612   : > { %v8214_v49 = vpop.f32.mrf.mxu1 }
 0x616   : > { %v1756_v50 = vpop.f32.mrf.mxu0 }
 0x617   : > { %v1760_v51 = vpack.c.bf16 %v1756_v50, %v1756_v50  ;;  %v5758_v50 = vld [vmem:[%s9117_s9 + $0x260] sm:$0xf] }
 0x618   : > { %v8216_v52 = vpop.f32.mrf.mxu2 }
 0x619   : > { %v8218_v53 = vpop.f32.mrf.mxu3  ;;  %2206 = vmatmul.bf16.vlgmr.msrb.gmra.mxu1 %v1760_v51  ;;  %2219 = vmatmul.bf16.vlgmr.msrb.gmra.mxu2 %v1760_v51 }
 0x61a   : > { %2232 = vmatmul.bf16.vlgmr.msrb.gmra.mxu3 %v1760_v51  ;;  %2245 = vmatmul.bf16.vlgmr.msrb.gmra.mxu0 %v1760_v51  ;;  %v1997_v54 = vpop.f32.mrf.mxu1  ;;  %v7061_v51 = vld [vmem:[%s9117_s9 + $0x26c] sm:$0xf0] }
 0x61b   : > { %2496 = vmatpush.bf16.msrb.mxu1 %v5835_v4  ;;  %v7059_v54 = vld [vmem:[%s9117_s9 + $0x264] sm:$0xf]  ;;  %v5759_v55 = vor.u32 %v7061_v51, %v5758_v50  ;;  %v5744_v4 = vld [vmem:[%s9117_s9 + $0x250] sm:$0xf0] }
 0x61c   : > { %v5763_v28 = vor.u32 %v7059_v54, %v5760_v56  ;;  %v5747_v8 = vor.u32 %v7055_v1, %v5744_v4  ;;  %v2513_v56 = vld [vmem:[%s9118_s10] sm:$0xf] }
 0x61d   : > { %2461 = vmatpush.bf16.msra.mxu2 %v5759_v55  ;;  %v2518_v30 = vperm.slane %v2513_v56, 3  ;;  %v2515_v10 = vperm.slane %v2513_v56, 0 }
 0x61e   : > { %v1758_v2 = vpop.f32.mrf.mxu0 }
 0x61f   : > { %2497 = vmatpush.bf16.msrb.mxu1 %v5819_v23  ;;  %v5743_v2 = vor.u32 %v7057_v0, %v5742_v63  ;;  %v5731_v23 = vor.u32 %v7051_v16, %v5728_v20 }
 0x620   : > { %v2010_v15 = vpop.f32.mrf.mxu2 }
 0x621   : > { %v2023_v22 = vpop.f32.mrf.mxu3  ;;  %2462 = vmatpush.bf16.msra.mxu2 %v5743_v2  ;;  %v7053_v15 = vld [vmem:[%s9117_s9 + $0x22c] sm:$0xf0] }
 0x622   : > { %v5727_v19 = vor.u32 %v7053_v15, %v5726_v14  ;;  %v7054_v22 = vld [vmem:[%s9117_s9 + $0x234] sm:$0xf0] }
 0x623   : > { %2498 = vmatpush.bf16.msrb.mxu1 %v5803_v36  ;;  %v5735_v3 = vor.u32 %v7054_v22, %v5734_v21  ;;  %v5718_v36 = vld [vmem:[%s9117_s9 + $0x208] sm:$0xf] }
 0x625   : > { %2463 = vmatpush.bf16.msra.mxu2 %v5727_v19  ;;  %2489 = vmatpush.bf16.msra.mxu0 %v5735_v3 }
 0x627   : > { %2499 = vmatpush.bf16.msrb.mxu1 %v5787_v48 }
 0x629   : > { %5675 = vmatmul.msk.bf16.vlgmr.msra.gmra.mxu1 %vm1324_vm10, %v7752_v34  ;;  %v5776_v34 = vld [vmem:[%s9117_s9 + $0x290] sm:$0xf0]  ;;  %2464 = vmatpush.bf16.msra.mxu2 %v5711_v35 }
 0x62a   : > { %v5779_v44 = vor.u32 %v7063_v57, %v5776_v34  ;;  %v7048_v57 = vld [vmem:[%s9117_s9 + $0x20c] sm:$0xf] }
 0x62b   : > { %2500 = vmatpush.bf16.msrb.mxu1 %v5771_v62  ;;  %v5723_v34 = vor.u32 %v7048_v57, %v5720_v41  ;;  %v7126_v57 = vld [vmem:[%s9120_s12 + $0x78] sm:$0xff]  ;;  %v7132_v41 = vld [vmem:[%s9120_s12 + $0xa8] sm:$0xff] }
 0x62c   : > { %2473 = vmatpush.bf16.msra.mxu3 %v5779_v44 }
 0x62f   : > { %2501 = vmatpush.bf16.msrb.mxu1 %v5755_v13  ;;  %v2537_v13 = vsel %vm2536_vm12, 1.0, %v7296_v26 }
 0x630   : > { %2474 = vmatpush.bf16.msra.mxu3 %v5763_v28  ;;  %v2517_v28 = vperm.slane %v2513_v56, 2  ;;  %v2538_v22 = vpack.c.bf16 %v2537_v13, %v2537_v13  ;;  %v7094_v13 = vld [vmem:[%s9119_s11 + $0x78] sm:$0xff] }
 0x633   : > { %2502 = vmatpush.bf16.msrb.mxu1 %v5739_v27 }
 0x634   : > { %2475 = vmatpush.bf16.msra.mxu3 %v5747_v8 }
 0x636   : > { %v8294_v37 = vpop.f32.mrf.mxu0 }
 0x637   : > { %2503 = vmatpush.bf16.msrb.mxu1 %v5723_v34  ;;  %v7140_v34 = vld [vmem:[%s9120_s12 + $0xe8] sm:$0xff] }
 0x638   : > { %2476 = vmatpush.bf16.msra.mxu3 %v5731_v23 }
 0x63c   : > { %2477 = vmatpush.bf16.msra.mxu3 %v5715_v39  ;;  %v7141_v39 = vld [vmem:[%s9120_s12 + $0xf0] sm:$0xff] }
 0x63e   : > { %v2036_v38 = vpop.f32.mrf.mxu0 }
 0x63f   : > { %v7050_v38 = vld [vmem:[%s9117_s9 + $0x214] sm:$0xf0] }
 0x640   : > { %v5719_v40 = vor.u32 %v7050_v38, %v5718_v36  ;;  %v8456_v36 = vadd.s32 1, %v8422_v60  ;;  %v7133_v38 = vld [vmem:[%s9120_s12 + $0xb0] sm:$0xff]  ;;  %v7230_v60 = vld [vmem:[%s9119_s11 + $0x2b8] sm:$0xff] }
 0x642   : > { %2490 = vmatpush.bf16.msra.mxu0 %v5719_v40  ;;  %v7118_v40 = vld [vmem:[%s9120_s12 + $0x38] sm:$0xff]  ;;  %vm2611_vm13 = vcmp.eq.s32.totalorder %v7729_v17, %v8456_v36  ;;  %v7125_v17 = vld [vmem:[%s9120_s12 + $0x70] sm:$0xff]  ;;  %vm3351_vm15 = vcmp.eq.s32.totalorder %v7394_v5, %v8456_v36  ;;  %v7171_v5 = vld [vmem:[%s9119_s11 + $0x1e0] sm:$0xff]  ;;  %vm4095_vm1 = vcmp.eq.s32.totalorder %v7732_v18, %v8456_v36 }
 0x643   : > { %v7221_v18 = vld [vmem:[%s9119_s11 + $0x270] sm:$0xff]  ;;  %v7220_v36 = vld [vmem:[%s9119_s11 + $0x268] sm:$0xff] }
 0x696   : > { %v2207_v42 = vpop.f32.mrf.mxu1 }
 0x697   : > { %v2246_v43 = vpop.f32.mrf.mxu0  ;;  %v2208_v4 = vadd.f32 %v2207_v42, %v8214_v49  ;;  %v7117_v42 = vld [vmem:[%s9120_s12 + $0x30] sm:$0xff] }
 0x698   : > { %v2247_v58 = vadd.f32 %v2246_v43, %v8294_v37  ;;  %v2612_v43 = vsel %vm2611_vm13, 1.0, %v7296_v26 }
 0x69c   : > { %v2220_v44 = vpop.f32.mrf.mxu2 }
 0x69d   : > { %v2233_v45 = vpop.f32.mrf.mxu3  ;;  %v2221_v37 = vadd.f32 %v2220_v44, %v8216_v52  ;;  %v7131_v44 = vld [vmem:[%s9120_s12 + $0xa0] sm:$0xff] }
 0x69e   : > { %v2209_v46 = vpop.f32.mrf.mxu1  ;;  %v2234_v59 = vadd.f32 %v2233_v45, %v8218_v53  ;;  %v2516_v53 = vperm.slane %v2513_v56, 1  ;;  %v7139_v45 = vld [vmem:[%s9120_s12 + $0xe0] sm:$0xff]  ;;  %v7129_v56 = vld [vmem:[%s9120_s12 + $0x90] sm:$0xff] }
 0x69f   : > { %v2248_v47 = vpop.f32.mrf.mxu0  ;;  %v7116_v46 = vld [vmem:[%s9120_s12 + $0x28] sm:$0xff] }
 0x6a0   : > { %v7124_v47 = vld [vmem:[%s9120_s12 + $0x68] sm:$0xff] }
 0x6a4   : > { %v2222_v48 = vpop.f32.mrf.mxu2 }
 0x6a5   : > { %v2235_v50 = vpop.f32.mrf.mxu3  ;;  %v2613_v48 = vpack.c.bf16 %v2612_v43, %v2612_v43  ;;  %v7087_v43 = vld [vmem:[%s9119_s11 + $0x40] sm:$0xff] }
 0x6a6   : > { %v2259_v51 = vpop.f32.mrf.mxu1  ;;  %v7130_v50 = vld [vmem:[%s9120_s12 + $0x98] sm:$0xff] }
 0x6a7   : > { %v2263_v54 = vpack.c.bf16 %v2259_v51, %v2259_v51  ;;  %v7138_v51 = vld [vmem:[%s9120_s12 + $0xd8] sm:$0xff] }
 0x6a9   : > { %2465 = vmatmul.bf16.vlgmr.msra.gmra.mxu2 %v2263_v54  ;;  %2478 = vmatmul.bf16.vlgmr.msra.gmra.mxu3 %v2263_v54 }
 0x6aa   : > { %2491 = vmatmul.bf16.vlgmr.msra.gmra.mxu0 %v2263_v54  ;;  %2504 = vmatmul.bf16.vlgmr.msrb.gmra.mxu1 %v2263_v54  ;;  %v7115_v54 = vld [vmem:[%s9120_s12 + $0x20] sm:$0xff] }
 0x6ae   : > { %v2261_v55 = vpop.f32.mrf.mxu1 }
 0x6af   : > { %v7123_v55 = vld [vmem:[%s9120_s12 + $0x60] sm:$0xff] }
 0x727   : > { %v2492_v61 = vpop.f32.mrf.mxu0  ;;  %v2505_v62 = vpop.f32.mrf.mxu1 }
 0x728   : > { %v2511_v63 = vadd.f32 %v2492_v61, %v2234_v59  ;;  %v2512_v0 = vadd.f32 %v2505_v62, %v2247_v58  ;;  %v7137_v58 = vld [vmem:[%s9120_s12 + $0xd0] sm:$0xff]  ;;  %v7114_v59 = vld [vmem:[%s9120_s12 + $0x18] sm:$0xff]  ;;  %v7136_v61 = vld [vmem:[%s9120_s12 + $0xc8] sm:$0xff] }
 0x729   : > { %v7113_v62 = vld [vmem:[%s9120_s12 + $0x10] sm:$0xff] }
 0x72a   : > { %v2525_v1 = vadd.f32 %v2517_v28, %v2511_v63  ;;  %v2526_v2 = vadd.f32 %v2518_v30, %v2512_v0  ;;  %v7122_v28 = vld [vmem:[%s9120_s12 + $0x58] sm:$0xff]  ;;  %v7128_v30 = vld [vmem:[%s9120_s12 + $0x88] sm:$0xff]  ;;  %v7121_v63 = vld [vmem:[%s9120_s12 + $0x50] sm:$0xff] }
 0x72b   : > { %v7127_v0 = vld [vmem:[%s9120_s12 + $0x80] sm:$0xff] }
 0x72c   : > { %v2529_v7 = vmax.f32 %v2525_v1, 0.0  ;;  %v2530_v8 = vmax.f32 %v2526_v2, 0.0  ;;  %v2466_v9 = vpop.f32.mrf.mxu2  ;;  %v2479_v6 = vpop.f32.mrf.mxu3  ;;  %v7135_v1 = vld [vmem:[%s9120_s12 + $0xc0] sm:$0xff]  ;;  %v7102_v2 = vld [vmem:[%s9119_s11 + $0xb8] sm:$0xff] }
 0x72d   : > { %v2509_v11 = vadd.f32 %v2466_v9, %v2208_v4  ;;  %v2510_v12 = vadd.f32 %v2479_v6, %v2221_v37  ;;  %v7110_v4 = vld [vmem:[%s9119_s11 + $0xf8] sm:$0xff]  ;;  %v7112_v37 = vld [vmem:[%s9120_s12 + $0x8] sm:$0xff]  ;;  %v7111_v6 = vld [vmem:[%s9120_s12] sm:$0xff] }
 0x72e   : > { %v2533_v14 = vpack.c.bf16 %v2529_v7, %v2529_v7  ;;  %v2534_v15 = vpack.c.bf16 %v2530_v8, %v2530_v8  ;;  %v7109_v7 = vld [vmem:[%s9119_s11 + $0xf0] sm:$0xff]  ;;  %v7100_v8 = vld [vmem:[%s9119_s11 + $0xa8] sm:$0xff] }
 0x72f   : > { %v2523_v16 = vadd.f32 %v2515_v10, %v2509_v11  ;;  %v2524_v19 = vadd.f32 %v2516_v53, %v2510_v12  ;;  %v2494_v20 = vpop.f32.mrf.mxu0  ;;  %v2507_v21 = vpop.f32.mrf.mxu1  ;;  %v7120_v10 = vld [vmem:[%s9120_s12 + $0x48] sm:$0xff]  ;;  %v7101_v53 = vld [vmem:[%s9119_s11 + $0xb0] sm:$0xff]  ;;  %v7119_v11 = vld [vmem:[%s9120_s12 + $0x40] sm:$0xff] }
 0x730   : > { %v8430_v49 = vsel %vm1328_vm9, %v2533_v14, 0  ;;  %v8433_v52 = vsel %vm1328_vm9, %v2534_v15, 0  ;;  %v7108_v9 = vld [vmem:[%s9119_s11 + $0xe8] sm:$0xff]  ;;  %v7086_v12 = vld [vmem:[%s9119_s11 + $0x38] sm:$0xff]  ;;  %v7099_v14 = vld [vmem:[%s9119_s11 + $0xa0] sm:$0xff] }
 0x731   : > { %v2527_v23 = vmax.f32 %v2523_v16, 0.0  ;;  %v2528_v3 = vmax.f32 %v2524_v19, 0.0  ;;  %2587 = vmatpush.bf16.msrb.mxu0 %v8430_v49  ;;  %2600 = vmatpush.bf16.msra.mxu1 %v8433_v52  ;;  %v7107_v15 = vld [vmem:[%s9119_s11 + $0xe0] sm:$0xff]  ;;  %v7085_v16 = vld [vmem:[%s9119_s11 + $0x30] sm:$0xff]  ;;  %v7098_v20 = vld [vmem:[%s9119_s11 + $0x98] sm:$0xff] }
 0x732   : > { %v7093_v19 = vld [vmem:[%s9119_s11 + $0x70] sm:$0xff]  ;;  %v7106_v21 = vld [vmem:[%s9119_s11 + $0xd8] sm:$0xff] }
 0x733   : > { %v2531_v27 = vpack.c.bf16 %v2527_v23, %v2527_v23  ;;  %v2532_v29 = vpack.c.bf16 %v2528_v3, %v2528_v3  ;;  %v7092_v23 = vld [vmem:[%s9119_s11 + $0x68] sm:$0xff]  ;;  %v7097_v3 = vld [vmem:[%s9119_s11 + $0x90] sm:$0xff] }
 0x734   : > { %5838 = vmatmul.msk.bf16.vlgmr.msrb.gmra.mxu0 %vm1324_vm10, %v2538_v22  ;;  %5839 = vmatmul.msk.bf16.vlgmr.msra.gmra.mxu1 %vm1324_vm10, %v2538_v22  ;;  %v2468_v31 = vpop.f32.mrf.mxu2  ;;  %v2481_v32 = vpop.f32.mrf.mxu3 }
 0x735   : > { %2650 = vmatpush.bf16.msra.mxu0 %v8430_v49  ;;  %2663 = vmatpush.bf16.msrb.mxu1 %v8433_v52  ;;  %v8448_v35 = vsel %vm1328_vm9, %v2531_v27, 0  ;;  %v8451_v33 = vsel %vm1328_vm9, %v2532_v29, 0  ;;  %v7091_v27 = vld [vmem:[%s9119_s11 + $0x60] sm:$0xff]  ;;  %v7096_v29 = vld [vmem:[%s9119_s11 + $0x88] sm:$0xff]  ;;  %v7082_v32 = vld [vmem:[%s9119_s11 + $0x18] sm:$0xff] }
 0x736   : > { %2561 = vmatpush.bf16.msrb.mxu2 %v8448_v35  ;;  %2574 = vmatpush.bf16.msrb.mxu3 %v8451_v33  ;;  %v7104_v31 = vld [vmem:[%s9119_s11 + $0xc8] sm:$0xff] }
 0x739   : > { %3019 = vmatpush.bf16.msrb.mxu0 %v7134_v24  ;;  %3032 = vmatpush.bf16.msra.mxu1 %v7142_v25  ;;  %v7105_v24 = vld [vmem:[%s9119_s11 + $0xd0] sm:$0xff]  ;;  %v7083_v25 = vld [vmem:[%s9119_s11 + $0x20] sm:$0xff] }
 0x73a   : > { %2624 = vmatpush.bf16.msra.mxu2 %v8448_v35  ;;  %2637 = vmatpush.bf16.msra.mxu3 %v8451_v33 }
 0x73b   : > { %5836 = vmatmul.msk.bf16.vlgmr.msrb.gmra.mxu2 %vm1324_vm10, %v2538_v22  ;;  %5837 = vmatmul.msk.bf16.vlgmr.msrb.gmra.mxu3 %vm1324_vm10, %v2538_v22  ;;  %v7084_v22 = vld [vmem:[%s9119_s11 + $0x28] sm:$0xff] }
 0x73d   : > { %3020 = vmatpush.bf16.msrb.mxu0 %v7133_v38  ;;  %3033 = vmatpush.bf16.msra.mxu1 %v7141_v39  ;;  %v7090_v38 = vld [vmem:[%s9119_s11 + $0x58] sm:$0xff]  ;;  %v7095_v39 = vld [vmem:[%s9119_s11 + $0x80] sm:$0xff] }
 0x73e   : > { %2993 = vmatpush.bf16.msrb.mxu2 %v7118_v40  ;;  %3006 = vmatpush.bf16.msrb.mxu3 %v7126_v57  ;;  %v7103_v40 = vld [vmem:[%s9119_s11 + $0xc0] sm:$0xff]  ;;  %v7081_v57 = vld [vmem:[%s9119_s11 + $0x10] sm:$0xff] }
 0x741   : > { %3021 = vmatpush.bf16.msrb.mxu0 %v7132_v41  ;;  %3034 = vmatpush.bf16.msra.mxu1 %v7140_v34  ;;  %v7089_v41 = vld [vmem:[%s9119_s11 + $0x50] sm:$0xff]  ;;  %v7080_v34 = vld [vmem:[%s9119_s11 + $0x8] sm:$0xff] }
 0x742   : > { %2994 = vmatpush.bf16.msrb.mxu2 %v7117_v42  ;;  %3007 = vmatpush.bf16.msrb.mxu3 %v7125_v17  ;;  %v7088_v42 = vld [vmem:[%s9119_s11 + $0x48] sm:$0xff]  ;;  %v7079_v17 = vld [vmem:[%s9119_s11] sm:$0xff] }
 0x744   : > { %5842 = vmatmul.msk.bf16.vlgmr.msra.gmra.mxu0 %vm1324_vm10, %v2613_v48  ;;  %5843 = vmatmul.msk.bf16.vlgmr.msrb.gmra.mxu1 %vm1324_vm10, %v2613_v48 }
 0x745   : > { %3022 = vmatpush.bf16.msrb.mxu0 %v7131_v44  ;;  %3035 = vmatpush.bf16.msra.mxu1 %v7139_v45 }
 0x746   : > { %2995 = vmatpush.bf16.msrb.mxu2 %v7116_v46  ;;  %3008 = vmatpush.bf16.msrb.mxu3 %v7124_v47 }
 0x749   : > { %3023 = vmatpush.bf16.msrb.mxu0 %v7130_v50  ;;  %3036 = vmatpush.bf16.msra.mxu1 %v7138_v51 }
 0x74a   : > { %2996 = vmatpush.bf16.msrb.mxu2 %v7115_v54  ;;  %3009 = vmatpush.bf16.msrb.mxu3 %v7123_v55 }
 0x74b   : > { %5840 = vmatmul.msk.bf16.vlgmr.msra.gmra.mxu2 %vm1324_vm10, %v2613_v48  ;;  %5841 = vmatmul.msk.bf16.vlgmr.msra.gmra.mxu3 %vm1324_vm10, %v2613_v48 }
 0x74d   : > { %3024 = vmatpush.bf16.msrb.mxu0 %v7129_v56  ;;  %3037 = vmatpush.bf16.msra.mxu1 %v7137_v58 }
 0x74e   : > { %2997 = vmatpush.bf16.msrb.mxu2 %v7114_v59  ;;  %3010 = vmatpush.bf16.msrb.mxu3 %v7122_v28 }
 0x751   : > { %3025 = vmatpush.bf16.msrb.mxu0 %v7128_v30  ;;  %3038 = vmatpush.bf16.msra.mxu1 %v7136_v61 }
 0x752   : > { %2998 = vmatpush.bf16.msrb.mxu2 %v7113_v62  ;;  %3011 = vmatpush.bf16.msrb.mxu3 %v7121_v63 }
 0x755   : > { %3026 = vmatpush.bf16.msrb.mxu0 %v7127_v0  ;;  %3039 = vmatpush.bf16.msra.mxu1 %v7135_v1 }
 0x756   : > { %2999 = vmatpush.bf16.msrb.mxu2 %v7112_v37  ;;  %3012 = vmatpush.bf16.msrb.mxu3 %v7120_v10 }
 0x759   : > { %3263 = vmatpush.bf16.msra.mxu0 %v7102_v2  ;;  %3276 = vmatpush.bf16.msrb.mxu1 %v7110_v4 }
 0x75a   : > { %3000 = vmatpush.bf16.msrb.mxu2 %v7111_v6  ;;  %3013 = vmatpush.bf16.msrb.mxu3 %v7119_v11  ;;  %v7174_v6 = vld [vmem:[%s9119_s11 + $0x1f8] sm:$0xff]  ;;  %v7165_v11 = vld [vmem:[%s9119_s11 + $0x1b0] sm:$0xff] }
 0x75d   : > { %3264 = vmatpush.bf16.msra.mxu0 %v7101_v53  ;;  %3277 = vmatpush.bf16.msrb.mxu1 %v7109_v7  ;;  %v3290_v7 = vsel %vm3289_vm14, 1.0, %v7296_v26 }
 0x75e   : > { %3237 = vmatpush.bf16.msra.mxu2 %v7086_v12  ;;  %3250 = vmatpush.bf16.msra.mxu3 %v7094_v13  ;;  %v7173_v12 = vld [vmem:[%s9119_s11 + $0x1f0] sm:$0xff]  ;;  %v7164_v13 = vld [vmem:[%s9119_s11 + $0x1a8] sm:$0xff] }
 0x761   : > { %3265 = vmatpush.bf16.msra.mxu0 %v7100_v8  ;;  %3278 = vmatpush.bf16.msrb.mxu1 %v7108_v9  ;;  %v3291_v8 = vpack.c.bf16 %v3290_v7, %v3290_v7  ;;  %v7166_v9 = vld [vmem:[%s9119_s11 + $0x1b8] sm:$0xff] }
 0x762   : > { %3238 = vmatpush.bf16.msra.mxu2 %v7085_v16  ;;  %3251 = vmatpush.bf16.msra.mxu3 %v7093_v19  ;;  %v7158_v16 = vld [vmem:[%s9119_s11 + $0x178] sm:$0xff]  ;;  %v3352_v19 = vsel %vm3351_vm15, 1.0, %v7296_v26 }
 0x765   : > { %3266 = vmatpush.bf16.msra.mxu0 %v7099_v14  ;;  %3279 = vmatpush.bf16.msrb.mxu1 %v7107_v15  ;;  %v7172_v14 = vld [vmem:[%s9119_s11 + $0x1e8] sm:$0xff]  ;;  %v7150_v15 = vld [vmem:[%s9119_s11 + $0x138] sm:$0xff] }
 0x766   : > { %3239 = vmatpush.bf16.msra.mxu2 %v7084_v22  ;;  %3252 = vmatpush.bf16.msra.mxu3 %v7092_v23  ;;  %v7162_v22 = vld [vmem:[%s9119_s11 + $0x198] sm:$0xff] }
 0x767   : > { %v7170_v23 = vld [vmem:[%s9119_s11 + $0x1d8] sm:$0xff] }
 0x769   : > { %3267 = vmatpush.bf16.msra.mxu0 %v7098_v20  ;;  %3280 = vmatpush.bf16.msrb.mxu1 %v7106_v21  ;;  %v7163_v20 = vld [vmem:[%s9119_s11 + $0x1a0] sm:$0xff]  ;;  %v3353_v21 = vpack.c.bf16 %v3352_v19, %v3352_v19  ;;  %v7177_v19 = vld [vmem:[%s9120_s12 + $0x110] sm:$0xff] }
 0x76a   : > { %3240 = vmatpush.bf16.msra.mxu2 %v7083_v25  ;;  %3253 = vmatpush.bf16.msra.mxu3 %v7091_v27  ;;  %v7161_v25 = vld [vmem:[%s9119_s11 + $0x190] sm:$0xff] }
 0x76b   : > { %v7169_v27 = vld [vmem:[%s9119_s11 + $0x1d0] sm:$0xff] }
 0x76d   : > { %3268 = vmatpush.bf16.msra.mxu0 %v7097_v3  ;;  %3281 = vmatpush.bf16.msrb.mxu1 %v7105_v24  ;;  %v7149_v3 = vld [vmem:[%s9119_s11 + $0x130] sm:$0xff] }
 0x76e   : > { %3241 = vmatpush.bf16.msra.mxu2 %v7082_v32  ;;  %3254 = vmatpush.bf16.msra.mxu3 %v7090_v38  ;;  %v7157_v24 = vld [vmem:[%s9119_s11 + $0x170] sm:$0xff]  ;;  %v7148_v32 = vld [vmem:[%s9119_s11 + $0x128] sm:$0xff] }
 0x76f   : > { %v7156_v38 = vld [vmem:[%s9119_s11 + $0x168] sm:$0xff] }
 0x771   : > { %3269 = vmatpush.bf16.msra.mxu0 %v7096_v29  ;;  %3282 = vmatpush.bf16.msrb.mxu1 %v7104_v31  ;;  %v7160_v29 = vld [vmem:[%s9119_s11 + $0x188] sm:$0xff] }
 0x772   : > { %3242 = vmatpush.bf16.msra.mxu2 %v7081_v57  ;;  %3255 = vmatpush.bf16.msra.mxu3 %v7089_v41  ;;  %v7168_v31 = vld [vmem:[%s9119_s11 + $0x1c8] sm:$0xff]  ;;  %v7198_v57 = vld [vmem:[%s9120_s12 + $0x1b8] sm:$0xff] }
 0x773   : > { %v7206_v41 = vld [vmem:[%s9120_s12 + $0x1f8] sm:$0xff] }
 0x775   : > { %3270 = vmatpush.bf16.msra.mxu0 %v7095_v39  ;;  %3283 = vmatpush.bf16.msrb.mxu1 %v7103_v40  ;;  %v7159_v39 = vld [vmem:[%s9119_s11 + $0x180] sm:$0xff] }
 0x776   : > { %3243 = vmatpush.bf16.msra.mxu2 %v7080_v34  ;;  %3256 = vmatpush.bf16.msra.mxu3 %v7088_v42  ;;  %v7167_v40 = vld [vmem:[%s9119_s11 + $0x1c0] sm:$0xff] }
 0x777   : > { %v7147_v34 = vld [vmem:[%s9119_s11 + $0x120] sm:$0xff] }
 0x778   : > { %v7155_v42 = vld [vmem:[%s9119_s11 + $0x160] sm:$0xff] }
 0x77a   : > { %3244 = vmatpush.bf16.msra.mxu2 %v7079_v17  ;;  %3257 = vmatpush.bf16.msra.mxu3 %v7087_v43  ;;  %v7197_v17 = vld [vmem:[%s9120_s12 + $0x1b0] sm:$0xff] }
 0x77b   : > { %v7205_v43 = vld [vmem:[%s9120_s12 + $0x1f0] sm:$0xff] }
 0x7b1   : > { %v2589_v44 = vpop.f32.mrf.mxu0  ;;  %v2602_v45 = vpop.f32.mrf.mxu1 }
 0x7b2   : > { %v2608_v1 = vpack.c.bf16 %v2589_v44, %v2589_v44  ;;  %v2609_v2 = vpack.c.bf16 %v2602_v45, %v2602_v45  ;;  %v7146_v44 = vld [vmem:[%s9119_s11 + $0x118] sm:$0xff] }
 0x7b3   : > { %v7154_v45 = vld [vmem:[%s9119_s11 + $0x158] sm:$0xff] }
 0x7b9   : > { %v2591_v46 = vpop.f32.mrf.mxu0  ;;  %v2604_v47 = vpop.f32.mrf.mxu1 }
 0x7ba   : > { %v7196_v46 = vld [vmem:[%s9120_s12 + $0x1a8] sm:$0xff] }
 0x7bb   : > { %v7204_v47 = vld [vmem:[%s9120_s12 + $0x1e8] sm:$0xff] }
 0x7be   : > { %v2563_v48 = vpop.f32.mrf.mxu2  ;;  %v2576_v50 = vpop.f32.mrf.mxu3 }
 0x7bf   : > { %v2606_v10 = vpack.c.bf16 %v2563_v48, %v2563_v48  ;;  %v2607_v53 = vpack.c.bf16 %v2576_v50, %v2576_v50  ;;  %v7145_v48 = vld [vmem:[%s9119_s11 + $0x110] sm:$0xff] }
 0x7c0   : > { %v7153_v50 = vld [vmem:[%s9119_s11 + $0x150] sm:$0xff] }
 0x7c1   : > { %v2652_v51 = vpop.f32.mrf.mxu0  ;;  %v2665_v54 = vpop.f32.mrf.mxu1 }
 0x7c2   : > { %v2671_v55 = vpack.c.bf16 %v2652_v51, %v2652_v51  ;;  %v2672_v56 = vpack.c.bf16 %v2665_v54, %v2665_v54  ;;  %v7195_v51 = vld [vmem:[%s9120_s12 + $0x1a0] sm:$0xff] }
 0x7c3   : > { %v7203_v54 = vld [vmem:[%s9120_s12 + $0x1e0] sm:$0xff] }
 0x7c4   : > { %3027 = vmatmul.bf16.vlgmr.msrb.gmra.mxu0 %v2671_v55  ;;  %3040 = vmatmul.bf16.vlgmr.msra.gmra.mxu1 %v2672_v56  ;;  %v7144_v55 = vld [vmem:[%s9119_s11 + $0x108] sm:$0xff] }
 0x7c5   : > { %3328 = vmatpush.bf16.msrb.mxu0 %v8430_v49  ;;  %3341 = vmatpush.bf16.msra.mxu1 %v8433_v52  ;;  %v7152_v56 = vld [vmem:[%s9119_s11 + $0x148] sm:$0xff] }
 0x7c6   : > { %v2565_v58 = vpop.f32.mrf.mxu2  ;;  %v2578_v59 = vpop.f32.mrf.mxu3 }
 0x7c7   : > { %v7194_v58 = vld [vmem:[%s9120_s12 + $0x198] sm:$0xff] }
 0x7c8   : > { %v7202_v59 = vld [vmem:[%s9120_s12 + $0x1d8] sm:$0xff] }
 0x7c9   : > { %v2654_v28 = vpop.f32.mrf.mxu0  ;;  %v2667_v30 = vpop.f32.mrf.mxu1 }
 0x7ca   : > { %v7143_v28 = vld [vmem:[%s9119_s11 + $0x100] sm:$0xff] }
 0x7cb   : > { %v7151_v30 = vld [vmem:[%s9119_s11 + $0x140] sm:$0xff] }
 0x7ce   : > { %v2626_v61 = vpop.f32.mrf.mxu2  ;;  %v2639_v62 = vpop.f32.mrf.mxu3 }
 0x7cf   : > { %v2669_v63 = vpack.c.bf16 %v2626_v61, %v2626_v61  ;;  %v2670_v0 = vpack.c.bf16 %v2639_v62, %v2639_v62  ;;  %v7182_v61 = vld [vmem:[%s9120_s12 + $0x138] sm:$0xff] }
 0x7d0   : > { %v7190_v62 = vld [vmem:[%s9120_s12 + $0x178] sm:$0xff] }
 0x7d1   : > { %3001 = vmatmul.bf16.vlgmr.msrb.gmra.mxu2 %v2669_v63  ;;  %3014 = vmatmul.bf16.vlgmr.msrb.gmra.mxu3 %v2670_v0  ;;  %v7193_v63 = vld [vmem:[%s9120_s12 + $0x190] sm:$0xff] }
 0x7d2   : > { %3302 = vmatpush.bf16.msrb.mxu2 %v8448_v35  ;;  %3315 = vmatpush.bf16.msrb.mxu3 %v8451_v33  ;;  %v7201_v0 = vld [vmem:[%s9120_s12 + $0x1d0] sm:$0xff] }
 0x7d4   : > { %3271 = vmatmul.bf16.vlgmr.msra.gmra.mxu0 %v2608_v1  ;;  %3284 = vmatmul.bf16.vlgmr.msrb.gmra.mxu1 %v2609_v2  ;;  %v7181_v1 = vld [vmem:[%s9120_s12 + $0x130] sm:$0xff] }
 0x7d5   : > { %3390 = vmatpush.bf16.msra.mxu0 %v8430_v49  ;;  %3403 = vmatpush.bf16.msrb.mxu1 %v8433_v52  ;;  %v7189_v2 = vld [vmem:[%s9120_s12 + $0x170] sm:$0xff] }
 0x7d6   : > { %v2628_v4 = vpop.f32.mrf.mxu2  ;;  %v2641_v37 = vpop.f32.mrf.mxu3 }
 0x7d7   : > { %v7192_v4 = vld [vmem:[%s9120_s12 + $0x188] sm:$0xff] }
 0x7d8   : > { %v7200_v37 = vld [vmem:[%s9120_s12 + $0x1c8] sm:$0xff] }
 0x7e1   : > { %3245 = vmatmul.bf16.vlgmr.msra.gmra.mxu2 %v2606_v10  ;;  %3258 = vmatmul.bf16.vlgmr.msra.gmra.mxu3 %v2607_v53  ;;  %v7180_v10 = vld [vmem:[%s9120_s12 + $0x128] sm:$0xff] }
 0x7e2   : > { %3364 = vmatpush.bf16.msra.mxu2 %v8448_v35  ;;  %3377 = vmatpush.bf16.msra.mxu3 %v8451_v33  ;;  %v7188_v53 = vld [vmem:[%s9120_s12 + $0x168] sm:$0xff] }
 0x7e4   : > { %6102 = vmatmul.msk.bf16.vlgmr.msrb.gmra.mxu0 %vm1324_vm10, %v3291_v8  ;;  %6103 = vmatmul.msk.bf16.vlgmr.msra.gmra.mxu1 %vm1324_vm10, %v3291_v8 }
 0x7e5   : > { %3696 = vmatpush.bf16.msrb.mxu0 %v7166_v9  ;;  %3709 = vmatpush.bf16.msra.mxu1 %v7174_v6  ;;  %v7191_v9 = vld [vmem:[%s9120_s12 + $0x180] sm:$0xff] }
 0x7e6   : > { %v7199_v6 = vld [vmem:[%s9120_s12 + $0x1c0] sm:$0xff] }
 0x7e9   : > { %3697 = vmatpush.bf16.msrb.mxu0 %v7165_v11  ;;  %3710 = vmatpush.bf16.msra.mxu1 %v7173_v12  ;;  %v7179_v11 = vld [vmem:[%s9120_s12 + $0x120] sm:$0xff] }
 0x7ea   : > { %v7187_v12 = vld [vmem:[%s9120_s12 + $0x160] sm:$0xff] }
 0x7ed   : > { %3698 = vmatpush.bf16.msrb.mxu0 %v7164_v13  ;;  %3711 = vmatpush.bf16.msra.mxu1 %v7172_v14  ;;  %v7178_v13 = vld [vmem:[%s9120_s12 + $0x118] sm:$0xff] }
 0x7ee   : > { %v7186_v14 = vld [vmem:[%s9120_s12 + $0x158] sm:$0xff] }
 0x7f1   : > { %6100 = vmatmul.msk.bf16.vlgmr.msrb.gmra.mxu2 %vm1324_vm10, %v3291_v8  ;;  %6101 = vmatmul.msk.bf16.vlgmr.msrb.gmra.mxu3 %vm1324_vm10, %v3291_v8 }
 0x7f2   : > { %3670 = vmatpush.bf16.msrb.mxu2 %v7150_v15  ;;  %3683 = vmatpush.bf16.msrb.mxu3 %v7158_v16 }
 0x7f3   : > { %3699 = vmatpush.bf16.msrb.mxu0 %v7163_v20  ;;  %3712 = vmatpush.bf16.msra.mxu1 %v7171_v5  ;;  %v7185_v20 = vld [vmem:[%s9120_s12 + $0x150] sm:$0xff]  ;;  %v7176_v5 = vld [vmem:[%s9120_s12 + $0x108] sm:$0xff] }
 0x7f4   : > { %6106 = vmatmul.msk.bf16.vlgmr.msra.gmra.mxu0 %vm1324_vm10, %v3353_v21  ;;  %6107 = vmatmul.msk.bf16.vlgmr.msrb.gmra.mxu1 %vm1324_vm10, %v3353_v21 }
 0x7f6   : > { %3671 = vmatpush.bf16.msrb.mxu2 %v7149_v3  ;;  %3684 = vmatpush.bf16.msrb.mxu3 %v7157_v24 }
 0x7f7   : > { %3700 = vmatpush.bf16.msrb.mxu0 %v7162_v22  ;;  %3713 = vmatpush.bf16.msra.mxu1 %v7170_v23 }
 0x7fa   : > { %3672 = vmatpush.bf16.msrb.mxu2 %v7148_v32  ;;  %3685 = vmatpush.bf16.msrb.mxu3 %v7156_v38 }
 0x7fb   : > { %3701 = vmatpush.bf16.msrb.mxu0 %v7161_v25  ;;  %3714 = vmatpush.bf16.msra.mxu1 %v7169_v27  ;;  %v7175_v27 = vld [vmem:[%s9120_s12 + $0x100] sm:$0xff] }
 0x7fe   : > { %3673 = vmatpush.bf16.msrb.mxu2 %v7147_v34  ;;  %3686 = vmatpush.bf16.msrb.mxu3 %v7155_v42 }
 0x7ff   : > { %3702 = vmatpush.bf16.msrb.mxu0 %v7160_v29  ;;  %3715 = vmatpush.bf16.msra.mxu1 %v7168_v31  ;;  %v7183_v29 = vld [vmem:[%s9120_s12 + $0x140] sm:$0xff] }
 0x801   : > { %6104 = vmatmul.msk.bf16.vlgmr.msra.gmra.mxu2 %vm1324_vm10, %v3353_v21  ;;  %6105 = vmatmul.msk.bf16.vlgmr.msra.gmra.mxu3 %vm1324_vm10, %v3353_v21  ;;  %v7184_v21 = vld [vmem:[%s9120_s12 + $0x148] sm:$0xff] }
 0x802   : > { %3674 = vmatpush.bf16.msrb.mxu2 %v7146_v44  ;;  %3687 = vmatpush.bf16.msrb.mxu3 %v7154_v45 }
 0x803   : > { %3703 = vmatpush.bf16.msrb.mxu0 %v7159_v39  ;;  %3716 = vmatpush.bf16.msra.mxu1 %v7167_v40 }
 0x806   : > { %3675 = vmatpush.bf16.msrb.mxu2 %v7145_v48  ;;  %3688 = vmatpush.bf16.msrb.mxu3 %v7153_v50 }
 0x807   : > { %4006 = vmatpush.bf16.msra.mxu0 %v7198_v57  ;;  %4019 = vmatpush.bf16.msrb.mxu1 %v7206_v41 }
 0x80a   : > { %3676 = vmatpush.bf16.msrb.mxu2 %v7144_v55  ;;  %3689 = vmatpush.bf16.msrb.mxu3 %v7152_v56 }
 0x80b   : > { %4007 = vmatpush.bf16.msra.mxu0 %v7197_v17  ;;  %4020 = vmatpush.bf16.msrb.mxu1 %v7205_v43 }
 0x80e   : > { %3677 = vmatpush.bf16.msrb.mxu2 %v7143_v28  ;;  %3690 = vmatpush.bf16.msrb.mxu3 %v7151_v30 }
 0x80f   : > { %4008 = vmatpush.bf16.msra.mxu0 %v7196_v46  ;;  %4021 = vmatpush.bf16.msrb.mxu1 %v7204_v47 }
 0x812   : > { %3980 = vmatpush.bf16.msra.mxu2 %v7182_v61  ;;  %3993 = vmatpush.bf16.msra.mxu3 %v7190_v62 }
 0x813   : > { %4009 = vmatpush.bf16.msra.mxu0 %v7195_v51  ;;  %4022 = vmatpush.bf16.msrb.mxu1 %v7203_v54 }
 0x816   : > { %3981 = vmatpush.bf16.msra.mxu2 %v7181_v1  ;;  %3994 = vmatpush.bf16.msra.mxu3 %v7189_v2 }
 0x817   : > { %4010 = vmatpush.bf16.msra.mxu0 %v7194_v58  ;;  %4023 = vmatpush.bf16.msrb.mxu1 %v7202_v59 }
 0x81a   : > { %3982 = vmatpush.bf16.msra.mxu2 %v7180_v10  ;;  %3995 = vmatpush.bf16.msra.mxu3 %v7188_v53 }
 0x81b   : > { %4011 = vmatpush.bf16.msra.mxu0 %v7193_v63  ;;  %4024 = vmatpush.bf16.msrb.mxu1 %v7201_v0 }
 0x81e   : > { %3983 = vmatpush.bf16.msra.mxu2 %v7179_v11  ;;  %3996 = vmatpush.bf16.msra.mxu3 %v7187_v12  ;;  %v7214_v12 = vld [vmem:[%s9119_s11 + $0x238] sm:$0xff] }
 0x81f   : > { %4012 = vmatpush.bf16.msra.mxu0 %v7192_v4  ;;  %4025 = vmatpush.bf16.msrb.mxu1 %v7200_v37  ;;  %v4034_v37 = vsel %vm4033_vm0, 1.0, %v7296_v26 }
 0x822   : > { %3984 = vmatpush.bf16.msra.mxu2 %v7178_v13  ;;  %3997 = vmatpush.bf16.msra.mxu3 %v7186_v14  ;;  %v7238_v13 = vld [vmem:[%s9119_s11 + $0x2f8] sm:$0xff]  ;;  %v7229_v14 = vld [vmem:[%s9119_s11 + $0x2b0] sm:$0xff] }
 0x823   : > { %4013 = vmatpush.bf16.msra.mxu0 %v7191_v9  ;;  %4026 = vmatpush.bf16.msrb.mxu1 %v7199_v6  ;;  %v4096_v6 = vsel %vm4095_vm1, 1.0, %v7296_v26  ;;  %v7213_v26 = vld [vmem:[%s9119_s11 + $0x230] sm:$0xff] }
 0x824   : > { %v4097_v11 = vpack.c.bf16 %v4096_v6, %v4096_v6  ;;  %v7258_v6 = vld [vmem:[%s9120_s12 + $0x298] sm:$0xff] }
 0x826   : > { %3985 = vmatpush.bf16.msra.mxu2 %v7177_v19  ;;  %3998 = vmatpush.bf16.msra.mxu3 %v7185_v20  ;;  %v7236_v19 = vld [vmem:[%s9119_s11 + $0x2e8] sm:$0xff]  ;;  %v7211_v20 = vld [vmem:[%s9119_s11 + $0x220] sm:$0xff] }
 0x82a   : > { %3986 = vmatpush.bf16.msra.mxu2 %v7176_v5  ;;  %3999 = vmatpush.bf16.msra.mxu3 %v7184_v21  ;;  %v7219_v5 = vld [vmem:[%s9119_s11 + $0x260] sm:$0xff] }
 0x82b   : > { %v7227_v21 = vld [vmem:[%s9119_s11 + $0x2a0] sm:$0xff] }
 0x82e   : > { %3987 = vmatpush.bf16.msra.mxu2 %v7175_v27  ;;  %4000 = vmatpush.bf16.msra.mxu3 %v7183_v29  ;;  %v7209_v29 = vld [vmem:[%s9119_s11 + $0x210] sm:$0xff] }
 0x841   : > { %v3028_v7 = vpop.f32.mrf.mxu0  ;;  %v3041_v8 = vpop.f32.mrf.mxu1 }
 0x849   : > { %v3030_v15 = vpop.f32.mrf.mxu0  ;;  %v3043_v16 = vpop.f32.mrf.mxu1 }
 0x84a   : > { %v7237_v15 = vld [vmem:[%s9119_s11 + $0x2f0] sm:$0xff]  ;;  %v7228_v16 = vld [vmem:[%s9119_s11 + $0x2a8] sm:$0xff] }
 0x851   : > { %v3272_v22 = vpop.f32.mrf.mxu0  ;;  %v3285_v23 = vpop.f32.mrf.mxu1 }
 0x854   : > { %v3002_v3 = vpop.f32.mrf.mxu2  ;;  %v3015_v24 = vpop.f32.mrf.mxu3 }
 0x855   : > { %v3016_v25 = vadd.f32 %v3015_v24, %v3002_v3  ;;  %v7218_v3 = vld [vmem:[%s9119_s11 + $0x258] sm:$0xff] }
 0x856   : > { %v7226_v24 = vld [vmem:[%s9119_s11 + $0x298] sm:$0xff] }
 0x857   : > { %v3029_v31 = vadd.f32 %v3028_v7, %v3016_v25 }
 0x859   : > { %v3042_v32 = vadd.f32 %v3041_v8, %v3029_v31  ;;  %v3274_v38 = vpop.f32.mrf.mxu0  ;;  %v3287_v39 = vpop.f32.mrf.mxu1  ;;  %v7217_v31 = vld [vmem:[%s9119_s11 + $0x250] sm:$0xff] }
 0x85a   : > { %v7225_v38 = vld [vmem:[%s9119_s11 + $0x290] sm:$0xff]  ;;  %v7208_v39 = vld [vmem:[%s9119_s11 + $0x208] sm:$0xff] }
 0x85c   : > { %v3004_v40 = vpop.f32.mrf.mxu2  ;;  %v3017_v57 = vpop.f32.mrf.mxu3 }
 0x85d   : > { %v7216_v40 = vld [vmem:[%s9119_s11 + $0x248] sm:$0xff]  ;;  %v7233_v57 = vld [vmem:[%s9119_s11 + $0x2d0] sm:$0xff] }
 0x861   : > { %v3330_v41 = vpop.f32.mrf.mxu0  ;;  %v3343_v34 = vpop.f32.mrf.mxu1 }
 0x862   : > { %v3349_v42 = vpack.c.bf16 %v3330_v41, %v3330_v41  ;;  %v3350_v17 = vpack.c.bf16 %v3343_v34, %v3343_v34  ;;  %v7224_v41 = vld [vmem:[%s9119_s11 + $0x288] sm:$0xff] }
 0x864   : > { %v3246_v43 = vpop.f32.mrf.mxu2  ;;  %v3259_v44 = vpop.f32.mrf.mxu3  ;;  %3704 = vmatmul.bf16.vlgmr.msrb.gmra.mxu0 %v3349_v42  ;;  %3717 = vmatmul.bf16.vlgmr.msra.gmra.mxu1 %v3350_v17  ;;  %v7232_v17 = vld [vmem:[%s9119_s11 + $0x2c8] sm:$0xff] }
 0x865   : > { %v3247_v45 = vadd.f32 %v3246_v43, %v3042_v32  ;;  %4072 = vmatpush.bf16.msrb.mxu0 %v8430_v49  ;;  %4085 = vmatpush.bf16.msra.mxu1 %v8433_v52  ;;  %v7234_v32 = vld [vmem:[%s9119_s11 + $0x2d8] sm:$0xff]  ;;  %v7207_v43 = vld [vmem:[%s9119_s11 + $0x200] sm:$0xff] }
 0x867   : > { %v3260_v46 = vadd.f32 %v3259_v44, %v3247_v45  ;;  %v7215_v44 = vld [vmem:[%s9119_s11 + $0x240] sm:$0xff] }
 0x868   : > { %v7223_v45 = vld [vmem:[%s9119_s11 + $0x280] sm:$0xff] }
 0x869   : > { %v3273_v47 = vadd.f32 %v3272_v22, %v3260_v46  ;;  %v3332_v48 = vpop.f32.mrf.mxu0  ;;  %v3345_v50 = vpop.f32.mrf.mxu1  ;;  %v7235_v22 = vld [vmem:[%s9119_s11 + $0x2e0] sm:$0xff]  ;;  %v7246_v46 = vld [vmem:[%s9120_s12 + $0x238] sm:$0xff] }
 0x86a   : > { %v7262_v48 = vld [vmem:[%s9120_s12 + $0x2b8] sm:$0xff]  ;;  %v7231_v50 = vld [vmem:[%s9119_s11 + $0x2c0] sm:$0xff] }
 0x86b   : > { %v8871_v51 = vadd.f32 %v3285_v23, %v3273_v47  ;;  %v7210_v23 = vld [vmem:[%s9119_s11 + $0x218] sm:$0xff] }
 0x86c   : > { %v3248_v54 = vpop.f32.mrf.mxu2  ;;  %v3261_v55 = vpop.f32.mrf.mxu3  ;;  %v7254_v47 = vld [vmem:[%s9120_s12 + $0x278] sm:$0xff] }
 0x86d   : > { %v7270_v54 = vld [vmem:[%s9120_s12 + $0x2f8] sm:$0xff]  ;;  %v7245_v55 = vld [vmem:[%s9120_s12 + $0x230] sm:$0xff] }
 0x871   : > { %v3392_v56 = vpop.f32.mrf.mxu0  ;;  %v3405_v58 = vpop.f32.mrf.mxu1 }
 0x872   : > { %v3411_v59 = vpack.c.bf16 %v3392_v56, %v3392_v56  ;;  %v3412_v28 = vpack.c.bf16 %v3405_v58, %v3405_v58  ;;  %v7253_v56 = vld [vmem:[%s9120_s12 + $0x270] sm:$0xff] }
 0x873   : > { %v7261_v58 = vld [vmem:[%s9120_s12 + $0x2b0] sm:$0xff] }
 0x874   : > { %v3304_v30 = vpop.f32.mrf.mxu2  ;;  %v3317_v61 = vpop.f32.mrf.mxu3  ;;  %4014 = vmatmul.bf16.vlgmr.msra.gmra.mxu0 %v3411_v59  ;;  %4027 = vmatmul.bf16.vlgmr.msrb.gmra.mxu1 %v3412_v28 }
 0x875   : > { %v3347_v62 = vpack.c.bf16 %v3304_v30, %v3304_v30  ;;  %v3348_v63 = vpack.c.bf16 %v3317_v61, %v3317_v61  ;;  %4134 = vmatpush.bf16.msra.mxu0 %v8430_v49  ;;  %4147 = vmatpush.bf16.msrb.mxu1 %v8433_v52  ;;  %v4035_v49 = vpack.c.bf16 %v4034_v37, %v4034_v37  ;;  %v7244_v30 = vld [vmem:[%s9120_s12 + $0x228] sm:$0xff] }
 0x876   : > { %v7252_v61 = vld [vmem:[%s9120_s12 + $0x268] sm:$0xff] }
 0x877   : > { %3678 = vmatmul.bf16.vlgmr.msrb.gmra.mxu2 %v3347_v62  ;;  %3691 = vmatmul.bf16.vlgmr.msrb.gmra.mxu3 %v3348_v63  ;;  %v7269_v62 = vld [vmem:[%s9120_s12 + $0x2f0] sm:$0xff]  ;;  %v7260_v63 = vld [vmem:[%s9120_s12 + $0x2a8] sm:$0xff] }
 0x878   : > { %4046 = vmatpush.bf16.msrb.mxu2 %v8448_v35  ;;  %4059 = vmatpush.bf16.msrb.mxu3 %v8451_v33 }
 0x879   : > { %v3394_v0 = vpop.f32.mrf.mxu0  ;;  %v3407_v1 = vpop.f32.mrf.mxu1 }
 0x87a   : > { %v7268_v0 = vld [vmem:[%s9120_s12 + $0x2e8] sm:$0xff]  ;;  %v7243_v1 = vld [vmem:[%s9120_s12 + $0x220] sm:$0xff] }
 0x87c   : > { %v3306_v2 = vpop.f32.mrf.mxu2  ;;  %v3319_v4 = vpop.f32.mrf.mxu3 }
 0x87d   : > { %v7251_v2 = vld [vmem:[%s9120_s12 + $0x260] sm:$0xff] }
 0x87e   : > { %v7259_v4 = vld [vmem:[%s9120_s12 + $0x2a0] sm:$0xff] }
 0x884   : > { %v3366_v10 = vpop.f32.mrf.mxu2  ;;  %v3379_v53 = vpop.f32.mrf.mxu3  ;;  %6494 = vmatmul.msk.bf16.vlgmr.msrb.gmra.mxu0 %vm1324_vm10, %v4035_v49  ;;  %6495 = vmatmul.msk.bf16.vlgmr.msra.gmra.mxu1 %vm1324_vm10, %v4035_v49 }
 0x885   : > { %v3409_v7 = vpack.c.bf16 %v3366_v10, %v3366_v10  ;;  %v3410_v52 = vpack.c.bf16 %v3379_v53, %v3379_v53  ;;  %4440 = vmatpush.bf16.msrb.mxu0 %v7230_v60  ;;  %4453 = vmatpush.bf16.msra.mxu1 %v7238_v13 }
 0x887   : > { %3988 = vmatmul.bf16.vlgmr.msra.gmra.mxu2 %v3409_v7  ;;  %4001 = vmatmul.bf16.vlgmr.msra.gmra.mxu3 %v3410_v52  ;;  %v7267_v52 = vld [vmem:[%s9120_s12 + $0x2e0] sm:$0xff] }
 0x888   : > { %4108 = vmatpush.bf16.msra.mxu2 %v8448_v35  ;;  %4121 = vmatpush.bf16.msra.mxu3 %v8451_v33  ;;  %v7222_v35 = vld [vmem:[%s9119_s11 + $0x278] sm:$0xff]  ;;  %v7212_v33 = vld [vmem:[%s9119_s11 + $0x228] sm:$0xff] }
 0x889   : > { %4441 = vmatpush.bf16.msrb.mxu0 %v7229_v14  ;;  %4454 = vmatpush.bf16.msra.mxu1 %v7237_v15  ;;  %v7240_v15 = vld [vmem:[%s9120_s12 + $0x208] sm:$0xff] }
 0x88c   : > { %v3368_v8 = vpop.f32.mrf.mxu2  ;;  %v3381_v9 = vpop.f32.mrf.mxu3 }
 0x88d   : > { %4442 = vmatpush.bf16.msrb.mxu0 %v7228_v16  ;;  %4455 = vmatpush.bf16.msra.mxu1 %v7236_v19  ;;  %v7242_v8 = vld [vmem:[%s9120_s12 + $0x218] sm:$0xff]  ;;  %v7248_v16 = vld [vmem:[%s9120_s12 + $0x248] sm:$0xff] }
 0x88e   : > { %v7250_v9 = vld [vmem:[%s9120_s12 + $0x258] sm:$0xff] }
 0x891   : > { %4443 = vmatpush.bf16.msrb.mxu0 %v7227_v21  ;;  %4456 = vmatpush.bf16.msra.mxu1 %v7235_v22  ;;  %v7256_v21 = vld [vmem:[%s9120_s12 + $0x288] sm:$0xff] }
 0x892   : > { %v7264_v22 = vld [vmem:[%s9120_s12 + $0x2c8] sm:$0xff] }
 0x894   : > { %6498 = vmatmul.msk.bf16.vlgmr.msra.gmra.mxu0 %vm1324_vm10, %v4097_v11  ;;  %6499 = vmatmul.msk.bf16.vlgmr.msrb.gmra.mxu1 %vm1324_vm10, %v4097_v11 }
 0x895   : > { %4444 = vmatpush.bf16.msrb.mxu0 %v7226_v24  ;;  %4457 = vmatpush.bf16.msra.mxu1 %v7234_v32  ;;  %v7255_v24 = vld [vmem:[%s9120_s12 + $0x280] sm:$0xff] }
 0x897   : > { %6492 = vmatmul.msk.bf16.vlgmr.msrb.gmra.mxu2 %vm1324_vm10, %v4035_v49  ;;  %6493 = vmatmul.msk.bf16.vlgmr.msrb.gmra.mxu3 %vm1324_vm10, %v4035_v49 }
 0x898   : > { %4414 = vmatpush.bf16.msrb.mxu2 %v7214_v12  ;;  %4427 = vmatpush.bf16.msrb.mxu3 %v7222_v35  ;;  %v7266_v12 = vld [vmem:[%s9120_s12 + $0x2d8] sm:$0xff] }
 0x899   : > { %4445 = vmatpush.bf16.msrb.mxu0 %v7225_v38  ;;  %4458 = vmatpush.bf16.msra.mxu1 %v7233_v57  ;;  %v7263_v38 = vld [vmem:[%s9120_s12 + $0x2c0] sm:$0xff] }
 0x89c   : > { %4415 = vmatpush.bf16.msrb.mxu2 %v7213_v26  ;;  %4428 = vmatpush.bf16.msrb.mxu3 %v7221_v18  ;;  %v7241_v26 = vld [vmem:[%s9120_s12 + $0x210] sm:$0xff] }
 0x89d   : > { %4446 = vmatpush.bf16.msrb.mxu0 %v7224_v41  ;;  %4459 = vmatpush.bf16.msra.mxu1 %v7232_v17  ;;  %v7249_v18 = vld [vmem:[%s9120_s12 + $0x250] sm:$0xff] }
 0x8a0   : > { %4416 = vmatpush.bf16.msrb.mxu2 %v7212_v33  ;;  %4429 = vmatpush.bf16.msrb.mxu3 %v7220_v36  ;;  %v7257_v33 = vld [vmem:[%s9120_s12 + $0x290] sm:$0xff] }
 0x8a1   : > { %4447 = vmatpush.bf16.msrb.mxu0 %v7223_v45  ;;  %4460 = vmatpush.bf16.msra.mxu1 %v7231_v50 }
 0x8a4   : > { %4417 = vmatpush.bf16.msrb.mxu2 %v7211_v20  ;;  %4430 = vmatpush.bf16.msrb.mxu3 %v7219_v5  ;;  %v7265_v5 = vld [vmem:[%s9120_s12 + $0x2d0] sm:$0xff] }
 0x8a5   : > { %4750 = vmatpush.bf16.msra.mxu0 %v7262_v48  ;;  %4763 = vmatpush.bf16.msrb.mxu1 %v7270_v54 }
 0x8a7   : > { %6496 = vmatmul.msk.bf16.vlgmr.msra.gmra.mxu2 %vm1324_vm10, %v4097_v11  ;;  %6497 = vmatmul.msk.bf16.vlgmr.msra.gmra.mxu3 %vm1324_vm10, %v4097_v11 }
 0x8a8   : > { %4418 = vmatpush.bf16.msrb.mxu2 %v7210_v23  ;;  %4431 = vmatpush.bf16.msrb.mxu3 %v7218_v3  ;;  %v7239_v23 = vld [vmem:[%s9120_s12 + $0x200] sm:$0xff] }
 0x8a9   : > { %4751 = vmatpush.bf16.msra.mxu0 %v7261_v58  ;;  %4764 = vmatpush.bf16.msrb.mxu1 %v7269_v62  ;;  %v7247_v3 = vld [vmem:[%s9120_s12 + $0x240] sm:$0xff] }
 0x8ac   : > { %4419 = vmatpush.bf16.msrb.mxu2 %v7209_v29  ;;  %4432 = vmatpush.bf16.msrb.mxu3 %v7217_v31 }
 0x8ad   : > { %4752 = vmatpush.bf16.msra.mxu0 %v7260_v63  ;;  %4765 = vmatpush.bf16.msrb.mxu1 %v7268_v0 }
 0x8b0   : > { %4420 = vmatpush.bf16.msrb.mxu2 %v7208_v39  ;;  %4433 = vmatpush.bf16.msrb.mxu3 %v7216_v40 }
 0x8b1   : > { %4753 = vmatpush.bf16.msra.mxu0 %v7259_v4  ;;  %4766 = vmatpush.bf16.msrb.mxu1 %v7267_v52 }
 0x8b4   : > { %4421 = vmatpush.bf16.msrb.mxu2 %v7207_v43  ;;  %4434 = vmatpush.bf16.msrb.mxu3 %v7215_v44 }
 0x8b5   : > { %4754 = vmatpush.bf16.msra.mxu0 %v7258_v6  ;;  %4767 = vmatpush.bf16.msrb.mxu1 %v7266_v12 }
 0x8b8   : > { %4724 = vmatpush.bf16.msra.mxu2 %v7246_v46  ;;  %4737 = vmatpush.bf16.msra.mxu3 %v7254_v47 }
 0x8b9   : > { %4755 = vmatpush.bf16.msra.mxu0 %v7257_v33  ;;  %4768 = vmatpush.bf16.msrb.mxu1 %v7265_v5 }
 0x8bc   : > { %4725 = vmatpush.bf16.msra.mxu2 %v7245_v55  ;;  %4738 = vmatpush.bf16.msra.mxu3 %v7253_v56 }
 0x8bd   : > { %4756 = vmatpush.bf16.msra.mxu0 %v7256_v21  ;;  %4769 = vmatpush.bf16.msrb.mxu1 %v7264_v22 }
 0x8c0   : > { %4726 = vmatpush.bf16.msra.mxu2 %v7244_v30  ;;  %4739 = vmatpush.bf16.msra.mxu3 %v7252_v61 }
 0x8c1   : > { %4757 = vmatpush.bf16.msra.mxu0 %v7255_v24  ;;  %4770 = vmatpush.bf16.msrb.mxu1 %v7263_v38 }
 0x8c4   : > { %4727 = vmatpush.bf16.msra.mxu2 %v7243_v1  ;;  %4740 = vmatpush.bf16.msra.mxu3 %v7251_v2 }
 0x8c8   : > { %4728 = vmatpush.bf16.msra.mxu2 %v7242_v8  ;;  %4741 = vmatpush.bf16.msra.mxu3 %v7250_v9 }
 0x8cc   : > { %4729 = vmatpush.bf16.msra.mxu2 %v7241_v26  ;;  %4742 = vmatpush.bf16.msra.mxu3 %v7249_v18 }
 0x8d0   : > { %4730 = vmatpush.bf16.msra.mxu2 %v7240_v15  ;;  %4743 = vmatpush.bf16.msra.mxu3 %v7248_v16 }
 0x8d4   : > { %4731 = vmatpush.bf16.msra.mxu2 %v7239_v23  ;;  %4744 = vmatpush.bf16.msra.mxu3 %v7247_v3 }
 0x8e1   : > { %v8950_v25 = vpop.f32.mrf.mxu0  ;;  %v8952_v27 = vpop.f32.mrf.mxu1 }
 0x8e9   : > { %v3707_v34 = vpop.f32.mrf.mxu0  ;;  %v3720_v42 = vpop.f32.mrf.mxu1 }
 0x8f1   : > { %v9014_v59 = vpop.f32.mrf.mxu0  ;;  %v9016_v28 = vpop.f32.mrf.mxu1 }
 0x8f9   : > { %v4017_v49 = vpop.f32.mrf.mxu0  ;;  %v4030_v7 = vpop.f32.mrf.mxu1 }
 0x8fa   : > { %v3679_v37 = vpop.f32.mrf.mxu2  ;;  %v3692_v10 = vpop.f32.mrf.mxu3 }
 0x8fb   : > { %v3693_v53 = vadd.f32 %v3692_v10, %v3679_v37 }
 0x8fd   : > { %v3706_v60 = vadd.f32 %v8950_v25, %v3693_v53 }
 0x8ff   : > { %v3719_v11 = vadd.f32 %v8952_v27, %v3706_v60 }
 0x901   : > { %v3722_v35 = vadd.f32 %v3719_v11, %v8871_v51  ;;  %v4074_v14 = vpop.f32.mrf.mxu0  ;;  %v4087_v51 = vpop.f32.mrf.mxu1 }
 0x902   : > { %v3681_v36 = vpop.f32.mrf.mxu2  ;;  %v3694_v13 = vpop.f32.mrf.mxu3  ;;  %v4093_v19 = vpack.c.bf16 %v4074_v14, %v4074_v14  ;;  %v4094_v20 = vpack.c.bf16 %v4087_v51, %v4087_v51 }
 0x903   : > { %v7283_v36 = vld [vmem:[%s9121_s13] ss:$0 sm:$0xff] }
 0x904   : > { %4448 = vmatmul.bf16.vlgmr.msrb.gmra.mxu0 %v4093_v19  ;;  %4461 = vmatmul.bf16.vlgmr.msra.gmra.mxu1 %v4094_v20 }
 0x909   : > { %v4076_v31 = vpop.f32.mrf.mxu0  ;;  %v4089_v32 = vpop.f32.mrf.mxu1 }
 0x90a   : > { %v3989_v25 = vpop.f32.mrf.mxu2  ;;  %v4002_v27 = vpop.f32.mrf.mxu3 }
 0x90b   : > { %v4003_v29 = vadd.f32 %v4002_v27, %v3989_v25 }
 0x90d   : > { %v4016_v39 = vadd.f32 %v9014_v59, %v4003_v29 }
 0x90f   : > { %v4029_v40 = vadd.f32 %v9016_v28, %v4016_v39 }
 0x911   : > { %v4032_v57 = vadd.f32 %v4029_v40, %v3722_v35  ;;  %v4136_v42 = vpop.f32.mrf.mxu0  ;;  %v4149_v17 = vpop.f32.mrf.mxu1 }
 0x912   : > { %v3991_v41 = vpop.f32.mrf.mxu2  ;;  %v4004_v34 = vpop.f32.mrf.mxu3  ;;  %v4155_v43 = vpack.c.bf16 %v4136_v42, %v4136_v42  ;;  %v4156_v44 = vpack.c.bf16 %v4149_v17, %v4149_v17 }
 0x914   : > { %4758 = vmatmul.bf16.vlgmr.msra.gmra.mxu0 %v4155_v43  ;;  %4771 = vmatmul.bf16.vlgmr.msrb.gmra.mxu1 %v4156_v44 }
 0x919   : > { %v4138_v50 = vpop.f32.mrf.mxu0  ;;  %v4151_v54 = vpop.f32.mrf.mxu1 }
 0x91a   : > { %v4048_v45 = vpop.f32.mrf.mxu2  ;;  %v4061_v46 = vpop.f32.mrf.mxu3 }
 0x91b   : > { %v4091_v47 = vpack.c.bf16 %v4048_v45, %v4048_v45  ;;  %v4092_v48 = vpack.c.bf16 %v4061_v46, %v4061_v46 }
 0x91d   : > { %4422 = vmatmul.bf16.vlgmr.msrb.gmra.mxu2 %v4091_v47  ;;  %4435 = vmatmul.bf16.vlgmr.msrb.gmra.mxu3 %v4092_v48 }
 0x922   : > { %v4050_v55 = vpop.f32.mrf.mxu2  ;;  %v4063_v56 = vpop.f32.mrf.mxu3 }
 0x92a   : > { %v4110_v58 = vpop.f32.mrf.mxu2  ;;  %v4123_v59 = vpop.f32.mrf.mxu3 }
 0x92b   : > { %v4153_v28 = vpack.c.bf16 %v4110_v58, %v4110_v58  ;;  %v4154_v30 = vpack.c.bf16 %v4123_v59, %v4123_v59 }
 0x92d   : > { %4732 = vmatmul.bf16.vlgmr.msra.gmra.mxu2 %v4153_v28  ;;  %4745 = vmatmul.bf16.vlgmr.msra.gmra.mxu3 %v4154_v30 }
 0x932   : > { %v4112_v61 = vpop.f32.mrf.mxu2  ;;  %v4125_v62 = vpop.f32.mrf.mxu3 }
 0x981   : > { %v4449_v63 = vpop.f32.mrf.mxu0  ;;  %v4462_v0 = vpop.f32.mrf.mxu1 }
 0x989   : > { %v4451_v1 = vpop.f32.mrf.mxu0  ;;  %v4464_v2 = vpop.f32.mrf.mxu1 }
 0x991   : > { %v4759_v4 = vpop.f32.mrf.mxu0  ;;  %v4772_v37 = vpop.f32.mrf.mxu1 }
 0x999   : > { %v4761_v10 = vpop.f32.mrf.mxu0  ;;  %v4774_v53 = vpop.f32.mrf.mxu1 }
 0x9a0   : > { %v4423_v49 = vpop.f32.mrf.mxu2  ;;  %v4436_v7 = vpop.f32.mrf.mxu3 }
 0x9a1   : > { %v4437_v8 = vadd.f32 %v4436_v7, %v4423_v49 }
 0x9a3   : > { %v4450_v9 = vadd.f32 %v4449_v63, %v4437_v8 }
 0x9a5   : > { %v4463_v12 = vadd.f32 %v4462_v0, %v4450_v9 }
 0x9a7   : > { %v4466_v18 = vadd.f32 %v4463_v12, %v4032_v57 }
 0x9a8   : > { %v4425_v52 = vpop.f32.mrf.mxu2  ;;  %v4438_v60 = vpop.f32.mrf.mxu3 }
 0x9b0   : > { %v4733_v6 = vpop.f32.mrf.mxu2  ;;  %v4746_v11 = vpop.f32.mrf.mxu3 }
 0x9b1   : > { %v4747_v35 = vadd.f32 %v4746_v11, %v4733_v6 }
 0x9b3   : > { %v4760_v26 = vadd.f32 %v4759_v4, %v4747_v35 }
 0x9b5   : > { %v4773_v33 = vadd.f32 %v4772_v37, %v4760_v26 }
 0x9b7   : > { %v4776_v13 = vadd.f32 %v4773_v33, %v4466_v18 }
 0x9b8   : > { %v4735_v14 = vpop.f32.mrf.mxu2  ;;  %v4748_v51 = vpop.f32.mrf.mxu3 }
 0x9b9   : > { %v4781_v15 = vadd.f32 %v7283_v36, %v4776_v13 }
 0x9bb   : > { %v4782_v16 = vsub.f32 0.0, %v4781_v15 }
 0x9bd   : > { %v4783_v19 = vmul.f32 1.442695, %v4782_v16 }
 0x9bf   : > { %7284 = vpow2.f32 %v4783_v19 }
 0x9c5   : > { %v7285_v20 = vpop.eup %7284 }
 0x9c6   : > { %v4785_v5 = vadd.f32 1.0, %v7285_v20 }
 0x9c8   : > { %7286 = vrcp.f32 %v4785_v5  ;;  %v4797_v3 = vand.u32 2147483648, %v4785_v5  ;;  %v4795_v25 = vand.u32 2147483647, %v4785_v5  ;;  %vm4791_vm3 = vweird.f32 %v4785_v5 }
 0x9ca   : > { %v4798_v29 = vor.u32 1.1754944e-38, %v4797_v3  ;;  %vm4796_vm6 = vcmp.eq.f32.partialorder %v4795_v25, 8.507059e+37 }
 0x9ce   : > { %v7287_v21 = vpop.eup %7286 }
 0x9cf   : > { %v4787_v22 = vmul.f32 %v7287_v21, %v4785_v5  ;;  %vm4792_vm2 = vweird.f32 %v7287_v21 }
 0x9d0   : > { %vm4793_vm4 = vmor %vm4791_vm3, %vm4792_vm2 }
 0x9d1   : > { %v4788_v23 = vsub.f32 1.0, %v4787_v22 }
 0x9d3   : > { %v4789_v24 = vmul.f32 %v7287_v21, %v4788_v23 }
 0x9d5   : > { %v4790_v27 = vadd.f32 %v7287_v21, %v4789_v24 }
 0x9d7   : > { %v4794_v31 = vsel %vm4793_vm4, %v7287_v21, %v4790_v27 }
 0x9d8   : > { %v4799_v32 = vsel %vm4796_vm6, %v4798_v29, %v4794_v31 }
 0x9d9   : > { %4802 = vst.msk [vmem:[%s465_s22] sm:$0xff] %vm4801_vm5, %v4799_v32 }
 0x9da PF: > { %s24_s29 = sadd.s32 1, %s7294_s29  }
 0x9db   : > { %p21_p4 = scmp.ge.s32.totalorder %s24_s29, 4  }
 0x9dd   :  { %23 = sbr.rel (!%p21_p4) target bundleno = 1 (0x1), region = 120 }

</bundles_post_ra>
